<compile_context>
chip_gen: v7x
topology: tpu7x:2x2x1
jax: 0.10.0
libtpu: 0.0.40
codegen_flags: <defaults>
</compile_context>

<pallas_src>
import numpy as np

import jax
import jax.numpy as jnp
from jax.experimental import pallas as pl
from jax.experimental.pallas import tpu as pltpu


# ----------------------------------------------------------------------------
# Structure matrices (built outside the kernel, from PyTorch-layout weights)
# ----------------------------------------------------------------------------
def _enc_row_select(B, H, di):
    """0/1 matrix picking padded input row 2i+di-1 for output row i (stride 2, pad 1)."""
    Ho = H // 2
    R = np.zeros((B * Ho, B * H), np.float32)
    for b in range(B):
        for i in range(Ho):
            h = 2 * i + di - 1
            if 0 <= h < H:
                R[b * Ho + i, b * H + h] = 1.0
    return R


def _dec_row_select(B, H, kh):
    """0/1 matrix scattering input row ih to output row 2*ih-1+kh (ConvTranspose2d)."""
    Ho = 2 * H
    R = np.zeros((B * Ho, B * H), np.float32)
    for b in range(B):
        for ih in range(H):
            oh = 2 * ih - 1 + kh
            if 0 <= oh < Ho:
                R[b * Ho + oh, b * H + ih] = 1.0
    return R


def _enc_col_weight(weight, W):
    """Fold horizontal taps + channel mixing of a stride-2/k3/pad1 Conv2d into
    per-vertical-tap matrices (3, W*Ci, (W//2)*Co).  weight: (Co, Ci, kh, kw)."""
    Co, Ci, _, _ = weight.shape
    Wo = W // 2
    sel = np.zeros((3, W, Wo), np.float32)
    for dj in range(3):
        for j in range(Wo):
            w = 2 * j + dj - 1
            if 0 <= w < W:
                sel[dj, w, j] = 1.0
    wk = jnp.transpose(weight, (2, 3, 1, 0))            # (kh, kw, ci, co)
    m = jnp.einsum("dwj,edcf->ewcjf", sel, wk)          # (kh, w, ci, j, co)
    return m.reshape(3, W * Ci, Wo * Co)


def _dec_col_weight(weight, W):
    """Same for ConvTranspose2d (stride 2, k 3, pad 1, output_padding 1):
    per-vertical-tap matrices (3, W*Ci, (2W)*Co).  weight: (Ci, Co, kh, kw)."""
    Ci, Co, _, _ = weight.shape
    Wo = 2 * W
    sel = np.zeros((3, W, Wo), np.float32)
    for kw in range(3):
        for iw in range(W):
            ow = 2 * iw - 1 + kw
            if 0 <= ow < Wo:
                sel[kw, iw, ow] = 1.0
    wk = jnp.transpose(weight, (2, 3, 0, 1))            # (kh, kw, ci, co)
    m = jnp.einsum("dwj,edcf->ewcjf", sel, wk)
    return m.reshape(3, W * Ci, Wo * Co)


def prepare(params, B):
    """Turn PyTorch-layout params into the matrices consumed by the fused kernel."""
    f32, bf16 = jnp.float32, jnp.bfloat16
    pre = {}

    # --- encoder convs (stride 2, k 3, pad 1) ---
    for name, H in (("e1", 32), ("e2", 16), ("e3", 8)):
        w, b = params[name + "w"], params[name + "b"]
        Co = w.shape[0]
        Ho = H // 2
        pre[name + "R"] = jnp.asarray(
            np.stack([_enc_row_select(B, H, di) for di in range(3)]), bf16)
        pre[name + "M"] = _enc_col_weight(w, H).astype(bf16)
        pre[name + "b"] = jnp.tile(b, (Ho,)).reshape(1, Ho * Co).astype(f32)

    # --- encoder Linear(64*4*4 -> 64) acting on the (B*4, 4*64) layout ---
    F = np.zeros((4, B, B * 4), np.float32)
    P = np.zeros((4, B * 4, B), np.float32)
    for h in range(4):
        for b_ in range(B):
            F[h, b_, b_ * 4 + h] = 1.0
            P[h, b_ * 4 + h, b_] = 1.0
    W4 = params["efc_w"].reshape(64, 64, 4, 4)                  # (n, c, h, w)
    pre["F"] = jnp.asarray(F, bf16)
    pre["G"] = jnp.transpose(W4, (2, 3, 1, 0)).reshape(4, 256, 64).astype(bf16)
    pre["efb"] = params["efc_b"].reshape(1, 64).astype(f32)

    # --- decoder Linear(64 -> 64*4*4) producing the (B*4, 4*64) layout ---
    V4 = params["dfc_w"].reshape(64, 4, 4, 64)                  # (c, h, w, m)
    pre["P"] = jnp.asarray(P, f32)
    pre["E"] = jnp.transpose(V4, (1, 3, 2, 0)).reshape(4, 64, 256).astype(bf16)
    brow = jnp.transpose(params["dfc_b"].reshape(64, 4, 4), (1, 2, 0)).reshape(4, 256)
    pre["dfb"] = jnp.tile(brow, (B, 1)).astype(f32)             # (B*4, 256)

    # --- decoder transposed convs (stride 2, k 3, pad 1, output_pad 1) ---
    for name, H in (("d1", 4), ("d2", 8), ("d3", 16)):
        w, b = params[name + "w"], params[name + "b"]
        Co = w.shape[1]
        Ho = 2 * H
        pre[name + "R"] = jnp.asarray(
            np.stack([_dec_row_select(B, H, kh) for kh in range(3)]), bf16)
        pre[name + "M"] = _dec_col_weight(w, H).astype(bf16)
        pre[name + "b"] = jnp.tile(b, (Ho,)).reshape(1, Ho * Co).astype(f32)

    return pre


# ----------------------------------------------------------------------------
# The single fused Pallas kernel
# ----------------------------------------------------------------------------
def _autoencoder_kernel(
        x_ref,
        e1R, e1M, e1b, e2R, e2M, e2b, e3R, e3M, e3b,
        F_ref, G_ref, efb_ref, P_ref, E_ref, dfb_ref,
        d1R, d1M, d1b, d2R, d2M, d2b, d3R, d3M, d3b,
        latent_ref, recon_ref):
    f32, bf16 = jnp.float32, jnp.bfloat16

    def spatial(h, R_ref, M_ref, b_ref, act):
        # y = sum_d (R_d @ h) @ M_d + bias ;  R_d row-selects (exact in bf16),
        # M_d carries the conv weights of vertical tap d (stride/pad baked in).
        hb = h.astype(bf16)
        acc = None
        for d in range(3):
            rows = jnp.dot(R_ref[d], hb, preferred_element_type=f32).astype(bf16)
            part = jnp.dot(rows, M_ref[d], preferred_element_type=f32)
            acc = part if acc is None else acc + part
        y = acc + b_ref[...]
        if act == "relu":
            y = jnp.maximum(y, 0.0)
        elif act == "sigmoid":
            y = jax.nn.sigmoid(y)
        return y

    # ---------------- encoder ----------------
    h = spatial(x_ref[...], e1R, e1M, e1b, "relu")      # (B*16, 16*16)
    h = spatial(h, e2R, e2M, e2b, "relu")               # (B*8,   8*32)
    h = spatial(h, e3R, e3M, e3b, "none")               # (B*4,   4*64)

    hb = h.astype(bf16)
    lat = None
    for t in range(4):                                  # Linear(1024 -> 64)
        rows = jnp.dot(F_ref[t], hb, preferred_element_type=f32).astype(bf16)
        part = jnp.dot(rows, G_ref[t], preferred_element_type=f32)
        lat = part if lat is None else lat + part
    lat = lat + efb_ref[...]
    latent_ref[...] = lat                               # (B, 64)

    # ---------------- decoder ----------------
    lb = lat.astype(bf16)
    d0 = None
    for t in range(4):                                  # Linear(64 -> 1024) + ReLU
        part = jnp.dot(lb, E_ref[t], preferred_element_type=f32)
        scat = jnp.dot(P_ref[t], part, preferred_element_type=f32)
        d0 = scat if d0 is None else d0 + scat
    d0 = jnp.maximum(d0 + dfb_ref[...], 0.0)            # (B*4, 4*64)

    h = spatial(d0, d1R, d1M, d1b, "relu")              # (B*8,   8*32)
    h = spatial(h, d2R, d2M, d2b, "relu")               # (B*16, 16*16)
    h = spatial(h, d3R, d3M, d3b, "sigmoid")            # (B*32, 32*3)
    recon_ref[...] = h


def fused_forward(pre, x_nchw):
    B, C, H, W = x_nchw.shape
    assert (C, H, W) == (3, 32, 32), "model expects 3x32x32 inputs (Linear(64*4*4))"
    # boundary-only layout change: NCHW -> (B*H, W*C), bf16 MXU operand
    x2d = jnp.transpose(x_nchw, (0, 2, 3, 1)).reshape(B * 32, 32 * 3).astype(jnp.bfloat16)
    args = [
        x2d,
        pre["e1R"], pre["e1M"], pre["e1b"],
        pre["e2R"], pre["e2M"], pre["e2b"],
        pre["e3R"], pre["e3M"], pre["e3b"],
        pre["F"], pre["G"], pre["efb"], pre["P"], pre["E"], pre["dfb"],
        pre["d1R"], pre["d1M"], pre["d1b"],
        pre["d2R"], pre["d2M"], pre["d2b"],
        pre["d3R"], pre["d3M"], pre["d3b"],
    ]
    latent, recon2d = pl.pallas_call(
        _autoencoder_kernel,
        out_shape=(
            jax.ShapeDtypeStruct((B, 64), jnp.float32),
            jax.ShapeDtypeStruct((B * 32, 32 * 3), jnp.float32),
        ),
        compiler_params=pltpu.CompilerParams(vmem_limit_bytes=32 * 1024 * 1024),
        cost_estimate=pl.CostEstimate(
            flops=130_000_000,
            transcendentals=B * 32 * 32 * 3,
            bytes_accessed=3 * 1024 * 1024,
        ),
    )(*args)
    recon = recon2d.reshape(B, 32, 32, 3).transpose(0, 3, 1, 2)
    return latent, recon


def autoencoder_forward(params, x):
    pre = prepare(params, x.shape[0])
    return fused_forward(pre, x)


# ----------------------------------------------------------------------------
# Parameters (deterministic synthetic init; shapes match the nn.Module)
# ----------------------------------------------------------------------------
def init_params(key, latent_dim=64):
    ks = jax.random.split(key, 16)
    n = lambda k, shape: (0.05 * jax.random.normal(k, shape, jnp.float32))
    return {
        # encoder
        "e1w": n(ks[0], (16, 3, 3, 3)),   "e1b": n(ks[1], (16,)),
        "e2w": n(ks[2], (32, 16, 3, 3)),  "e2b": n(ks[3], (32,)),
        "e3w": n(ks[4], (64, 32, 3, 3)),  "e3b": n(ks[5], (64,)),
        "efc_w": n(ks[6], (latent_dim, 64 * 4 * 4)), "efc_b": n(ks[7], (latent_dim,)),
        # decoder
        "dfc_w": n(ks[8], (64 * 4 * 4, latent_dim)), "dfc_b": n(ks[9], (64 * 4 * 4,)),
        "d1w": n(ks[10], (64, 32, 3, 3)), "d1b": n(ks[11], (32,)),
        "d2w": n(ks[12], (32, 16, 3, 3)), "d2b": n(ks[13], (16,)),
        "d3w": n(ks[14], (16, 3, 3, 3)),  "d3b": n(ks[15], (3,)),
    }


# ----------------------------------------------------------------------------
# Pure-JAX reference (validated im2col formulation) for a numeric self-check
# ----------------------------------------------------------------------------
def _ref_patches(xp, Ho, Wo, k, stride):
    B, C, _, _ = xp.shape
    cols = []
    for di in range(k):
        for dj in range(k):
            cols.append(xp[:, :, di:di + stride * Ho:stride, dj:dj + stride * Wo:stride])
    p = jnp.stack(cols, axis=0).reshape(k, k, B, C, Ho, Wo)
    p = p.transpose(2, 4, 5, 3, 0, 1)
    return p.reshape(B * Ho * Wo, C * k * k)


def _ref_act(y, act):
    if act == "relu":
        return jnp.maximum(y, 0.0)
    if act == "sigmoid":
        return jax.nn.sigmoid(y)
    return y


def _ref_conv2d(x, weight, bias, stride, padding, act):
    B, Cin, H, W = x.shape
    Cout, _, k, _ = weight.shape
    Ho = (H + 2 * padding - k) // stride + 1
    Wo = (W + 2 * padding - k) // stride + 1
    xp = jnp.pad(x, ((0, 0), (0, 0), (padding, padding), (padding, padding)))
    patches = _ref_patches(xp, Ho, Wo, k, stride)
    y = _ref_act(patches @ weight.reshape(Cout, -1).T + bias, act)
    return y.reshape(B, Ho, Wo, Cout).transpose(0, 3, 1, 2)


def _ref_convT2d(x, weight, bias, stride, padding, output_padding, act):
    B, Cin, H, W = x.shape
    _, Cout, k, _ = weight.shape
    Ho = (H - 1) * stride - 2 * padding + k + output_padding
    Wo = (W - 1) * stride - 2 * padding + k + output_padding
    xd = jnp.zeros((B, Cin, (H - 1) * stride + 1, (W - 1) * stride + 1), x.dtype)
    xd = xd.at[:, :, ::stride, ::stride].set(x)
    pad_lo = k - 1 - padding
    pad_hi = k - 1 - padding + output_padding
    xp = jnp.pad(xd, ((0, 0), (0, 0), (pad_lo, pad_hi), (pad_lo, pad_hi)))
    w_conv = jnp.flip(weight, axis=(2, 3)).transpose(1, 0, 2, 3)
    patches = _ref_patches(xp, Ho, Wo, k, 1)
    y = _ref_act(patches @ w_conv.reshape(Cout, -1).T + bias, act)
    return y.reshape(B, Ho, Wo, Cout).transpose(0, 3, 1, 2)


def reference_forward(params, x):
    h = _ref_conv2d(x, params["e1w"], params["e1b"], 2, 1, "relu")
    h = _ref_conv2d(h, params["e2w"], params["e2b"], 2, 1, "relu")
    h = _ref_conv2d(h, params["e3w"], params["e3b"], 2, 1, "none")
    flat = h.reshape(h.shape[0], -1)
    latent = flat @ params["efc_w"].T + params["efc_b"]
    d = jnp.maximum(latent @ params["dfc_w"].T + params["dfc_b"], 0.0)
    d = d.reshape(-1, 64, 4, 4)
    d = _ref_convT2d(d, params["d1w"], params["d1b"], 2, 1, 1, "relu")
    d = _ref_convT2d(d, params["d2w"], params["d2b"], 2, 1, 1, "relu")
    recon = _ref_convT2d(d, params["d3w"], params["d3b"], 2, 1, 1, "sigmoid")
    return latent, recon


if __name__ == "__main__":
    key = jax.random.PRNGKey(0)
    pkey, xkey = jax.random.split(key)
    params = init_params(pkey)
    # input must be 32x32 so the encoder bottleneck is 64*4*4 (as the Linear implies)
    x = jax.random.normal(xkey, (2, 3, 32, 32), jnp.float32)

    fwd = jax.jit(autoencoder_forward)
    latent, recon = fwd(params, x)
    jax.block_until_ready((latent, recon))

    assert latent.shape == (2, 64), latent.shape
    assert recon.shape == (2, 3, 32, 32), recon.shape
    assert bool(jnp.all(jnp.isfinite(latent))) and bool(jnp.all(jnp.isfinite(recon)))
    assert bool(jnp.all(recon >= 0.0)) and bool(jnp.all(recon <= 1.0))  # sigmoid range

    # numeric self-check against the pure-JAX (f32) reference; kernel uses bf16
    # MXU operands so allow a loose tolerance.
    ref_latent, ref_recon = jax.jit(reference_forward)(params, x)
    assert float(jnp.max(jnp.abs(latent - ref_latent))) < 5e-2
    assert float(jnp.max(jnp.abs(recon - ref_recon))) < 5e-2

    print("KERNEL_OK")
</pallas_src>

<mosaic_0001>
module attributes {stable_mosaic.version = 11 : i64} {
  func.func @_autoencoder_kernel(%arg0: memref<64x96xbf16, #tpu.memory_space<vmem>>, %arg1: memref<3x32x64xbf16, #tpu.memory_space<vmem>>, %arg2: memref<3x96x256xbf16, #tpu.memory_space<vmem>>, %arg3: memref<1x256xf32, #tpu.memory_space<vmem>>, %arg4: memref<3x16x32xbf16, #tpu.memory_space<vmem>>, %arg5: memref<3x256x256xbf16, #tpu.memory_space<vmem>>, %arg6: memref<1x256xf32, #tpu.memory_space<vmem>>, %arg7: memref<3x8x16xbf16, #tpu.memory_space<vmem>>, %arg8: memref<3x256x256xbf16, #tpu.memory_space<vmem>>, %arg9: memref<1x256xf32, #tpu.memory_space<vmem>>, %arg10: memref<4x2x8xbf16, #tpu.memory_space<vmem>>, %arg11: memref<4x256x64xbf16, #tpu.memory_space<vmem>>, %arg12: memref<1x64xf32, #tpu.memory_space<vmem>>, %arg13: memref<4x8x2xf32, #tpu.memory_space<vmem>>, %arg14: memref<4x64x256xbf16, #tpu.memory_space<vmem>>, %arg15: memref<8x256xf32, #tpu.memory_space<vmem>>, %arg16: memref<3x16x8xbf16, #tpu.memory_space<vmem>>, %arg17: memref<3x256x256xbf16, #tpu.memory_space<vmem>>, %arg18: memref<1x256xf32, #tpu.memory_space<vmem>>, %arg19: memref<3x32x16xbf16, #tpu.memory_space<vmem>>, %arg20: memref<3x256x256xbf16, #tpu.memory_space<vmem>>, %arg21: memref<1x256xf32, #tpu.memory_space<vmem>>, %arg22: memref<3x64x32xbf16, #tpu.memory_space<vmem>>, %arg23: memref<3x256x96xbf16, #tpu.memory_space<vmem>>, %arg24: memref<1x96xf32, #tpu.memory_space<vmem>>, %arg25: memref<2x64xf32, #tpu.memory_space<vmem>>, %arg26: memref<64x96xf32, #tpu.memory_space<vmem>>) attributes {dimension_semantics = [], scalar_prefetch = 0 : i64, scratch_operands = 0 : i64, tpu.core_type = #tpu.core_type<tc>} {
    %c0 = arith.constant 0 : index
    %c0_0 = arith.constant 0 : index
    %0 = vector.load %arg0[%c0, %c0_0] : memref<64x96xbf16, #tpu.memory_space<vmem>>, vector<64x96xbf16>
    %c0_1 = arith.constant 0 : index
    %c0_2 = arith.constant 0 : index
    %c0_3 = arith.constant 0 : index
    %1 = vector.load %arg1[%c0_1, %c0_2, %c0_3] : memref<3x32x64xbf16, #tpu.memory_space<vmem>>, vector<1x32x64xbf16>
    %2 = vector.shape_cast %1 : vector<1x32x64xbf16> to vector<32x64xbf16>
    %cst = arith.constant dense<0.000000e+00> : vector<32x96xf32>
    %3 = tpu.matmul %2, %0, %cst {dimension_numbers = #tpu.dot_dimension_numbers<[1], [0], [0], [1], [0, 0, 1, 1], [], []>} : vector<32x64xbf16>, vector<64x96xbf16>, vector<32x96xf32> -> vector<32x96xf32>
    %4 = arith.truncf %3 : vector<32x96xf32> to vector<32x96xbf16>
    %c0_4 = arith.constant 0 : index
    %c0_5 = arith.constant 0 : index
    %c0_6 = arith.constant 0 : index
    %5 = vector.load %arg2[%c0_4, %c0_5, %c0_6] : memref<3x96x256xbf16, #tpu.memory_space<vmem>>, vector<1x96x256xbf16>
    %6 = vector.shape_cast %5 : vector<1x96x256xbf16> to vector<96x256xbf16>
    %cst_7 = arith.constant dense<0.000000e+00> : vector<32x256xf32>
    %7 = tpu.matmul %4, %6, %cst_7 {dimension_numbers = #tpu.dot_dimension_numbers<[1], [0], [0], [1], [0, 0, 1, 1], [], []>} : vector<32x96xbf16>, vector<96x256xbf16>, vector<32x256xf32> -> vector<32x256xf32>
    %c1 = arith.constant 1 : index
    %c0_8 = arith.constant 0 : index
    %c0_9 = arith.constant 0 : index
    %8 = vector.load %arg1[%c1, %c0_8, %c0_9] : memref<3x32x64xbf16, #tpu.memory_space<vmem>>, vector<1x32x64xbf16>
    %9 = vector.shape_cast %8 : vector<1x32x64xbf16> to vector<32x64xbf16>
    %cst_10 = arith.constant dense<0.000000e+00> : vector<32x96xf32>
    %10 = tpu.matmul %9, %0, %cst_10 {dimension_numbers = #tpu.dot_dimension_numbers<[1], [0], [0], [1], [0, 0, 1, 1], [], []>} : vector<32x64xbf16>, vector<64x96xbf16>, vector<32x96xf32> -> vector<32x96xf32>
    %11 = arith.truncf %10 : vector<32x96xf32> to vector<32x96xbf16>
    %c1_11 = arith.constant 1 : index
    %c0_12 = arith.constant 0 : index
    %c0_13 = arith.constant 0 : index
    %12 = vector.load %arg2[%c1_11, %c0_12, %c0_13] : memref<3x96x256xbf16, #tpu.memory_space<vmem>>, vector<1x96x256xbf16>
    %13 = vector.shape_cast %12 : vector<1x96x256xbf16> to vector<96x256xbf16>
    %cst_14 = arith.constant dense<0.000000e+00> : vector<32x256xf32>
    %14 = tpu.matmul %11, %13, %cst_14 {dimension_numbers = #tpu.dot_dimension_numbers<[1], [0], [0], [1], [0, 0, 1, 1], [], []>} : vector<32x96xbf16>, vector<96x256xbf16>, vector<32x256xf32> -> vector<32x256xf32>
    %15 = arith.addf %7, %14 : vector<32x256xf32>
    %c2 = arith.constant 2 : index
    %c0_15 = arith.constant 0 : index
    %c0_16 = arith.constant 0 : index
    %16 = vector.load %arg1[%c2, %c0_15, %c0_16] : memref<3x32x64xbf16, #tpu.memory_space<vmem>>, vector<1x32x64xbf16>
    %17 = vector.shape_cast %16 : vector<1x32x64xbf16> to vector<32x64xbf16>
    %cst_17 = arith.constant dense<0.000000e+00> : vector<32x96xf32>
    %18 = tpu.matmul %17, %0, %cst_17 {dimension_numbers = #tpu.dot_dimension_numbers<[1], [0], [0], [1], [0, 0, 1, 1], [], []>} : vector<32x64xbf16>, vector<64x96xbf16>, vector<32x96xf32> -> vector<32x96xf32>
    %19 = arith.truncf %18 : vector<32x96xf32> to vector<32x96xbf16>
    %c2_18 = arith.constant 2 : index
    %c0_19 = arith.constant 0 : index
    %c0_20 = arith.constant 0 : index
    %20 = vector.load %arg2[%c2_18, %c0_19, %c0_20] : memref<3x96x256xbf16, #tpu.memory_space<vmem>>, vector<1x96x256xbf16>
    %21 = vector.shape_cast %20 : vector<1x96x256xbf16> to vector<96x256xbf16>
    %cst_21 = arith.constant dense<0.000000e+00> : vector<32x256xf32>
    %22 = tpu.matmul %19, %21, %cst_21 {dimension_numbers = #tpu.dot_dimension_numbers<[1], [0], [0], [1], [0, 0, 1, 1], [], []>} : vector<32x96xbf16>, vector<96x256xbf16>, vector<32x256xf32> -> vector<32x256xf32>
    %23 = arith.addf %15, %22 : vector<32x256xf32>
    %c0_22 = arith.constant 0 : index
    %c0_23 = arith.constant 0 : index
    %24 = vector.load %arg3[%c0_22, %c0_23] : memref<1x256xf32, #tpu.memory_space<vmem>>, vector<1x256xf32>
    %25 = vector.broadcast %24 : vector<1x256xf32> to vector<32x256xf32>
    %26 = arith.addf %23, %25 : vector<32x256xf32>
    %cst_24 = arith.constant 0.000000e+00 : f32
    %27 = vector.broadcast %cst_24 : f32 to vector<32x256xf32>
    %28 = arith.maximumf %26, %27 : vector<32x256xf32>
    %29 = arith.truncf %28 : vector<32x256xf32> to vector<32x256xbf16>
    %c0_25 = arith.constant 0 : index
    %c0_26 = arith.constant 0 : index
    %c0_27 = arith.constant 0 : index
    %30 = vector.load %arg4[%c0_25, %c0_26, %c0_27] : memref<3x16x32xbf16, #tpu.memory_space<vmem>>, vector<1x16x32xbf16>
    %31 = vector.shape_cast %30 : vector<1x16x32xbf16> to vector<16x32xbf16>
    %cst_28 = arith.constant dense<0.000000e+00> : vector<16x256xf32>
    %32 = tpu.matmul %31, %29, %cst_28 {dimension_numbers = #tpu.dot_dimension_numbers<[1], [0], [0], [1], [0, 0, 1, 1], [], []>} : vector<16x32xbf16>, vector<32x256xbf16>, vector<16x256xf32> -> vector<16x256xf32>
    %33 = arith.truncf %32 : vector<16x256xf32> to vector<16x256xbf16>
    %c0_29 = arith.constant 0 : index
    %c0_30 = arith.constant 0 : index
    %c0_31 = arith.constant 0 : index
    %34 = vector.load %arg5[%c0_29, %c0_30, %c0_31] : memref<3x256x256xbf16, #tpu.memory_space<vmem>>, vector<1x256x256xbf16>
    %35 = vector.shape_cast %34 : vector<1x256x256xbf16> to vector<256x256xbf16>
    %cst_32 = arith.constant dense<0.000000e+00> : vector<16x256xf32>
    %36 = tpu.matmul %33, %35, %cst_32 {dimension_numbers = #tpu.dot_dimension_numbers<[1], [0], [0], [1], [0, 0, 1, 1], [], []>} : vector<16x256xbf16>, vector<256x256xbf16>, vector<16x256xf32> -> vector<16x256xf32>
    %c1_33 = arith.constant 1 : index
    %c0_34 = arith.constant 0 : index
    %c0_35 = arith.constant 0 : index
    %37 = vector.load %arg4[%c1_33, %c0_34, %c0_35] : memref<3x16x32xbf16, #tpu.memory_space<vmem>>, vector<1x16x32xbf16>
    %38 = vector.shape_cast %37 : vector<1x16x32xbf16> to vector<16x32xbf16>
    %cst_36 = arith.constant dense<0.000000e+00> : vector<16x256xf32>
    %39 = tpu.matmul %38, %29, %cst_36 {dimension_numbers = #tpu.dot_dimension_numbers<[1], [0], [0], [1], [0, 0, 1, 1], [], []>} : vector<16x32xbf16>, vector<32x256xbf16>, vector<16x256xf32> -> vector<16x256xf32>
    %40 = arith.truncf %39 : vector<16x256xf32> to vector<16x256xbf16>
    %c1_37 = arith.constant 1 : index
    %c0_38 = arith.constant 0 : index
    %c0_39 = arith.constant 0 : index
    %41 = vector.load %arg5[%c1_37, %c0_38, %c0_39] : memref<3x256x256xbf16, #tpu.memory_space<vmem>>, vector<1x256x256xbf16>
    %42 = vector.shape_cast %41 : vector<1x256x256xbf16> to vector<256x256xbf16>
    %cst_40 = arith.constant dense<0.000000e+00> : vector<16x256xf32>
    %43 = tpu.matmul %40, %42, %cst_40 {dimension_numbers = #tpu.dot_dimension_numbers<[1], [0], [0], [1], [0, 0, 1, 1], [], []>} : vector<16x256xbf16>, vector<256x256xbf16>, vector<16x256xf32> -> vector<16x256xf32>
    %44 = arith.addf %36, %43 : vector<16x256xf32>
    %c2_41 = arith.constant 2 : index
    %c0_42 = arith.constant 0 : index
    %c0_43 = arith.constant 0 : index
    %45 = vector.load %arg4[%c2_41, %c0_42, %c0_43] : memref<3x16x32xbf16, #tpu.memory_space<vmem>>, vector<1x16x32xbf16>
    %46 = vector.shape_cast %45 : vector<1x16x32xbf16> to vector<16x32xbf16>
    %cst_44 = arith.constant dense<0.000000e+00> : vector<16x256xf32>
    %47 = tpu.matmul %46, %29, %cst_44 {dimension_numbers = #tpu.dot_dimension_numbers<[1], [0], [0], [1], [0, 0, 1, 1], [], []>} : vector<16x32xbf16>, vector<32x256xbf16>, vector<16x256xf32> -> vector<16x256xf32>
    %48 = arith.truncf %47 : vector<16x256xf32> to vector<16x256xbf16>
    %c2_45 = arith.constant 2 : index
    %c0_46 = arith.constant 0 : index
    %c0_47 = arith.constant 0 : index
    %49 = vector.load %arg5[%c2_45, %c0_46, %c0_47] : memref<3x256x256xbf16, #tpu.memory_space<vmem>>, vector<1x256x256xbf16>
    %50 = vector.shape_cast %49 : vector<1x256x256xbf16> to vector<256x256xbf16>
    %cst_48 = arith.constant dense<0.000000e+00> : vector<16x256xf32>
    %51 = tpu.matmul %48, %50, %cst_48 {dimension_numbers = #tpu.dot_dimension_numbers<[1], [0], [0], [1], [0, 0, 1, 1], [], []>} : vector<16x256xbf16>, vector<256x256xbf16>, vector<16x256xf32> -> vector<16x256xf32>
    %52 = arith.addf %44, %51 : vector<16x256xf32>
    %c0_49 = arith.constant 0 : index
    %c0_50 = arith.constant 0 : index
    %53 = vector.load %arg6[%c0_49, %c0_50] : memref<1x256xf32, #tpu.memory_space<vmem>>, vector<1x256xf32>
    %54 = vector.broadcast %53 : vector<1x256xf32> to vector<16x256xf32>
    %55 = arith.addf %52, %54 : vector<16x256xf32>
    %cst_51 = arith.constant 0.000000e+00 : f32
    %56 = vector.broadcast %cst_51 : f32 to vector<16x256xf32>
    %57 = arith.maximumf %55, %56 : vector<16x256xf32>
    %58 = arith.truncf %57 : vector<16x256xf32> to vector<16x256xbf16>
    %c0_52 = arith.constant 0 : index
    %c0_53 = arith.constant 0 : index
    %c0_54 = arith.constant 0 : index
    %59 = vector.load %arg7[%c0_52, %c0_53, %c0_54] : memref<3x8x16xbf16, #tpu.memory_space<vmem>>, vector<1x8x16xbf16>
    %60 = vector.shape_cast %59 : vector<1x8x16xbf16> to vector<8x16xbf16>
    %cst_55 = arith.constant dense<0.000000e+00> : vector<8x256xf32>
    %61 = tpu.matmul %60, %58, %cst_55 {dimension_numbers = #tpu.dot_dimension_numbers<[1], [0], [0], [1], [0, 0, 1, 1], [], []>} : vector<8x16xbf16>, vector<16x256xbf16>, vector<8x256xf32> -> vector<8x256xf32>
    %62 = arith.truncf %61 : vector<8x256xf32> to vector<8x256xbf16>
    %c0_56 = arith.constant 0 : index
    %c0_57 = arith.constant 0 : index
    %c0_58 = arith.constant 0 : index
    %63 = vector.load %arg8[%c0_56, %c0_57, %c0_58] : memref<3x256x256xbf16, #tpu.memory_space<vmem>>, vector<1x256x256xbf16>
    %64 = vector.shape_cast %63 : vector<1x256x256xbf16> to vector<256x256xbf16>
    %cst_59 = arith.constant dense<0.000000e+00> : vector<8x256xf32>
    %65 = tpu.matmul %62, %64, %cst_59 {dimension_numbers = #tpu.dot_dimension_numbers<[1], [0], [0], [1], [0, 0, 1, 1], [], []>} : vector<8x256xbf16>, vector<256x256xbf16>, vector<8x256xf32> -> vector<8x256xf32>
    %c1_60 = arith.constant 1 : index
    %c0_61 = arith.constant 0 : index
    %c0_62 = arith.constant 0 : index
    %66 = vector.load %arg7[%c1_60, %c0_61, %c0_62] : memref<3x8x16xbf16, #tpu.memory_space<vmem>>, vector<1x8x16xbf16>
    %67 = vector.shape_cast %66 : vector<1x8x16xbf16> to vector<8x16xbf16>
    %cst_63 = arith.constant dense<0.000000e+00> : vector<8x256xf32>
    %68 = tpu.matmul %67, %58, %cst_63 {dimension_numbers = #tpu.dot_dimension_numbers<[1], [0], [0], [1], [0, 0, 1, 1], [], []>} : vector<8x16xbf16>, vector<16x256xbf16>, vector<8x256xf32> -> vector<8x256xf32>
    %69 = arith.truncf %68 : vector<8x256xf32> to vector<8x256xbf16>
    %c1_64 = arith.constant 1 : index
    %c0_65 = arith.constant 0 : index
    %c0_66 = arith.constant 0 : index
    %70 = vector.load %arg8[%c1_64, %c0_65, %c0_66] : memref<3x256x256xbf16, #tpu.memory_space<vmem>>, vector<1x256x256xbf16>
    %71 = vector.shape_cast %70 : vector<1x256x256xbf16> to vector<256x256xbf16>
    %cst_67 = arith.constant dense<0.000000e+00> : vector<8x256xf32>
    %72 = tpu.matmul %69, %71, %cst_67 {dimension_numbers = #tpu.dot_dimension_numbers<[1], [0], [0], [1], [0, 0, 1, 1], [], []>} : vector<8x256xbf16>, vector<256x256xbf16>, vector<8x256xf32> -> vector<8x256xf32>
    %73 = arith.addf %65, %72 : vector<8x256xf32>
    %c2_68 = arith.constant 2 : index
    %c0_69 = arith.constant 0 : index
    %c0_70 = arith.constant 0 : index
    %74 = vector.load %arg7[%c2_68, %c0_69, %c0_70] : memref<3x8x16xbf16, #tpu.memory_space<vmem>>, vector<1x8x16xbf16>
    %75 = vector.shape_cast %74 : vector<1x8x16xbf16> to vector<8x16xbf16>
    %cst_71 = arith.constant dense<0.000000e+00> : vector<8x256xf32>
    %76 = tpu.matmul %75, %58, %cst_71 {dimension_numbers = #tpu.dot_dimension_numbers<[1], [0], [0], [1], [0, 0, 1, 1], [], []>} : vector<8x16xbf16>, vector<16x256xbf16>, vector<8x256xf32> -> vector<8x256xf32>
    %77 = arith.truncf %76 : vector<8x256xf32> to vector<8x256xbf16>
    %c2_72 = arith.constant 2 : index
    %c0_73 = arith.constant 0 : index
    %c0_74 = arith.constant 0 : index
    %78 = vector.load %arg8[%c2_72, %c0_73, %c0_74] : memref<3x256x256xbf16, #tpu.memory_space<vmem>>, vector<1x256x256xbf16>
    %79 = vector.shape_cast %78 : vector<1x256x256xbf16> to vector<256x256xbf16>
    %cst_75 = arith.constant dense<0.000000e+00> : vector<8x256xf32>
    %80 = tpu.matmul %77, %79, %cst_75 {dimension_numbers = #tpu.dot_dimension_numbers<[1], [0], [0], [1], [0, 0, 1, 1], [], []>} : vector<8x256xbf16>, vector<256x256xbf16>, vector<8x256xf32> -> vector<8x256xf32>
    %81 = arith.addf %73, %80 : vector<8x256xf32>
    %c0_76 = arith.constant 0 : index
    %c0_77 = arith.constant 0 : index
    %82 = vector.load %arg9[%c0_76, %c0_77] : memref<1x256xf32, #tpu.memory_space<vmem>>, vector<1x256xf32>
    %83 = vector.broadcast %82 : vector<1x256xf32> to vector<8x256xf32>
    %84 = arith.addf %81, %83 : vector<8x256xf32>
    %85 = arith.truncf %84 : vector<8x256xf32> to vector<8x256xbf16>
    %c0_78 = arith.constant 0 : index
    %c0_79 = arith.constant 0 : index
    %c0_80 = arith.constant 0 : index
    %86 = vector.load %arg10[%c0_78, %c0_79, %c0_80] : memref<4x2x8xbf16, #tpu.memory_space<vmem>>, vector<1x2x8xbf16>
    %87 = vector.shape_cast %86 : vector<1x2x8xbf16> to vector<2x8xbf16>
    %cst_81 = arith.constant dense<0.000000e+00> : vector<2x256xf32>
    %88 = tpu.matmul %87, %85, %cst_81 {dimension_numbers = #tpu.dot_dimension_numbers<[1], [0], [0], [1], [0, 0, 1, 1], [], []>} : vector<2x8xbf16>, vector<8x256xbf16>, vector<2x256xf32> -> vector<2x256xf32>
    %89 = arith.truncf %88 : vector<2x256xf32> to vector<2x256xbf16>
    %c0_82 = arith.constant 0 : index
    %c0_83 = arith.constant 0 : index
    %c0_84 = arith.constant 0 : index
    %90 = vector.load %arg11[%c0_82, %c0_83, %c0_84] : memref<4x256x64xbf16, #tpu.memory_space<vmem>>, vector<1x256x64xbf16>
    %91 = vector.shape_cast %90 : vector<1x256x64xbf16> to vector<256x64xbf16>
    %cst_85 = arith.constant dense<0.000000e+00> : vector<2x64xf32>
    %92 = tpu.matmul %89, %91, %cst_85 {dimension_numbers = #tpu.dot_dimension_numbers<[1], [0], [0], [1], [0, 0, 1, 1], [], []>} : vector<2x256xbf16>, vector<256x64xbf16>, vector<2x64xf32> -> vector<2x64xf32>
    %c1_86 = arith.constant 1 : index
    %c0_87 = arith.constant 0 : index
    %c0_88 = arith.constant 0 : index
    %93 = vector.load %arg10[%c1_86, %c0_87, %c0_88] : memref<4x2x8xbf16, #tpu.memory_space<vmem>>, vector<1x2x8xbf16>
    %94 = vector.shape_cast %93 : vector<1x2x8xbf16> to vector<2x8xbf16>
    %cst_89 = arith.constant dense<0.000000e+00> : vector<2x256xf32>
    %95 = tpu.matmul %94, %85, %cst_89 {dimension_numbers = #tpu.dot_dimension_numbers<[1], [0], [0], [1], [0, 0, 1, 1], [], []>} : vector<2x8xbf16>, vector<8x256xbf16>, vector<2x256xf32> -> vector<2x256xf32>
    %96 = arith.truncf %95 : vector<2x256xf32> to vector<2x256xbf16>
    %c1_90 = arith.constant 1 : index
    %c0_91 = arith.constant 0 : index
    %c0_92 = arith.constant 0 : index
    %97 = vector.load %arg11[%c1_90, %c0_91, %c0_92] : memref<4x256x64xbf16, #tpu.memory_space<vmem>>, vector<1x256x64xbf16>
    %98 = vector.shape_cast %97 : vector<1x256x64xbf16> to vector<256x64xbf16>
    %cst_93 = arith.constant dense<0.000000e+00> : vector<2x64xf32>
    %99 = tpu.matmul %96, %98, %cst_93 {dimension_numbers = #tpu.dot_dimension_numbers<[1], [0], [0], [1], [0, 0, 1, 1], [], []>} : vector<2x256xbf16>, vector<256x64xbf16>, vector<2x64xf32> -> vector<2x64xf32>
    %100 = arith.addf %92, %99 : vector<2x64xf32>
    %c2_94 = arith.constant 2 : index
    %c0_95 = arith.constant 0 : index
    %c0_96 = arith.constant 0 : index
    %101 = vector.load %arg10[%c2_94, %c0_95, %c0_96] : memref<4x2x8xbf16, #tpu.memory_space<vmem>>, vector<1x2x8xbf16>
    %102 = vector.shape_cast %101 : vector<1x2x8xbf16> to vector<2x8xbf16>
    %cst_97 = arith.constant dense<0.000000e+00> : vector<2x256xf32>
    %103 = tpu.matmul %102, %85, %cst_97 {dimension_numbers = #tpu.dot_dimension_numbers<[1], [0], [0], [1], [0, 0, 1, 1], [], []>} : vector<2x8xbf16>, vector<8x256xbf16>, vector<2x256xf32> -> vector<2x256xf32>
    %104 = arith.truncf %103 : vector<2x256xf32> to vector<2x256xbf16>
    %c2_98 = arith.constant 2 : index
    %c0_99 = arith.constant 0 : index
    %c0_100 = arith.constant 0 : index
    %105 = vector.load %arg11[%c2_98, %c0_99, %c0_100] : memref<4x256x64xbf16, #tpu.memory_space<vmem>>, vector<1x256x64xbf16>
    %106 = vector.shape_cast %105 : vector<1x256x64xbf16> to vector<256x64xbf16>
    %cst_101 = arith.constant dense<0.000000e+00> : vector<2x64xf32>
    %107 = tpu.matmul %104, %106, %cst_101 {dimension_numbers = #tpu.dot_dimension_numbers<[1], [0], [0], [1], [0, 0, 1, 1], [], []>} : vector<2x256xbf16>, vector<256x64xbf16>, vector<2x64xf32> -> vector<2x64xf32>
    %108 = arith.addf %100, %107 : vector<2x64xf32>
    %c3 = arith.constant 3 : index
    %c0_102 = arith.constant 0 : index
    %c0_103 = arith.constant 0 : index
    %109 = vector.load %arg10[%c3, %c0_102, %c0_103] : memref<4x2x8xbf16, #tpu.memory_space<vmem>>, vector<1x2x8xbf16>
    %110 = vector.shape_cast %109 : vector<1x2x8xbf16> to vector<2x8xbf16>
    %cst_104 = arith.constant dense<0.000000e+00> : vector<2x256xf32>
    %111 = tpu.matmul %110, %85, %cst_104 {dimension_numbers = #tpu.dot_dimension_numbers<[1], [0], [0], [1], [0, 0, 1, 1], [], []>} : vector<2x8xbf16>, vector<8x256xbf16>, vector<2x256xf32> -> vector<2x256xf32>
    %112 = arith.truncf %111 : vector<2x256xf32> to vector<2x256xbf16>
    %c3_105 = arith.constant 3 : index
    %c0_106 = arith.constant 0 : index
    %c0_107 = arith.constant 0 : index
    %113 = vector.load %arg11[%c3_105, %c0_106, %c0_107] : memref<4x256x64xbf16, #tpu.memory_space<vmem>>, vector<1x256x64xbf16>
    %114 = vector.shape_cast %113 : vector<1x256x64xbf16> to vector<256x64xbf16>
    %cst_108 = arith.constant dense<0.000000e+00> : vector<2x64xf32>
    %115 = tpu.matmul %112, %114, %cst_108 {dimension_numbers = #tpu.dot_dimension_numbers<[1], [0], [0], [1], [0, 0, 1, 1], [], []>} : vector<2x256xbf16>, vector<256x64xbf16>, vector<2x64xf32> -> vector<2x64xf32>
    %116 = arith.addf %108, %115 : vector<2x64xf32>
    %c0_109 = arith.constant 0 : index
    %c0_110 = arith.constant 0 : index
    %117 = vector.load %arg12[%c0_109, %c0_110] : memref<1x64xf32, #tpu.memory_space<vmem>>, vector<1x64xf32>
    %118 = vector.broadcast %117 : vector<1x64xf32> to vector<2x64xf32>
    %119 = arith.addf %116, %118 : vector<2x64xf32>
    %c0_111 = arith.constant 0 : index
    %c0_112 = arith.constant 0 : index
    %120 = vector.load %arg25[%c0_111, %c0_112] : memref<2x64xf32, #tpu.memory_space<vmem>>, vector<2x64xf32>
    tpu.vector_store %arg25[%c0_111, %c0_112], %119 {strides = array<i32>} : memref<2x64xf32, #tpu.memory_space<vmem>>, vector<2x64xf32>,
    %121 = arith.truncf %119 : vector<2x64xf32> to vector<2x64xbf16>
    %c0_113 = arith.constant 0 : index
    %c0_114 = arith.constant 0 : index
    %c0_115 = arith.constant 0 : index
    %122 = vector.load %arg14[%c0_113, %c0_114, %c0_115] : memref<4x64x256xbf16, #tpu.memory_space<vmem>>, vector<1x64x256xbf16>
    %123 = vector.shape_cast %122 : vector<1x64x256xbf16> to vector<64x256xbf16>
    %cst_116 = arith.constant dense<0.000000e+00> : vector<2x256xf32>
    %124 = tpu.matmul %121, %123, %cst_116 {dimension_numbers = #tpu.dot_dimension_numbers<[1], [0], [0], [1], [0, 0, 1, 1], [], []>} : vector<2x64xbf16>, vector<64x256xbf16>, vector<2x256xf32> -> vector<2x256xf32>
    %c0_117 = arith.constant 0 : index
    %c0_118 = arith.constant 0 : index
    %c0_119 = arith.constant 0 : index
    %125 = vector.load %arg13[%c0_117, %c0_118, %c0_119] : memref<4x8x2xf32, #tpu.memory_space<vmem>>, vector<1x8x2xf32>
    %126 = vector.shape_cast %125 : vector<1x8x2xf32> to vector<8x2xf32>
    %cst_120 = arith.constant dense<0.000000e+00> : vector<8x256xf32>
    %127 = tpu.matmul %126, %124, %cst_120 {dimension_numbers = #tpu.dot_dimension_numbers<[1], [0], [0], [1], [0, 0, 1, 1], [], []>} : vector<8x2xf32>, vector<2x256xf32>, vector<8x256xf32> -> vector<8x256xf32>
    %c1_121 = arith.constant 1 : index
    %c0_122 = arith.constant 0 : index
    %c0_123 = arith.constant 0 : index
    %128 = vector.load %arg14[%c1_121, %c0_122, %c0_123] : memref<4x64x256xbf16, #tpu.memory_space<vmem>>, vector<1x64x256xbf16>
    %129 = vector.shape_cast %128 : vector<1x64x256xbf16> to vector<64x256xbf16>
    %cst_124 = arith.constant dense<0.000000e+00> : vector<2x256xf32>
    %130 = tpu.matmul %121, %129, %cst_124 {dimension_numbers = #tpu.dot_dimension_numbers<[1], [0], [0], [1], [0, 0, 1, 1], [], []>} : vector<2x64xbf16>, vector<64x256xbf16>, vector<2x256xf32> -> vector<2x256xf32>
    %c1_125 = arith.constant 1 : index
    %c0_126 = arith.constant 0 : index
    %c0_127 = arith.constant 0 : index
    %131 = vector.load %arg13[%c1_125, %c0_126, %c0_127] : memref<4x8x2xf32, #tpu.memory_space<vmem>>, vector<1x8x2xf32>
    %132 = vector.shape_cast %131 : vector<1x8x2xf32> to vector<8x2xf32>
    %cst_128 = arith.constant dense<0.000000e+00> : vector<8x256xf32>
    %133 = tpu.matmul %132, %130, %cst_128 {dimension_numbers = #tpu.dot_dimension_numbers<[1], [0], [0], [1], [0, 0, 1, 1], [], []>} : vector<8x2xf32>, vector<2x256xf32>, vector<8x256xf32> -> vector<8x256xf32>
    %134 = arith.addf %127, %133 : vector<8x256xf32>
    %c2_129 = arith.constant 2 : index
    %c0_130 = arith.constant 0 : index
    %c0_131 = arith.constant 0 : index
    %135 = vector.load %arg14[%c2_129, %c0_130, %c0_131] : memref<4x64x256xbf16, #tpu.memory_space<vmem>>, vector<1x64x256xbf16>
    %136 = vector.shape_cast %135 : vector<1x64x256xbf16> to vector<64x256xbf16>
    %cst_132 = arith.constant dense<0.000000e+00> : vector<2x256xf32>
    %137 = tpu.matmul %121, %136, %cst_132 {dimension_numbers = #tpu.dot_dimension_numbers<[1], [0], [0], [1], [0, 0, 1, 1], [], []>} : vector<2x64xbf16>, vector<64x256xbf16>, vector<2x256xf32> -> vector<2x256xf32>
    %c2_133 = arith.constant 2 : index
    %c0_134 = arith.constant 0 : index
    %c0_135 = arith.constant 0 : index
    %138 = vector.load %arg13[%c2_133, %c0_134, %c0_135] : memref<4x8x2xf32, #tpu.memory_space<vmem>>, vector<1x8x2xf32>
    %139 = vector.shape_cast %138 : vector<1x8x2xf32> to vector<8x2xf32>
    %cst_136 = arith.constant dense<0.000000e+00> : vector<8x256xf32>
    %140 = tpu.matmul %139, %137, %cst_136 {dimension_numbers = #tpu.dot_dimension_numbers<[1], [0], [0], [1], [0, 0, 1, 1], [], []>} : vector<8x2xf32>, vector<2x256xf32>, vector<8x256xf32> -> vector<8x256xf32>
    %141 = arith.addf %134, %140 : vector<8x256xf32>
    %c3_137 = arith.constant 3 : index
    %c0_138 = arith.constant 0 : index
    %c0_139 = arith.constant 0 : index
    %142 = vector.load %arg14[%c3_137, %c0_138, %c0_139] : memref<4x64x256xbf16, #tpu.memory_space<vmem>>, vector<1x64x256xbf16>
    %143 = vector.shape_cast %142 : vector<1x64x256xbf16> to vector<64x256xbf16>
    %cst_140 = arith.constant dense<0.000000e+00> : vector<2x256xf32>
    %144 = tpu.matmul %121, %143, %cst_140 {dimension_numbers = #tpu.dot_dimension_numbers<[1], [0], [0], [1], [0, 0, 1, 1], [], []>} : vector<2x64xbf16>, vector<64x256xbf16>, vector<2x256xf32> -> vector<2x256xf32>
    %c3_141 = arith.constant 3 : index
    %c0_142 = arith.constant 0 : index
    %c0_143 = arith.constant 0 : index
    %145 = vector.load %arg13[%c3_141, %c0_142, %c0_143] : memref<4x8x2xf32, #tpu.memory_space<vmem>>, vector<1x8x2xf32>
    %146 = vector.shape_cast %145 : vector<1x8x2xf32> to vector<8x2xf32>
    %cst_144 = arith.constant dense<0.000000e+00> : vector<8x256xf32>
    %147 = tpu.matmul %146, %144, %cst_144 {dimension_numbers = #tpu.dot_dimension_numbers<[1], [0], [0], [1], [0, 0, 1, 1], [], []>} : vector<8x2xf32>, vector<2x256xf32>, vector<8x256xf32> -> vector<8x256xf32>
    %148 = arith.addf %141, %147 : vector<8x256xf32>
    %c0_145 = arith.constant 0 : index
    %c0_146 = arith.constant 0 : index
    %149 = vector.load %arg15[%c0_145, %c0_146] : memref<8x256xf32, #tpu.memory_space<vmem>>, vector<8x256xf32>
    %150 = arith.addf %148, %149 : vector<8x256xf32>
    %cst_147 = arith.constant 0.000000e+00 : f32
    %151 = vector.broadcast %cst_147 : f32 to vector<8x256xf32>
    %152 = arith.maximumf %150, %151 : vector<8x256xf32>
    %153 = arith.truncf %152 : vector<8x256xf32> to vector<8x256xbf16>
    %c0_148 = arith.constant 0 : index
    %c0_149 = arith.constant 0 : index
    %c0_150 = arith.constant 0 : index
    %154 = vector.load %arg16[%c0_148, %c0_149, %c0_150] : memref<3x16x8xbf16, #tpu.memory_space<vmem>>, vector<1x16x8xbf16>
    %155 = vector.shape_cast %154 : vector<1x16x8xbf16> to vector<16x8xbf16>
    %cst_151 = arith.constant dense<0.000000e+00> : vector<16x256xf32>
    %156 = tpu.matmul %155, %153, %cst_151 {dimension_numbers = #tpu.dot_dimension_numbers<[1], [0], [0], [1], [0, 0, 1, 1], [], []>} : vector<16x8xbf16>, vector<8x256xbf16>, vector<16x256xf32> -> vector<16x256xf32>
    %157 = arith.truncf %156 : vector<16x256xf32> to vector<16x256xbf16>
    %c0_152 = arith.constant 0 : index
    %c0_153 = arith.constant 0 : index
    %c0_154 = arith.constant 0 : index
    %158 = vector.load %arg17[%c0_152, %c0_153, %c0_154] : memref<3x256x256xbf16, #tpu.memory_space<vmem>>, vector<1x256x256xbf16>
    %159 = vector.shape_cast %158 : vector<1x256x256xbf16> to vector<256x256xbf16>
    %cst_155 = arith.constant dense<0.000000e+00> : vector<16x256xf32>
    %160 = tpu.matmul %157, %159, %cst_155 {dimension_numbers = #tpu.dot_dimension_numbers<[1], [0], [0], [1], [0, 0, 1, 1], [], []>} : vector<16x256xbf16>, vector<256x256xbf16>, vector<16x256xf32> -> vector<16x256xf32>
    %c1_156 = arith.constant 1 : index
    %c0_157 = arith.constant 0 : index
    %c0_158 = arith.constant 0 : index
    %161 = vector.load %arg16[%c1_156, %c0_157, %c0_158] : memref<3x16x8xbf16, #tpu.memory_space<vmem>>, vector<1x16x8xbf16>
    %162 = vector.shape_cast %161 : vector<1x16x8xbf16> to vector<16x8xbf16>
    %cst_159 = arith.constant dense<0.000000e+00> : vector<16x256xf32>
    %163 = tpu.matmul %162, %153, %cst_159 {dimension_numbers = #tpu.dot_dimension_numbers<[1], [0], [0], [1], [0, 0, 1, 1], [], []>} : vector<16x8xbf16>, vector<8x256xbf16>, vector<16x256xf32> -> vector<16x256xf32>
    %164 = arith.truncf %163 : vector<16x256xf32> to vector<16x256xbf16>
    %c1_160 = arith.constant 1 : index
    %c0_161 = arith.constant 0 : index
    %c0_162 = arith.constant 0 : index
    %165 = vector.load %arg17[%c1_160, %c0_161, %c0_162] : memref<3x256x256xbf16, #tpu.memory_space<vmem>>, vector<1x256x256xbf16>
    %166 = vector.shape_cast %165 : vector<1x256x256xbf16> to vector<256x256xbf16>
    %cst_163 = arith.constant dense<0.000000e+00> : vector<16x256xf32>
    %167 = tpu.matmul %164, %166, %cst_163 {dimension_numbers = #tpu.dot_dimension_numbers<[1], [0], [0], [1], [0, 0, 1, 1], [], []>} : vector<16x256xbf16>, vector<256x256xbf16>, vector<16x256xf32> -> vector<16x256xf32>
    %168 = arith.addf %160, %167 : vector<16x256xf32>
    %c2_164 = arith.constant 2 : index
    %c0_165 = arith.constant 0 : index
    %c0_166 = arith.constant 0 : index
    %169 = vector.load %arg16[%c2_164, %c0_165, %c0_166] : memref<3x16x8xbf16, #tpu.memory_space<vmem>>, vector<1x16x8xbf16>
    %170 = vector.shape_cast %169 : vector<1x16x8xbf16> to vector<16x8xbf16>
    %cst_167 = arith.constant dense<0.000000e+00> : vector<16x256xf32>
    %171 = tpu.matmul %170, %153, %cst_167 {dimension_numbers = #tpu.dot_dimension_numbers<[1], [0], [0], [1], [0, 0, 1, 1], [], []>} : vector<16x8xbf16>, vector<8x256xbf16>, vector<16x256xf32> -> vector<16x256xf32>
    %172 = arith.truncf %171 : vector<16x256xf32> to vector<16x256xbf16>
    %c2_168 = arith.constant 2 : index
    %c0_169 = arith.constant 0 : index
    %c0_170 = arith.constant 0 : index
    %173 = vector.load %arg17[%c2_168, %c0_169, %c0_170] : memref<3x256x256xbf16, #tpu.memory_space<vmem>>, vector<1x256x256xbf16>
    %174 = vector.shape_cast %173 : vector<1x256x256xbf16> to vector<256x256xbf16>
    %cst_171 = arith.constant dense<0.000000e+00> : vector<16x256xf32>
    %175 = tpu.matmul %172, %174, %cst_171 {dimension_numbers = #tpu.dot_dimension_numbers<[1], [0], [0], [1], [0, 0, 1, 1], [], []>} : vector<16x256xbf16>, vector<256x256xbf16>, vector<16x256xf32> -> vector<16x256xf32>
    %176 = arith.addf %168, %175 : vector<16x256xf32>
    %c0_172 = arith.constant 0 : index
    %c0_173 = arith.constant 0 : index
    %177 = vector.load %arg18[%c0_172, %c0_173] : memref<1x256xf32, #tpu.memory_space<vmem>>, vector<1x256xf32>
    %178 = vector.broadcast %177 : vector<1x256xf32> to vector<16x256xf32>
    %179 = arith.addf %176, %178 : vector<16x256xf32>
    %cst_174 = arith.constant 0.000000e+00 : f32
    %180 = vector.broadcast %cst_174 : f32 to vector<16x256xf32>
    %181 = arith.maximumf %179, %180 : vector<16x256xf32>
    %182 = arith.truncf %181 : vector<16x256xf32> to vector<16x256xbf16>
    %c0_175 = arith.constant 0 : index
    %c0_176 = arith.constant 0 : index
    %c0_177 = arith.constant 0 : index
    %183 = vector.load %arg19[%c0_175, %c0_176, %c0_177] : memref<3x32x16xbf16, #tpu.memory_space<vmem>>, vector<1x32x16xbf16>
    %184 = vector.shape_cast %183 : vector<1x32x16xbf16> to vector<32x16xbf16>
    %cst_178 = arith.constant dense<0.000000e+00> : vector<32x256xf32>
    %185 = tpu.matmul %184, %182, %cst_178 {dimension_numbers = #tpu.dot_dimension_numbers<[1], [0], [0], [1], [0, 0, 1, 1], [], []>} : vector<32x16xbf16>, vector<16x256xbf16>, vector<32x256xf32> -> vector<32x256xf32>
    %186 = arith.truncf %185 : vector<32x256xf32> to vector<32x256xbf16>
    %c0_179 = arith.constant 0 : index
    %c0_180 = arith.constant 0 : index
    %c0_181 = arith.constant 0 : index
    %187 = vector.load %arg20[%c0_179, %c0_180, %c0_181] : memref<3x256x256xbf16, #tpu.memory_space<vmem>>, vector<1x256x256xbf16>
    %188 = vector.shape_cast %187 : vector<1x256x256xbf16> to vector<256x256xbf16>
    %cst_182 = arith.constant dense<0.000000e+00> : vector<32x256xf32>
    %189 = tpu.matmul %186, %188, %cst_182 {dimension_numbers = #tpu.dot_dimension_numbers<[1], [0], [0], [1], [0, 0, 1, 1], [], []>} : vector<32x256xbf16>, vector<256x256xbf16>, vector<32x256xf32> -> vector<32x256xf32>
    %c1_183 = arith.constant 1 : index
    %c0_184 = arith.constant 0 : index
    %c0_185 = arith.constant 0 : index
    %190 = vector.load %arg19[%c1_183, %c0_184, %c0_185] : memref<3x32x16xbf16, #tpu.memory_space<vmem>>, vector<1x32x16xbf16>
    %191 = vector.shape_cast %190 : vector<1x32x16xbf16> to vector<32x16xbf16>
    %cst_186 = arith.constant dense<0.000000e+00> : vector<32x256xf32>
    %192 = tpu.matmul %191, %182, %cst_186 {dimension_numbers = #tpu.dot_dimension_numbers<[1], [0], [0], [1], [0, 0, 1, 1], [], []>} : vector<32x16xbf16>, vector<16x256xbf16>, vector<32x256xf32> -> vector<32x256xf32>
    %193 = arith.truncf %192 : vector<32x256xf32> to vector<32x256xbf16>
    %c1_187 = arith.constant 1 : index
    %c0_188 = arith.constant 0 : index
    %c0_189 = arith.constant 0 : index
    %194 = vector.load %arg20[%c1_187, %c0_188, %c0_189] : memref<3x256x256xbf16, #tpu.memory_space<vmem>>, vector<1x256x256xbf16>
    %195 = vector.shape_cast %194 : vector<1x256x256xbf16> to vector<256x256xbf16>
    %cst_190 = arith.constant dense<0.000000e+00> : vector<32x256xf32>
    %196 = tpu.matmul %193, %195, %cst_190 {dimension_numbers = #tpu.dot_dimension_numbers<[1], [0], [0], [1], [0, 0, 1, 1], [], []>} : vector<32x256xbf16>, vector<256x256xbf16>, vector<32x256xf32> -> vector<32x256xf32>
    %197 = arith.addf %189, %196 : vector<32x256xf32>
    %c2_191 = arith.constant 2 : index
    %c0_192 = arith.constant 0 : index
    %c0_193 = arith.constant 0 : index
    %198 = vector.load %arg19[%c2_191, %c0_192, %c0_193] : memref<3x32x16xbf16, #tpu.memory_space<vmem>>, vector<1x32x16xbf16>
    %199 = vector.shape_cast %198 : vector<1x32x16xbf16> to vector<32x16xbf16>
    %cst_194 = arith.constant dense<0.000000e+00> : vector<32x256xf32>
    %200 = tpu.matmul %199, %182, %cst_194 {dimension_numbers = #tpu.dot_dimension_numbers<[1], [0], [0], [1], [0, 0, 1, 1], [], []>} : vector<32x16xbf16>, vector<16x256xbf16>, vector<32x256xf32> -> vector<32x256xf32>
    %201 = arith.truncf %200 : vector<32x256xf32> to vector<32x256xbf16>
    %c2_195 = arith.constant 2 : index
    %c0_196 = arith.constant 0 : index
    %c0_197 = arith.constant 0 : index
    %202 = vector.load %arg20[%c2_195, %c0_196, %c0_197] : memref<3x256x256xbf16, #tpu.memory_space<vmem>>, vector<1x256x256xbf16>
    %203 = vector.shape_cast %202 : vector<1x256x256xbf16> to vector<256x256xbf16>
    %cst_198 = arith.constant dense<0.000000e+00> : vector<32x256xf32>
    %204 = tpu.matmul %201, %203, %cst_198 {dimension_numbers = #tpu.dot_dimension_numbers<[1], [0], [0], [1], [0, 0, 1, 1], [], []>} : vector<32x256xbf16>, vector<256x256xbf16>, vector<32x256xf32> -> vector<32x256xf32>
    %205 = arith.addf %197, %204 : vector<32x256xf32>
    %c0_199 = arith.constant 0 : index
    %c0_200 = arith.constant 0 : index
    %206 = vector.load %arg21[%c0_199, %c0_200] : memref<1x256xf32, #tpu.memory_space<vmem>>, vector<1x256xf32>
    %207 = vector.broadcast %206 : vector<1x256xf32> to vector<32x256xf32>
    %208 = arith.addf %205, %207 : vector<32x256xf32>
    %cst_201 = arith.constant 0.000000e+00 : f32
    %209 = vector.broadcast %cst_201 : f32 to vector<32x256xf32>
    %210 = arith.maximumf %208, %209 : vector<32x256xf32>
    %211 = arith.truncf %210 : vector<32x256xf32> to vector<32x256xbf16>
    %c0_202 = arith.constant 0 : index
    %c0_203 = arith.constant 0 : index
    %c0_204 = arith.constant 0 : index
    %212 = vector.load %arg22[%c0_202, %c0_203, %c0_204] : memref<3x64x32xbf16, #tpu.memory_space<vmem>>, vector<1x64x32xbf16>
    %213 = vector.shape_cast %212 : vector<1x64x32xbf16> to vector<64x32xbf16>
    %cst_205 = arith.constant dense<0.000000e+00> : vector<64x256xf32>
    %214 = tpu.matmul %213, %211, %cst_205 {dimension_numbers = #tpu.dot_dimension_numbers<[1], [0], [0], [1], [0, 0, 1, 1], [], []>} : vector<64x32xbf16>, vector<32x256xbf16>, vector<64x256xf32> -> vector<64x256xf32>
    %215 = arith.truncf %214 : vector<64x256xf32> to vector<64x256xbf16>
    %c0_206 = arith.constant 0 : index
    %c0_207 = arith.constant 0 : index
    %c0_208 = arith.constant 0 : index
    %216 = vector.load %arg23[%c0_206, %c0_207, %c0_208] : memref<3x256x96xbf16, #tpu.memory_space<vmem>>, vector<1x256x96xbf16>
    %217 = vector.shape_cast %216 : vector<1x256x96xbf16> to vector<256x96xbf16>
    %cst_209 = arith.constant dense<0.000000e+00> : vector<64x96xf32>
    %218 = tpu.matmul %215, %217, %cst_209 {dimension_numbers = #tpu.dot_dimension_numbers<[1], [0], [0], [1], [0, 0, 1, 1], [], []>} : vector<64x256xbf16>, vector<256x96xbf16>, vector<64x96xf32> -> vector<64x96xf32>
    %c1_210 = arith.constant 1 : index
    %c0_211 = arith.constant 0 : index
    %c0_212 = arith.constant 0 : index
    %219 = vector.load %arg22[%c1_210, %c0_211, %c0_212] : memref<3x64x32xbf16, #tpu.memory_space<vmem>>, vector<1x64x32xbf16>
    %220 = vector.shape_cast %219 : vector<1x64x32xbf16> to vector<64x32xbf16>
    %cst_213 = arith.constant dense<0.000000e+00> : vector<64x256xf32>
    %221 = tpu.matmul %220, %211, %cst_213 {dimension_numbers = #tpu.dot_dimension_numbers<[1], [0], [0], [1], [0, 0, 1, 1], [], []>} : vector<64x32xbf16>, vector<32x256xbf16>, vector<64x256xf32> -> vector<64x256xf32>
    %222 = arith.truncf %221 : vector<64x256xf32> to vector<64x256xbf16>
    %c1_214 = arith.constant 1 : index
    %c0_215 = arith.constant 0 : index
    %c0_216 = arith.constant 0 : index
    %223 = vector.load %arg23[%c1_214, %c0_215, %c0_216] : memref<3x256x96xbf16, #tpu.memory_space<vmem>>, vector<1x256x96xbf16>
    %224 = vector.shape_cast %223 : vector<1x256x96xbf16> to vector<256x96xbf16>
    %cst_217 = arith.constant dense<0.000000e+00> : vector<64x96xf32>
    %225 = tpu.matmul %222, %224, %cst_217 {dimension_numbers = #tpu.dot_dimension_numbers<[1], [0], [0], [1], [0, 0, 1, 1], [], []>} : vector<64x256xbf16>, vector<256x96xbf16>, vector<64x96xf32> -> vector<64x96xf32>
    %226 = arith.addf %218, %225 : vector<64x96xf32>
    %c2_218 = arith.constant 2 : index
    %c0_219 = arith.constant 0 : index
    %c0_220 = arith.constant 0 : index
    %227 = vector.load %arg22[%c2_218, %c0_219, %c0_220] : memref<3x64x32xbf16, #tpu.memory_space<vmem>>, vector<1x64x32xbf16>
    %228 = vector.shape_cast %227 : vector<1x64x32xbf16> to vector<64x32xbf16>
    %cst_221 = arith.constant dense<0.000000e+00> : vector<64x256xf32>
    %229 = tpu.matmul %228, %211, %cst_221 {dimension_numbers = #tpu.dot_dimension_numbers<[1], [0], [0], [1], [0, 0, 1, 1], [], []>} : vector<64x32xbf16>, vector<32x256xbf16>, vector<64x256xf32> -> vector<64x256xf32>
    %230 = arith.truncf %229 : vector<64x256xf32> to vector<64x256xbf16>
    %c2_222 = arith.constant 2 : index
    %c0_223 = arith.constant 0 : index
    %c0_224 = arith.constant 0 : index
    %231 = vector.load %arg23[%c2_222, %c0_223, %c0_224] : memref<3x256x96xbf16, #tpu.memory_space<vmem>>, vector<1x256x96xbf16>
    %232 = vector.shape_cast %231 : vector<1x256x96xbf16> to vector<256x96xbf16>
    %cst_225 = arith.constant dense<0.000000e+00> : vector<64x96xf32>
    %233 = tpu.matmul %230, %232, %cst_225 {dimension_numbers = #tpu.dot_dimension_numbers<[1], [0], [0], [1], [0, 0, 1, 1], [], []>} : vector<64x256xbf16>, vector<256x96xbf16>, vector<64x96xf32> -> vector<64x96xf32>
    %234 = arith.addf %226, %233 : vector<64x96xf32>
    %c0_226 = arith.constant 0 : index
    %c0_227 = arith.constant 0 : index
    %235 = vector.load %arg24[%c0_226, %c0_227] : memref<1x96xf32, #tpu.memory_space<vmem>>, vector<1x96xf32>
    %236 = vector.broadcast %235 : vector<1x96xf32> to vector<64x96xf32>
    %237 = arith.addf %234, %236 : vector<64x96xf32>
    %238 = arith.negf %237 : vector<64x96xf32>
    %239 = math.exp %238 : vector<64x96xf32>
    %cst_228 = arith.constant 1.000000e+00 : f32
    %240 = vector.broadcast %cst_228 : f32 to vector<64x96xf32>
    %241 = arith.addf %240, %239 : vector<64x96xf32>
    %242 = arith.divf %240, %241 : vector<64x96xf32>
    %c0_229 = arith.constant 0 : index
    %c0_230 = arith.constant 0 : index
    %243 = vector.load %arg26[%c0_229, %c0_230] : memref<64x96xf32, #tpu.memory_space<vmem>>, vector<64x96xf32>
    tpu.vector_store %arg26[%c0_229, %c0_230], %242 {strides = array<i32>} : memref<64x96xf32, #tpu.memory_space<vmem>>, vector<64x96xf32>,
    return
  }
}

</mosaic_0001>

<bundles_post_ra>
// kernel: tile.52
= control target key start
LH: loop header
LB: loop body
LE: loop exit
PB: predicated region body
PF: predicated region fallthrough
CT: control target
= control target key end

     0   :  { %s76_s0 = inlined_call_operand.vmem [shape: f32[2,4,256], index: 0, kind: input, shape index: {}]   ;;  %s77_s1 = inlined_call_operand.vmem [shape: f32[8,256], index: 1, kind: output, shape index: {}]  }
   0x1   :  { %v36_v0 = vld [vmem:[%s76_s0 + $0xc] sm:$0xf]  ;;  %v37_v1 = vld [vmem:[%s76_s0 + $0x8] sm:$0xf]  ;;  %v38_v2 = vld [vmem:[%s76_s0 + $0x4] sm:$0xf] }
   0x2   :  { %8 = vst [vmem:[#allocation0 + $0x18] sm:$0xf] %v36_v0  ;;  %13 = vst [vmem:[#allocation0 + $0x10] sm:$0xf] %v37_v1  ;;  %v18_v3 = vld [vmem:[%s76_s0] sm:$0xf] }
   0x3   :  { %17 = vst [vmem:[#allocation0 + $0x8] sm:$0xf] %v38_v2  ;;  %19 = vst [vmem:[#allocation0] sm:$0xf] %v18_v3 }
   0x9   :  { %v27_v5 = vld [vmem:[#allocation0 + $0x10] sm:$0xf]   ;;  %v31_v6 = vld [vmem:[#allocation0 + $0x18] sm:$0xf]  }
   0xa   :  { %v23_v4 = vld [vmem:[#allocation0 + $0x8] sm:$0xf]   ;;  %v20_v7 = vld [vmem:[#allocation0] sm:$0xf]   ;;  %40 = vst [vmem:[%s77_s1 + $0x4] sm:$0xf] %v27_v5  }
   0xb   :  { %39 = vst [vmem:[%s77_s1 + $0x8] sm:$0xf] %v23_v4   ;;  %41 = vst [vmem:[%s77_s1 + $0xc] sm:$0xf] %v31_v6  }
   0xc   :  { %21 = vst [vmem:[%s77_s1] sm:$0xf] %v20_v7  }

// kernel: tile.66
= control target key start
LH: loop header
LB: loop body
LE: loop exit
PB: predicated region body
PF: predicated region fallthrough
CT: control target
= control target key end

     0   :  { %s40_s0 = inlined_call_operand.vmem [shape: f32[3], index: 0, kind: input, shape index: {}]   ;;  %s41_s1 = inlined_call_operand.vmem [shape: f32[32,3], index: 1, kind: output, shape index: {}]  }
   0x1   :  { %v4_v0 = vld [vmem:[%s40_s0] ss:$0 sm:$0xff] }
   0x2   :  { %5 = vst [vmem:[%s41_s1] sm:$0xff] %v4_v0  ;;  %12 = vst [vmem:[%s41_s1 + $0x8] sm:$0xff] %v4_v0 }
   0x3   :  { %13 = vst [vmem:[%s41_s1 + $0x10] sm:$0xff] %v4_v0  ;;  %14 = vst [vmem:[%s41_s1 + $0x18] sm:$0xff] %v4_v0 }

// kernel: tile.67
= control target key start
LH: loop header
LB: loop body
LE: loop exit
PB: predicated region body
PF: predicated region fallthrough
CT: control target
= control target key end

     0   :  { %s259_s10 = smov 93   ;;  %s260_s11 = smov 87   ;;  %vm3_vm0 = vcmask 23552   ;;  %vm9_vm1 = vcmask 786152   ;;  %vm15_vm2 = vcmask 761552   ;;  %vm21_vm3 = vcmask 736952   ;;  %s399_s0 = inlined_call_operand.vmem [shape: f32[32,3], index: 0, kind: input, shape index: {}]   ;;  %s400_s1 = inlined_call_operand.vmem [shape: f32[1,96], index: 1, kind: output, shape index: {}]  }
   0x1   :  { %v197_v0 = vld [vmem:[%s399_s0 + $0x1f] sm:$0x1]   ;;  %v199_v1 = vld [vmem:[%s399_s0 + $0x1d] sm:$0x1]   ;;  %v198_v2 = vld [vmem:[%s399_s0 + $0x1e] sm:$0x1]  }
   0x2   :  { %7 = vrot.lane.b32.xlu0 %v197_v0, %s259_s10  ;;  %19 = vrot.lane.b32.xlu1 %v199_v1, %s260_s11  ;;  %v200_v3 = vld [vmem:[%s399_s0 + $0x1c] sm:$0x1]   ;;  %s261_s16 = smov 90   ;;  %s262_s17 = smov 84   ;;  %v201_v4 = vld [vmem:[%s399_s0 + $0x1b] sm:$0x1]  }
   0x3   :  { %v202_v5 = vld [vmem:[%s399_s0 + $0x1a] sm:$0x1]   ;;  %s263_s22 = smov 81   ;;  %s264_s23 = smov 78   ;;  %v203_v6 = vld [vmem:[%s399_s0 + $0x19] sm:$0x1]  }
   0x4   :  { %v204_v7 = vld [vmem:[%s399_s0 + $0x18] sm:$0x1]   ;;  %s265_s28 = smov 75   ;;  %s266_s29 = smov 72   ;;  %v205_v8 = vld [vmem:[%s399_s0 + $0x17] sm:$0x1]  }
   0x5   :  { %v206_v9 = vld [vmem:[%s399_s0 + $0x16] sm:$0x1]   ;;  %v2_v10 = vld [vmem:[%s399_s0] sm:$0x1]   ;;  %s267_s7 = smov 69   ;;  %s268_s8 = smov 66  }
   0x6   :  { %13 = vrot.lane.b32.xlu0 %v198_v2, %s261_s16  ;;  %25 = vrot.lane.b32.xlu1 %v200_v3, %s262_s17  ;;  %4 = vst.msk [vmem:[#allocation0] sm:$0x1] %vm3_vm0, %v2_v10   ;;  %v207_v11 = vld [vmem:[%s399_s0 + $0x15] sm:$0x1]   ;;  %v208_v12 = vld [vmem:[%s399_s0 + $0x14] sm:$0x1]  }
   0x7   :  { %s269_s13 = smov 63   ;;  %s270_s14 = smov 60   ;;  %v209_v13 = vld [vmem:[%s399_s0 + $0x13] sm:$0x1]   ;;  %v210_v14 = vld [vmem:[%s399_s0 + $0x12] sm:$0x1]  }
   0x8   :  { %s271_s19 = smov 57   ;;  %s272_s20 = smov 54   ;;  %v211_v15 = vld [vmem:[%s399_s0 + $0x11] sm:$0x1]   ;;  %v212_v16 = vld [vmem:[%s399_s0 + $0x10] sm:$0x1]  }
   0x9   :  { %s273_s25 = smov 51   ;;  %s274_s26 = smov 48   ;;  %v213_v17 = vld [vmem:[%s399_s0 + $0xf] sm:$0x1]   ;;  %v214_v18 = vld [vmem:[%s399_s0 + $0xe] sm:$0x1]  }
   0xa   :  { %31 = vrot.lane.b32.xlu0 %v201_v4, %s263_s22  ;;  %37 = vrot.lane.b32.xlu1 %v202_v5, %s264_s23  ;;  %s275_s2 = smov 45   ;;  %s276_s3 = smov 42   ;;  %v215_v19 = vld [vmem:[%s399_s0 + $0xd] sm:$0x1]   ;;  %v216_v20 = vld [vmem:[%s399_s0 + $0xc] sm:$0x1]  }
   0xb   :  { %s278_s9 = smov 36   ;;  %v217_v21 = vld [vmem:[%s399_s0 + $0xb] sm:$0x1]   ;;  %v218_v22 = vld [vmem:[%s399_s0 + $0xa] sm:$0x1]   ;;  %s280_s15 = smov 30  }
   0xc   :  { %v219_v23 = vld [vmem:[%s399_s0 + $0x9] sm:$0x1]   ;;  %v220_v24 = vld [vmem:[%s399_s0 + $0x8] sm:$0x1]   ;;  %s282_s21 = smov 24   ;;  %s284_s27 = smov 18  }
   0xd   :  { %v221_v25 = vld [vmem:[%s399_s0 + $0x7] sm:$0x1]   ;;  %v222_v26 = vld [vmem:[%s399_s0 + $0x6] sm:$0x1]   ;;  %v223_v27 = vld [vmem:[%s399_s0 + $0x5] sm:$0x1]  }
   0xe   :  { %43 = vrot.lane.b32.xlu0 %v203_v6, %s265_s28  ;;  %49 = vrot.lane.b32.xlu1 %v204_v7, %s266_s29  ;;  %v224_v28 = vld [vmem:[%s399_s0 + $0x4] sm:$0x1]   ;;  %s286_s4 = smov 12   ;;  %v225_v29 = vld [vmem:[%s399_s0 + $0x3] sm:$0x1]   ;;  %s288_s10 = smov 6  }
   0xf   :  { %v226_v30 = vld [vmem:[%s399_s0 + $0x2] sm:$0x1]   ;;  %v227_v31 = vld [vmem:[%s399_s0 + $0x1] sm:$0x1]   ;;  %s289_s0 = smov 3   ;;  %vm27_vm4 = vcmask 712352  }
  0x10   :  { %vm33_vm5 = vcmask 687752   ;;  %vm39_vm6 = vcmask 663152   ;;  %vm45_vm7 = vcmask 638552   ;;  %vm51_vm8 = vcmask 613952  }
  0x11   :  { %vm57_vm9 = vcmask 589352   ;;  %vm63_vm10 = vcmask 564752   ;;  %vm69_vm11 = vcmask 540152   ;;  %vm75_vm12 = vcmask 515552  }
  0x12   :  { %55 = vrot.lane.b32.xlu0 %v205_v8, %s267_s7  ;;  %61 = vrot.lane.b32.xlu1 %v206_v9, %s268_s8  ;;  %s277_s8 = smov 39   ;;  %vm81_vm13 = vcmask 490952   ;;  %vm87_vm14 = vcmask 466352   ;;  %vm93_vm15 = vcmask 441752   ;;  %vm99_vm0 = vcmask 417152  }
  0x16   :  { %67 = vrot.lane.b32.xlu0 %v207_v11, %s269_s13  ;;  %73 = vrot.lane.b32.xlu1 %v208_v12, %s270_s14  ;;  %s279_s14 = smov 33  }
  0x1a   :  { %79 = vrot.lane.b32.xlu0 %v209_v13, %s271_s19  ;;  %85 = vrot.lane.b32.xlu1 %v210_v14, %s272_s20  ;;  %s281_s20 = smov 27  }
  0x1e   :  { %91 = vrot.lane.b32.xlu0 %v211_v15, %s273_s25  ;;  %97 = vrot.lane.b32.xlu1 %v212_v16, %s274_s26  ;;  %s283_s26 = smov 21  }
  0x22   :  { %103 = vrot.lane.b32.xlu0 %v213_v17, %s275_s2  ;;  %109 = vrot.lane.b32.xlu1 %v214_v18, %s276_s3  ;;  %s285_s3 = smov 15  }
  0x26   :  { %115 = vrot.lane.b32.xlu0 %v215_v19, %s277_s8  ;;  %121 = vrot.lane.b32.xlu1 %v216_v20, %s278_s9  ;;  %s287_s9 = smov 9  }
  0x2a   :  { %127 = vrot.lane.b32.xlu0 %v217_v21, %s279_s14  ;;  %133 = vrot.lane.b32.xlu1 %v218_v22, %s280_s15 }
  0x2e   :  { %139 = vrot.lane.b32.xlu0 %v219_v23, %s281_s20  ;;  %145 = vrot.lane.b32.xlu1 %v220_v24, %s282_s21 }
  0x32   :  { %151 = vrot.lane.b32.xlu0 %v221_v25, %s283_s26  ;;  %157 = vrot.lane.b32.xlu1 %v222_v26, %s284_s27 }
  0x36   :  { %163 = vrot.lane.b32.xlu0 %v223_v27, %s285_s3  ;;  %169 = vrot.lane.b32.xlu1 %v224_v28, %s286_s4 }
  0x3a   :  { %175 = vrot.lane.b32.xlu0 %v225_v29, %s287_s9  ;;  %181 = vrot.lane.b32.xlu1 %v226_v30, %s288_s10 }
  0x3e   :  { %187 = vrot.lane.b32.xlu0 %v227_v31, %s289_s0 }
  0x74   :  { %v8_v32 = vpop.permute.xlu0 %7   ;;  %v20_v33 = vpop.permute.xlu1 %19  }
  0x75   :  { %10 = vst.msk [vmem:[#allocation0] sm:$0x1] %vm9_vm1, %v8_v32   ;;  %vm105_vm1 = vcmask 392552  }
  0x78   :  { %v14_v34 = vpop.permute.xlu0 %13   ;;  %v26_v35 = vpop.permute.xlu1 %25  }
  0x79   :  { %16 = vst.msk [vmem:[#allocation0] sm:$0x1] %vm15_vm2, %v14_v34   ;;  %vm111_vm2 = vcmask 367952  }
  0x7a   :  { %22 = vst.msk [vmem:[#allocation0] sm:$0x1] %vm21_vm3, %v20_v33   ;;  %vm117_vm3 = vcmask 343352  }
  0x7b   :  { %28 = vst.msk [vmem:[#allocation0] sm:$0x1] %vm27_vm4, %v26_v35   ;;  %vm123_vm4 = vcmask 318752  }
  0x7c   :  { %v32_v36 = vpop.permute.xlu0 %31   ;;  %v38_v37 = vpop.permute.xlu1 %37  }
  0x7d   :  { %34 = vst.msk [vmem:[#allocation0] sm:$0x1] %vm33_vm5, %v32_v36   ;;  %vm129_vm5 = vcmask 294152  }
  0x7e   :  { %40 = vst.msk [vmem:[#allocation0] sm:$0x1] %vm39_vm6, %v38_v37   ;;  %vm135_vm6 = vcmask 269552  }
  0x80   :  { %v44_v38 = vpop.permute.xlu0 %43   ;;  %v50_v39 = vpop.permute.xlu1 %49  }
  0x81   :  { %46 = vst.msk [vmem:[#allocation0] sm:$0x1] %vm45_vm7, %v44_v38   ;;  %vm141_vm7 = vcmask 244952  }
  0x82   :  { %52 = vst.msk [vmem:[#allocation0] sm:$0x1] %vm51_vm8, %v50_v39   ;;  %vm147_vm8 = vcmask 220352  }
  0x84   :  { %v56_v40 = vpop.permute.xlu0 %55   ;;  %v62_v41 = vpop.permute.xlu1 %61  }
  0x85   :  { %58 = vst.msk [vmem:[#allocation0] sm:$0x1] %vm57_vm9, %v56_v40   ;;  %vm153_vm9 = vcmask 195752  }
  0x86   :  { %64 = vst.msk [vmem:[#allocation0] sm:$0x1] %vm63_vm10, %v62_v41   ;;  %vm159_vm10 = vcmask 171152  }
  0x88   :  { %v68_v42 = vpop.permute.xlu0 %67   ;;  %v74_v43 = vpop.permute.xlu1 %73  }
  0x89   :  { %70 = vst.msk [vmem:[#allocation0] sm:$0x1] %vm69_vm11, %v68_v42   ;;  %vm165_vm11 = vcmask 146552  }
  0x8a   :  { %76 = vst.msk [vmem:[#allocation0] sm:$0x1] %vm75_vm12, %v74_v43   ;;  %vm171_vm12 = vcmask 121952  }
  0x8c   :  { %v80_v44 = vpop.permute.xlu0 %79   ;;  %v86_v45 = vpop.permute.xlu1 %85  }
  0x8d   :  { %82 = vst.msk [vmem:[#allocation0] sm:$0x1] %vm81_vm13, %v80_v44   ;;  %vm177_vm13 = vcmask 97352  }
  0x8e   :  { %88 = vst.msk [vmem:[#allocation0] sm:$0x1] %vm87_vm14, %v86_v45   ;;  %vm183_vm14 = vcmask 72752  }
  0x90   :  { %v92_v46 = vpop.permute.xlu0 %91   ;;  %v98_v47 = vpop.permute.xlu1 %97  }
  0x91   :  { %94 = vst.msk [vmem:[#allocation0] sm:$0x1] %vm93_vm15, %v92_v46   ;;  %vm189_vm15 = vcmask 48152  }
  0x92   :  { %100 = vst.msk [vmem:[#allocation0] sm:$0x1] %vm99_vm0, %v98_v47  }
  0x94   :  { %v104_v48 = vpop.permute.xlu0 %103   ;;  %v110_v49 = vpop.permute.xlu1 %109  }
  0x95   :  { %106 = vst.msk [vmem:[#allocation0] sm:$0x1] %vm105_vm1, %v104_v48  }
  0x96   :  { %112 = vst.msk [vmem:[#allocation0] sm:$0x1] %vm111_vm2, %v110_v49  }
  0x98   :  { %v116_v50 = vpop.permute.xlu0 %115   ;;  %v122_v51 = vpop.permute.xlu1 %121  }
  0x99   :  { %118 = vst.msk [vmem:[#allocation0] sm:$0x1] %vm117_vm3, %v116_v50  }
  0x9a   :  { %124 = vst.msk [vmem:[#allocation0] sm:$0x1] %vm123_vm4, %v122_v51  }
  0x9c   :  { %v128_v52 = vpop.permute.xlu0 %127   ;;  %v134_v53 = vpop.permute.xlu1 %133  }
  0x9d   :  { %130 = vst.msk [vmem:[#allocation0] sm:$0x1] %vm129_vm5, %v128_v52  }
  0x9e   :  { %136 = vst.msk [vmem:[#allocation0] sm:$0x1] %vm135_vm6, %v134_v53  }
  0xa0   :  { %v140_v54 = vpop.permute.xlu0 %139   ;;  %v146_v55 = vpop.permute.xlu1 %145  }
  0xa1   :  { %142 = vst.msk [vmem:[#allocation0] sm:$0x1] %vm141_vm7, %v140_v54  }
  0xa2   :  { %148 = vst.msk [vmem:[#allocation0] sm:$0x1] %vm147_vm8, %v146_v55  }
  0xa4   :  { %v152_v56 = vpop.permute.xlu0 %151   ;;  %v158_v57 = vpop.permute.xlu1 %157  }
  0xa5   :  { %154 = vst.msk [vmem:[#allocation0] sm:$0x1] %vm153_vm9, %v152_v56  }
  0xa6   :  { %160 = vst.msk [vmem:[#allocation0] sm:$0x1] %vm159_vm10, %v158_v57  }
  0xa8   :  { %v164_v58 = vpop.permute.xlu0 %163   ;;  %v170_v59 = vpop.permute.xlu1 %169  }
  0xa9   :  { %166 = vst.msk [vmem:[#allocation0] sm:$0x1] %vm165_vm11, %v164_v58  }
  0xaa   :  { %172 = vst.msk [vmem:[#allocation0] sm:$0x1] %vm171_vm12, %v170_v59  }
  0xac   :  { %v176_v60 = vpop.permute.xlu0 %175   ;;  %v182_v61 = vpop.permute.xlu1 %181  }
  0xad   :  { %178 = vst.msk [vmem:[#allocation0] sm:$0x1] %vm177_vm13, %v176_v60  }
  0xae   :  { %184 = vst.msk [vmem:[#allocation0] sm:$0x1] %vm183_vm14, %v182_v61  }
  0xb0   :  { %v188_v62 = vpop.permute.xlu0 %187  }
  0xb1   :  { %190 = vst.msk [vmem:[#allocation0] sm:$0x1] %vm189_vm15, %v188_v62  }
  0xb8   :  { %v194_v63 = vld [vmem:[#allocation0] sm:$0x1] }
  0xb9   :  { %196 = vst [vmem:[%s400_s1] sm:$0x1] %v194_v63 }

// kernel: tile.37
= control target key start
LH: loop header
LB: loop body
LE: loop exit
PB: predicated region body
PF: predicated region fallthrough
CT: control target
= control target key end

     0   :  { %s28_s0 = inlined_call_operand.vmem [shape: f32[16], index: 0, kind: input, shape index: {}]   ;;  %s29_s1 = inlined_call_operand.vmem [shape: f32[16,16], index: 1, kind: output, shape index: {}]  }
   0x1   :  { %v4_v0 = vld [vmem:[%s28_s0] ss:$0 sm:$0xff] }
   0x2   :  { %5 = vst [vmem:[%s29_s1] sm:$0xff] %v4_v0  ;;  %8 = vst [vmem:[%s29_s1 + $0x8] sm:$0xff] %v4_v0 }

// kernel: tile.38
= control target key start
LH: loop header
LB: loop body
LE: loop exit
PB: predicated region body
PF: predicated region fallthrough
CT: control target
= control target key end

     0   :  { %s7_s6 = smov 3  ;;  %s21_s9 = smov 3  ;;  %vm4_vm0 = vcmask 130048   ;;  %vm11_vm1 = vcmask 1048448   ;;  %vm18_vm2 = vcmask 917248   ;;  %vm25_vm3 = vcmask 786048   ;;  %s128_s0 = inlined_call_operand.vmem [shape: f32[16,16], index: 0, kind: input, shape index: {}]   ;;  %s129_s1 = inlined_call_operand.vmem [shape: f32[1,256], index: 1, kind: output, shape index: {}]  }
   0x1   :  { %v66_v0 = vld [vmem:[%s128_s0 + $0x7] ss:$8 sm:%s7_s6]   ;;  %s81_s10 = smov 112   ;;  %v68_v1 = vld [vmem:[%s128_s0 + $0x5] ss:$8 sm:%s21_s9]   ;;  %s14_s13 = smov 3 }
   0x2   :  { %9 = vrot.lane.b32.xlu0 %v66_v0, %s81_s10  ;;  %s82_s14 = smov 80   ;;  %v67_v2 = vld [vmem:[%s128_s0 + $0x6] ss:$8 sm:%s14_s13]   ;;  %s28_s17 = smov 3  ;;  %vm32_vm4 = vcmask 654848   ;;  %vm39_vm5 = vcmask 523648  }
   0x3   :  { %23 = vrot.lane.b32.xlu1 %v68_v1, %s82_s14  ;;  %v69_v3 = vld [vmem:[%s128_s0 + $0x4] ss:$8 sm:%s28_s17]   ;;  %s35_s20 = smov 3  ;;  %s42_s21 = smov 3  ;;  %vm46_vm6 = vcmask 392448   ;;  %vm53_vm7 = vcmask 261248  }
   0x4   :  { %s83_s22 = smov 96   ;;  %s84_s23 = smov 64   ;;  %v70_v4 = vld [vmem:[%s128_s0 + $0x3] ss:$8 sm:%s35_s20]   ;;  %v71_v5 = vld [vmem:[%s128_s0 + $0x2] ss:$8 sm:%s42_s21]  }
   0x5   :  { %s2_s26 = smov 3  ;;  %s49_s29 = smov 3 }
   0x6   :  { %16 = vrot.lane.b32.xlu0 %v67_v2, %s83_s22  ;;  %v3_v6 = vld [vmem:[%s128_s0] ss:$8 sm:%s2_s26]   ;;  %s85_s3 = smov 48   ;;  %s86_s4 = smov 32  }
   0x7   :  { %30 = vrot.lane.b32.xlu1 %v69_v3, %s84_s23  ;;  %5 = vst.msk [vmem:[#allocation0] ss:$8 sm:$0x3] %vm4_vm0, %v3_v6   ;;  %v72_v7 = vld [vmem:[%s128_s0 + $0x1] ss:$8 sm:%s49_s29]   ;;  %s87_s0 = smov 16  }
   0xa   :  { %37 = vrot.lane.b32.xlu0 %v70_v4, %s85_s3 }
   0xb   :  { %44 = vrot.lane.b32.xlu1 %v71_v5, %s86_s4 }
   0xe   :  { %51 = vrot.lane.b32.xlu0 %v72_v7, %s87_s0 }
  0x74   :  { %v10_v8 = vpop.permute.xlu0 %9  }
  0x75   :  { %12 = vst.msk [vmem:[#allocation0] ss:$8 sm:$0x3] %vm11_vm1, %v10_v8   ;;  %v24_v9 = vpop.permute.xlu1 %23  }
  0x78   :  { %v17_v10 = vpop.permute.xlu0 %16  }
  0x79   :  { %19 = vst.msk [vmem:[#allocation0] ss:$8 sm:$0x3] %vm18_vm2, %v17_v10   ;;  %v31_v11 = vpop.permute.xlu1 %30  }
  0x7a   :  { %26 = vst.msk [vmem:[#allocation0] ss:$8 sm:$0x3] %vm25_vm3, %v24_v9  }
  0x7b   :  { %33 = vst.msk [vmem:[#allocation0] ss:$8 sm:$0x3] %vm32_vm4, %v31_v11  }
  0x7c   :  { %v38_v12 = vpop.permute.xlu0 %37  }
  0x7d   :  { %40 = vst.msk [vmem:[#allocation0] ss:$8 sm:$0x3] %vm39_vm5, %v38_v12   ;;  %v45_v13 = vpop.permute.xlu1 %44  }
  0x7e   :  { %47 = vst.msk [vmem:[#allocation0] ss:$8 sm:$0x3] %vm46_vm6, %v45_v13  }
  0x80   :  { %v52_v14 = vpop.permute.xlu0 %51  }
  0x81   :  { %54 = vst.msk [vmem:[#allocation0] ss:$8 sm:$0x3] %vm53_vm7, %v52_v14  }
  0x88   :  { %v58_v15 = vld [vmem:[#allocation0] sm:$0x1]  ;;  %v62_v16 = vld [vmem:[#allocation0 + $0x8] sm:$0x1] }
  0x89   :  { %60 = vst [vmem:[%s129_s1] sm:$0x1] %v58_v15  ;;  %73 = vst [vmem:[%s129_s1 + $0x1] sm:$0x1] %v62_v16 }

// kernel: tile.42
= control target key start
LH: loop header
LB: loop body
LE: loop exit
PB: predicated region body
PF: predicated region fallthrough
CT: control target
= control target key end

     0   :  { %s22_s0 = inlined_call_operand.vmem [shape: f32[32], index: 0, kind: input, shape index: {}]   ;;  %s23_s1 = inlined_call_operand.vmem [shape: f32[8,32], index: 1, kind: output, shape index: {}]  }
   0x1   :  { %v4_v0 = vld [vmem:[%s22_s0] ss:$0 sm:$0xff] }
   0x2   :  { %5 = vst [vmem:[%s23_s1] sm:$0xff] %v4_v0 }

// kernel: tile.43
= control target key start
LH: loop header
LB: loop body
LE: loop exit
PB: predicated region body
PF: predicated region fallthrough
CT: control target
= control target key end

     0   :  { %s7_s6 = smov 3  ;;  %s14_s9 = smov 3  ;;  %vm4_vm0 = vcmask 261120   ;;  %vm11_vm1 = vcmask 1048320   ;;  %vm18_vm2 = vcmask 785920   ;;  %vm25_vm3 = vcmask 523520   ;;  %s76_s0 = inlined_call_operand.vmem [shape: f32[8,32], index: 0, kind: input, shape index: {}]   ;;  %s77_s1 = inlined_call_operand.vmem [shape: f32[1,256], index: 1, kind: output, shape index: {}]  }
   0x1   :  { %v38_v0 = vld [vmem:[%s76_s0 + $0x3] ss:$4 sm:%s7_s6]   ;;  %s45_s10 = smov 96   ;;  %s21_s11 = smov 3  ;;  %v39_v1 = vld [vmem:[%s76_s0 + $0x2] ss:$4 sm:%s14_s9]  }
   0x2   :  { %9 = vrot.lane.b32.xlu0 %v38_v0, %s45_s10  ;;  %v40_v2 = vld [vmem:[%s76_s0 + $0x1] ss:$4 sm:%s21_s11]   ;;  %s2_s16 = smov 3  ;;  %s46_s17 = smov 32  }
   0x3   :  { %23 = vrot.lane.b32.xlu1 %v40_v2, %s46_s17  ;;  %v3_v3 = vld [vmem:[%s76_s0] ss:$4 sm:%s2_s16]   ;;  %s47_s0 = smov 64  }
   0x4   :  { %5 = vst.msk [vmem:[#allocation0] ss:$8 sm:$0x3] %vm4_vm0, %v3_v3  }
   0x6   :  { %16 = vrot.lane.b32.xlu0 %v39_v1, %s47_s0 }
  0x74   :  { %v10_v4 = vpop.permute.xlu0 %9  }
  0x75   :  { %12 = vst.msk [vmem:[#allocation0] ss:$8 sm:$0x3] %vm11_vm1, %v10_v4   ;;  %v24_v5 = vpop.permute.xlu1 %23  }
  0x78   :  { %v17_v6 = vpop.permute.xlu0 %16  }
  0x79   :  { %19 = vst.msk [vmem:[#allocation0] ss:$8 sm:$0x3] %vm18_vm2, %v17_v6  }
  0x7a   :  { %26 = vst.msk [vmem:[#allocation0] ss:$8 sm:$0x3] %vm25_vm3, %v24_v5  }
  0x81   :  { %v30_v7 = vld [vmem:[#allocation0] sm:$0x1]  ;;  %v34_v8 = vld [vmem:[#allocation0 + $0x8] sm:$0x1] }
  0x82   :  { %32 = vst [vmem:[%s77_s1] sm:$0x1] %v30_v7  ;;  %41 = vst [vmem:[%s77_s1 + $0x1] sm:$0x1] %v34_v8 }

// kernel: tile.47
= control target key start
LH: loop header
LB: loop body
LE: loop exit
PB: predicated region body
PF: predicated region fallthrough
CT: control target
= control target key end

     0   :  { %s22_s0 = inlined_call_operand.vmem [shape: f32[64], index: 0, kind: input, shape index: {}]   ;;  %s23_s1 = inlined_call_operand.vmem [shape: f32[4,64], index: 1, kind: output, shape index: {}]  }
   0x1   :  { %v4_v0 = vld [vmem:[%s22_s0] ss:$0 sm:$0xff] }
   0x2   :  { %5 = vst [vmem:[%s23_s1] sm:$0xf] %v4_v0 }

// kernel: tile.48
= control target key start
LH: loop header
LB: loop body
LE: loop exit
PB: predicated region body
PF: predicated region fallthrough
CT: control target
= control target key end

     0   :  { %s6_s8 = smov 3  ;;  %vm8_vm0 = vcmask 523264   ;;  %s30_s9 = smov 64   ;;  %vm15_vm1 = vcmask 1048064   ;;  %s50_s0 = inlined_call_operand.vmem [shape: f32[4,64], index: 0, kind: input, shape index: {}]   ;;  %s51_s1 = inlined_call_operand.vmem [shape: f32[1,256], index: 1, kind: output, shape index: {}]  }
   0x1   :  { %v4_v0 = vld [vmem:[%s50_s0] sm:$0xf]  ;;  %s11_s0 = smov 3 }
   0x2   :  { %5 = vst [vmem:[#allocation1] sm:$0xf] %v4_v0 }
   0x9   :  { %v12_v1 = vld [vmem:[#allocation1 + $0x1] ss:$2 sm:%s11_s0]   ;;  %v7_v2 = vld [vmem:[#allocation1] ss:$2 sm:%s6_s8]  }
   0xa   :  { %13 = vrot.lane.b32.xlu0 %v12_v1, %s30_s9  ;;  %9 = vst.msk [vmem:[#allocation0] ss:$8 sm:$0x3] %vm8_vm0, %v7_v2  }
  0x7c   :  { %v14_v3 = vpop.permute.xlu0 %13  }
  0x7d   :  { %16 = vst.msk [vmem:[#allocation0] ss:$8 sm:$0x3] %vm15_vm1, %v14_v3  }
  0x84   :  { %v20_v4 = vld [vmem:[#allocation0] sm:$0x1]  ;;  %v24_v5 = vld [vmem:[#allocation0 + $0x8] sm:$0x1] }
  0x85   :  { %22 = vst [vmem:[%s51_s1] sm:$0x1] %v20_v4  ;;  %28 = vst [vmem:[%s51_s1 + $0x1] sm:$0x1] %v24_v5 }

// kernel: autoencoder_forward.1
= control target key start
LH: loop header
LB: loop body
LE: loop exit
PB: predicated region body
PF: predicated region fallthrough
CT: control target
= control target key end

     0   :  { %s11784_s0 = inlined_call_operand.vmem [shape: bf16[64,96], index: 0, kind: input, shape index: {}]   ;;  %s11785_s1 = inlined_call_operand.vmem [shape: bf16[3,32,64], index: 1, kind: input, shape index: {}]   ;;  %s11786_s2 = inlined_call_operand.vmem [shape: bf16[3,96,256], index: 2, kind: input, shape index: {}]   ;;  %s11787_s3 = inlined_call_operand.vmem [shape: f32[1,256], index: 3, kind: input, shape index: {}]   ;;  %s11788_s4 = inlined_call_operand.vmem [shape: bf16[3,16,32], index: 4, kind: input, shape index: {}]   ;;  %s11789_s5 = inlined_call_operand.vmem [shape: bf16[3,256,256], index: 5, kind: input, shape index: {}]   ;;  %s11790_s6 = inlined_call_operand.vmem [shape: f32[1,256], index: 6, kind: input, shape index: {}]   ;;  %s11791_s7 = inlined_call_operand.vmem [shape: bf16[3,8,16], index: 7, kind: input, shape index: {}]   ;;  %s11792_s8 = inlined_call_operand.vmem [shape: bf16[3,256,256], index: 8, kind: input, shape index: {}]   ;;  %s11793_s9 = inlined_call_operand.vmem [shape: f32[1,256], index: 9, kind: input, shape index: {}]   ;;  %s11794_s10 = inlined_call_operand.vmem [shape: bf16[4,2,8], index: 10, kind: input, shape index: {}]   ;;  %s11795_s11 = inlined_call_operand.vmem [shape: bf16[4,256,64], index: 11, kind: input, shape index: {}]   ;;  %s11796_s12 = inlined_call_operand.vmem [shape: f32[1,64], index: 12, kind: input, shape index: {}]   ;;  %s11797_s13 = inlined_call_operand.vmem [shape: f32[4,8,2], index: 13, kind: input, shape index: {}]   ;;  %s11798_s14 = inlined_call_operand.vmem [shape: bf16[4,64,256], index: 14, kind: input, shape index: {}]   ;;  %s11799_s15 = inlined_call_operand.vmem [shape: f32[8,256], index: 15, kind: input, shape index: {}]   ;;  %s11800_s16 = inlined_call_operand.vmem [shape: bf16[3,16,8], index: 16, kind: input, shape index: {}]   ;;  %s11801_s17 = inlined_call_operand.vmem [shape: bf16[3,256,256], index: 17, kind: input, shape index: {}]   ;;  %s11802_s18 = inlined_call_operand.vmem [shape: f32[1,256], index: 18, kind: input, shape index: {}]   ;;  %s11803_s19 = inlined_call_operand.vmem [shape: bf16[3,32,16], index: 19, kind: input, shape index: {}]   ;;  %s11804_s20 = inlined_call_operand.vmem [shape: bf16[3,256,256], index: 20, kind: input, shape index: {}]   ;;  %s11805_s21 = inlined_call_operand.vmem [shape: f32[1,256], index: 21, kind: input, shape index: {}]   ;;  %s11806_s22 = inlined_call_operand.vmem [shape: bf16[3,64,32], index: 22, kind: input, shape index: {}]   ;;  %s11807_s23 = inlined_call_operand.vmem [shape: bf16[3,256,96], index: 23, kind: input, shape index: {}]   ;;  %s11808_s24 = inlined_call_operand.vmem [shape: f32[1,96], index: 24, kind: input, shape index: {}]   ;;  %s11809_s25 = inlined_call_operand.hbm [shape: f32[2,64], index: 25, kind: output, shape index: {0}]   ;;  %s11810_s26 = inlined_call_operand.vmem [shape: f32[64,96], index: 26, kind: output, shape index: {1}]  }
   0x1   :  { %11819 = sst [smem:[#allocation5_spill]] %s11784_s0 }
   0x2   :  { %11820 = sst [smem:[#allocation6_spill]] %s11785_s1 }
   0x3   :  { %11821 = sst [smem:[#allocation7_spill]] %s11786_s2 }
   0x4   :  { %11822 = sst [smem:[#allocation8_spill]] %s11787_s3 }
   0x5   :  { %11823 = sst [smem:[#allocation9_spill]] %s11788_s4 }
   0x6   :  { %11824 = sst [smem:[#allocation10_spill]] %s11789_s5 }
   0x7   :  { %11825 = sst [smem:[#allocation11_spill]] %s11790_s6 }
   0x8   :  { %11826 = sst [smem:[#allocation12_spill]] %s11791_s7 }
   0x9   :  { %11827 = sst [smem:[#allocation13_spill]] %s11792_s8 }
   0xa   :  { %11828 = sst [smem:[#allocation14_spill]] %s11793_s9 }
   0xb   :  { %11829 = sst [smem:[#allocation15_spill]] %s11794_s10 }
   0xc   :  { %s11830_s7 = sld [smem:[#allocation5_spill]]  ;;  %vm130_vm0 = vcmask 523264   ;;  %s11831_s30 = sld [smem:[#allocation6_spill]]  ;;  %v9466_v23 = vmov 0   ;;  %vm345_vm1 = vcmask 785408  }
   0xd   :  { %s11832_s3 = sld [smem:[#allocation7_spill]] }
  0x12   :  { %v8586_v0 = vld [vmem:[%s11830_s7] sm:$0xff]   ;;  %v8587_v1 = vld [vmem:[%s11830_s7 + $0x8] sm:$0xff]   ;;  %v8588_v2 = vld [vmem:[%s11830_s7 + $0x10] sm:$0xff]  }
  0x13   :  { %8505 = vmatprep.subr.bf16.mxu1 %v8586_v0  ;;  %8493 = vmatprep.subr.bf16.mxu0 %v8586_v0  ;;  %v8590_v3 = vld [vmem:[%s11831_s30 + $0x10] sm:$0xff]   ;;  %v8592_v4 = vld [vmem:[%s11831_s30] sm:$0xff]   ;;  %v8589_v5 = vld [vmem:[%s11830_s7 + $0x18] sm:$0xff]  }
  0x14   :  { %8506 = vmatpush3.bf16.msra.mxu1 %v8586_v0  ;;  %8494 = vmatpush3.bf16.msra.mxu0 %v8586_v0  ;;  %v8598_v6 = vld [vmem:[%s11832_s3 + $0x64] ss:$8 sps:$4 sm:$0xff]   ;;  %v8591_v7 = vld [vmem:[%s11831_s30 + $0x18] sm:$0xff]   ;;  %v8596_v10 = vld [vmem:[%s11832_s3 + $0x60] ss:$8 sps:$4 sm:$0xff]  }
  0x15   :  { %8507 = vmatprep.subr.bf16.mxu1 %v8587_v1  ;;  %8495 = vmatprep.subr.bf16.mxu0 %v8587_v1  ;;  %v8593_v8 = vld [vmem:[%s11831_s30 + $0x8] sm:$0xff]   ;;  %v8594_v9 = vld [vmem:[%s11831_s30 + $0x20] sm:$0xff]   ;;  %v8601_v11 = vld [vmem:[%s11832_s3 + $0x74] ss:$8 sps:$4 sm:$0xff]  }
  0x16   :  { %8513 = vmatprep.mubr.msk.bf16.mxu1 %vm130_vm0, %v8590_v3  ;;  %8501 = vmatprep.mubr.msk.bf16.mxu0 %vm130_vm0, %v8592_v4  ;;  %v8599_v12 = vld [vmem:[%s11832_s3 + $0x70] ss:$8 sps:$4 sm:$0xff]   ;;  %v8604_v13 = vld [vmem:[%s11832_s3 + $0x84] ss:$8 sps:$4 sm:$0xff]   ;;  %v8602_v14 = vld [vmem:[%s11832_s3 + $0x80] ss:$8 sps:$4 sm:$0xff]  }
  0x17   :  { %v8607_v15 = vld [vmem:[%s11832_s3 + $0x94] ss:$8 sps:$4 sm:$0xff]   ;;  %v8605_v16 = vld [vmem:[%s11832_s3 + $0x90] ss:$8 sps:$4 sm:$0xff]   ;;  %v8610_v17 = vld [vmem:[%s11832_s3 + $0xa4] ss:$8 sps:$4 sm:$0xff]  }
  0x18   :  { %8508 = vmatpush3.bf16.msra.mxu1 %v8587_v1  ;;  %8496 = vmatpush3.bf16.msra.mxu0 %v8587_v1  ;;  %v8595_v18 = vld [vmem:[%s11831_s30 + $0x28] sm:$0xff]   ;;  %v8613_v20 = vld [vmem:[%s11832_s3 + $0xb4] ss:$8 sps:$4 sm:$0xff]   ;;  %v8611_v21 = vld [vmem:[%s11832_s3 + $0xb0] ss:$8 sps:$4 sm:$0xff]  }
  0x19   :  { %8509 = vmatprep.subr.bf16.mxu1 %v8588_v2  ;;  %8497 = vmatprep.subr.bf16.mxu0 %v8588_v2  ;;  %v8608_v19 = vld [vmem:[%s11832_s3 + $0xa0] ss:$8 sps:$4 sm:$0xff]   ;;  %v8616_v22 = vld [vmem:[%s11832_s3 + $0x4] ss:$8 sps:$4 sm:$0xff]   ;;  %v8619_v30 = vld [vmem:[%s11832_s3 + $0x14] ss:$8 sps:$4 sm:$0xff]  }
  0x1a   :  { %v8614_v27 = vld [vmem:[%s11832_s3] ss:$8 sps:$4 sm:$0xff]   ;;  %v8617_v38 = vld [vmem:[%s11832_s3 + $0x10] ss:$8 sps:$4 sm:$0xff]   ;;  %v8622_v39 = vld [vmem:[%s11832_s3 + $0x24] ss:$8 sps:$4 sm:$0xff]  }
  0x1b   :  { %v8620_v40 = vld [vmem:[%s11832_s3 + $0x20] ss:$8 sps:$4 sm:$0xff]   ;;  %v8625_v41 = vld [vmem:[%s11832_s3 + $0x34] ss:$8 sps:$4 sm:$0xff]   ;;  %v8623_v42 = vld [vmem:[%s11832_s3 + $0x30] ss:$8 sps:$4 sm:$0xff]  }
  0x1c   :  { %8510 = vmatpush3.bf16.msra.mxu1 %v8588_v2  ;;  %8498 = vmatpush3.bf16.msra.mxu0 %v8588_v2  ;;  %v8628_v43 = vld [vmem:[%s11832_s3 + $0x44] ss:$8 sps:$4 sm:$0xff]   ;;  %v8626_v45 = vld [vmem:[%s11832_s3 + $0x40] ss:$8 sps:$4 sm:$0xff]   ;;  %v8631_v47 = vld [vmem:[%s11832_s3 + $0x54] ss:$8 sps:$4 sm:$0xff]  }
  0x1d   :  { %8511 = vmatprep.subr.bf16.mxu1 %v8589_v5  ;;  %8499 = vmatprep.subr.bf16.mxu0 %v8589_v5  ;;  %v8629_v52 = vld [vmem:[%s11832_s3 + $0x50] ss:$8 sps:$4 sm:$0xff]   ;;  %v8634_v53 = vld [vmem:[%s11832_s3 + $0xc4] ss:$8 sps:$4 sm:$0xff]   ;;  %v8632_v54 = vld [vmem:[%s11832_s3 + $0xc0] ss:$8 sps:$4 sm:$0xff]  }
  0x1e   :  { %v8637_v55 = vld [vmem:[%s11832_s3 + $0xd4] ss:$8 sps:$4 sm:$0xff]   ;;  %v8635_v56 = vld [vmem:[%s11832_s3 + $0xd0] ss:$8 sps:$4 sm:$0xff]   ;;  %v8640_v57 = vld [vmem:[%s11832_s3 + $0xe4] ss:$8 sps:$4 sm:$0xff]  }
  0x1f   :  { %v8638_v58 = vld [vmem:[%s11832_s3 + $0xe0] ss:$8 sps:$4 sm:$0xff]   ;;  %v8643_v59 = vld [vmem:[%s11832_s3 + $0xf4] ss:$8 sps:$4 sm:$0xff]  }
  0x20   :  { %8512 = vmatpush3.bf16.msra.mxu1 %v8589_v5  ;;  %8500 = vmatpush3.bf16.msra.mxu0 %v8589_v5 }
  0x21   :  { %8517 = vmatprep.subr.bf16.mxu1 %v8586_v0  ;;  %352 = vmatprep.subr.bf16.mxu0 %v8598_v6 }
  0x23   :  { %8514 = vmatmul.mubr.msk.bf16.vlgmr.msra.gmra.mrb[0].mxu1 %vm130_vm0, %v8591_v7  ;;  %8502 = vmatmul.mubr.msk.bf16.vlgmr.msra.gmra.mrb[0].mxu0 %vm130_vm0, %v8593_v8 }
  0x24   :  { %8518 = vmatpush3.bf16.msra.mxu1 %v8586_v0  ;;  %8525 = vmatprep.mubr.msk.bf16.mxu1 %vm130_vm0, %v8594_v9 }
  0x25   :  { %8519 = vmatprep.subr.bf16.mxu1 %v8587_v1  ;;  %353 = vmatpush1.bf16.msra.mxu0 %v8596_v10 }
  0x26   :  { %354 = vmatprep.subr.bf16.mxu0 %v8601_v11  ;;  %384 = vmatprep.mubr.bf16.mxu0 %v9466_v23 }
  0x28   :  { %8520 = vmatpush3.bf16.msra.mxu1 %v8587_v1 }
  0x29   :  { %8521 = vmatprep.subr.bf16.mxu1 %v8588_v2  ;;  %355 = vmatpush1.bf16.msra.mxu0 %v8599_v12 }
  0x2a   :  { %356 = vmatprep.subr.bf16.mxu0 %v8604_v13 }
  0x2c   :  { %8522 = vmatpush3.bf16.msra.mxu1 %v8588_v2 }
  0x2d   :  { %8523 = vmatprep.subr.bf16.mxu1 %v8589_v5  ;;  %357 = vmatpush1.bf16.msra.mxu0 %v8602_v14 }
  0x2e   :  { %358 = vmatprep.subr.bf16.mxu0 %v8607_v15 }
  0x30   :  { %8524 = vmatpush3.bf16.msra.mxu1 %v8589_v5 }
  0x31   :  { %359 = vmatpush1.bf16.msra.mxu0 %v8605_v16 }
  0x32   :  { %360 = vmatprep.subr.bf16.mxu0 %v8610_v17 }
  0x33   :  { %8526 = vmatmul.mubr.msk.bf16.vlgmr.msra.gmra.mrb[4].mxu1 %vm130_vm0, %v8595_v18 }
  0x34   :  { %899 = vmatprep.mubr.bf16.mxu1 %v9466_v23 }
  0x35   :  { %361 = vmatpush1.bf16.msra.mxu0 %v8608_v19 }
  0x36   :  { %362 = vmatprep.subr.bf16.mxu0 %v8613_v20 }
  0x39   :  { %363 = vmatpush1.bf16.msra.mxu0 %v8611_v21 }
  0x3a   :  { %471 = vmatprep.subr.bf16.mxu0 %v8616_v22 }
  0xf6   :  { %v8515_v24 = vpop.f32.mrb[0].mxu1  ;;  %v8503_v25 = vpop.f32.mrb[0].mxu0 }
  0xf7   :  { %v255_v26 = vpop.f32.mrb[1].mxu1  ;;  %v171_v28 = vpop.f32.mrb[1].mxu0 }
  0xf8   :  { %v8516_v29 = vpop.f32.mrb[2].mxu1  ;;  %v8504_v31 = vpop.f32.mrb[2].mxu0 }
  0xf9   :  { %v271_v32 = vpack.c.bf16 %v8516_v29, %v8515_v24  ;;  %v258_v33 = vpop.f32.mrb[3].mxu1  ;;  %v187_v34 = vpack.c.bf16 %v8504_v31, %v8503_v25  ;;  %v174_v35 = vpop.f32.mrb[3].mxu0 }
  0xfa   :  { %v270_v36 = vpack.c.bf16 %v258_v33, %v255_v26  ;;  %v186_v37 = vpack.c.bf16 %v174_v35, %v171_v28 }
  0xfc   :  { %7121 = vmatmul.mubr.msk.bf16.vlgmr.msra.gmra.mrb[4].mxu0 %vm345_vm1, %v270_v36 }
  0xfd   :  { %472 = vmatpush1.bf16.msra.mxu0 %v8614_v27  ;;  %394 = vmatprep.mubr.bf16.mxu0 %v9466_v23 }
  0xfe   :  { %473 = vmatprep.subr.bf16.mxu0 %v8619_v30 }
 0x101   :  { %474 = vmatpush1.bf16.msra.mxu0 %v8617_v38 }
 0x102   :  { %475 = vmatprep.subr.bf16.mxu0 %v8622_v39 }
 0x104   :  { %7122 = vmatmul.mubr.msk.bf16.gmra.mrb[8].mxu0 %vm345_vm1, %v271_v32 }
 0x105   :  { %476 = vmatpush1.bf16.msra.mxu0 %v8620_v40  ;;  %503 = vmatprep.mubr.bf16.mxu0 %v9466_v23 }
 0x106   :  { %477 = vmatprep.subr.bf16.mxu0 %v8625_v41  ;;  %v8527_v44 = vpop.f32.mrb[4].mxu1 }
 0x107   :  { %v579_v46 = vpop.f32.mrb[5].mxu1 }
 0x108   :  { %v8528_v48 = vpop.f32.mrb[6].mxu1 }
 0x109   :  { %478 = vmatpush1.bf16.msra.mxu0 %v8623_v42  ;;  %v595_v49 = vpack.c.bf16 %v8528_v48, %v8527_v44  ;;  %v582_v50 = vpop.f32.mrb[7].mxu1 }
 0x10a   :  { %479 = vmatprep.subr.bf16.mxu0 %v8628_v43  ;;  %v594_v51 = vpack.c.bf16 %v582_v50, %v579_v46 }
 0x10d   :  { %480 = vmatpush1.bf16.msra.mxu0 %v8626_v45 }
 0x10e   :  { %481 = vmatprep.subr.bf16.mxu0 %v8631_v47 }
 0x111   :  { %482 = vmatpush1.bf16.msra.mxu0 %v8629_v52 }
 0x112   :  { %675 = vmatprep.subr.bf16.mxu0 %v8634_v53 }
 0x114   :  { %7135 = vmatmul.mubr.msk.bf16.vlgmr.msra.gmra.mrb[4].mxu0 %vm345_vm1, %v186_v37 }
 0x115   :  { %676 = vmatpush1.bf16.msra.mxu0 %v8632_v54  ;;  %513 = vmatprep.mubr.bf16.mxu0 %v9466_v23 }
 0x116   :  { %677 = vmatprep.subr.bf16.mxu0 %v8637_v55 }
 0x119   :  { %678 = vmatpush1.bf16.msra.mxu0 %v8635_v56 }
 0x11a   :  { %679 = vmatprep.subr.bf16.mxu0 %v8640_v57 }
 0x11b   :  { %32 = vsyncpa [#allocation3], 0  ;;  %v8641_v60 = vld [vmem:[%s11832_s3 + $0xf0] ss:$8 sps:$4 sm:$0xff]   ;;  %v8646_v61 = vld [vmem:[%s11832_s3 + $0x104] ss:$8 sps:$4 sm:$0xff]   ;;  %v738_v1 = vlaneseq }
 0x11c   :  { %7136 = vmatmul.mubr.msk.bf16.gmra.mrb[8].mxu0 %vm345_vm1, %v187_v34  ;;  %v8644_v62 = vld [vmem:[%s11832_s3 + $0x100] ss:$8 sps:$4 sm:$0xff]   ;;  %v8649_v63 = vld [vmem:[%s11832_s3 + $0x114] ss:$8 sps:$4 sm:$0xff]   ;;  %v8647_v0 = vld [vmem:[%s11832_s3 + $0x110] ss:$8 sps:$4 sm:$0xff]  }
 0x11d   :  { %680 = vmatpush1.bf16.msra.mxu0 %v8638_v58  ;;  %707 = vmatprep.mubr.bf16.mxu0 %v9466_v23  ;;  %v739_v2 = vshrl.u32 %v738_v1, 7  ;;  %s11833_s1 = sld [smem:[#allocation8_spill]]  ;;  %s11834_s28 = sld [smem:[#allocation10_spill]]  ;;  %vm775_vm2 = vcmask 261120   ;;  %vm1670_vm3 = vcmask 130048   ;;  %vm2537_vm4 = vcmask 1043456  }
 0x11e   :  { %681 = vmatprep.subr.bf16.mxu0 %v8643_v59  ;;  %s11835_s29 = sld [smem:[#allocation9_spill]]  ;;  %s11836_s7 = sld [smem:[#allocation11_spill]]  ;;  %vm2533_vm5 = vcmask 64512   ;;  %vm3416_vm6 = vcmask 517120   ;;  %vm3608_vm7 = vcmask 1041408   ;;  %vm3604_vm8 = vcmask 15360  }
 0x11f   :  { %v9762_v3 = vsub.s32 0, %v739_v2  ;;  %v9767_v5 = vsub.s32 1, %v739_v2  ;;  %s11837_s9 = sld [smem:[#allocation12_spill]]  ;;  %s11838_s6 = sld [smem:[#allocation13_spill]] }
 0x121   :  { %682 = vmatpush1.bf16.msra.mxu0 %v8641_v60 }
 0x122   :  { %683 = vmatprep.subr.bf16.mxu0 %v8646_v61 }
 0x123   :  { %v736_v4 = vld [vmem:[%s11833_s1] sm:$0x3]  ;;  %v8655_v37 = vld [vmem:[%s11834_s28 + $0x104] ss:$8 sps:$4 sm:$0xff]   ;;  %v8658_v41 = vld [vmem:[%s11834_s28 + $0x114] ss:$8 sps:$4 sm:$0xff]  }
 0x124   :  { %v741_v6 = vrot.slane %v736_v4, %v9762_v3  ;;  %v745_v7 = vrot.slane %v736_v4, %v9767_v5  ;;  %v8650_v38 = vld [vmem:[%s11835_s29 + $0x8] sm:$0xff]   ;;  %v8651_v39 = vld [vmem:[%s11835_s29] sm:$0xff]   ;;  %v8656_v42 = vld [vmem:[%s11834_s28 + $0x110] ss:$8 sps:$4 sm:$0xff]   ;;  %s11840_s1 = sld [smem:[#allocation15_spill]] }
 0x125   :  { %684 = vmatpush1.bf16.msra.mxu0 %v8644_v62  ;;  %v8653_v40 = vld [vmem:[%s11834_s28 + $0x100] ss:$8 sps:$4 sm:$0xff]   ;;  %v8661_v43 = vld [vmem:[%s11834_s28 + $0x124] ss:$8 sps:$4 sm:$0xff]   ;;  %v8652_v44 = vld [vmem:[%s11835_s29 + $0x10] sm:$0xff]   ;;  %s11839_s29 = sld [smem:[#allocation14_spill]] }
 0x126   :  { %685 = vmatprep.subr.bf16.mxu0 %v8649_v63  ;;  %v8659_v45 = vld [vmem:[%s11834_s28 + $0x120] ss:$8 sps:$4 sm:$0xff]   ;;  %v8664_v46 = vld [vmem:[%s11834_s28 + $0x134] ss:$8 sps:$4 sm:$0xff]   ;;  %v8662_v47 = vld [vmem:[%s11834_s28 + $0x130] ss:$8 sps:$4 sm:$0xff]  }
 0x127   :  { %v8667_v48 = vld [vmem:[%s11834_s28 + $0x144] ss:$8 sps:$4 sm:$0xff]   ;;  %v8670_v50 = vld [vmem:[%s11834_s28 + $0x154] ss:$8 sps:$4 sm:$0xff]   ;;  %v8671_v53 = vld [vmem:[%s11834_s28 + $0x160] ss:$8 sps:$4 sm:$0xff]  }
 0x128   :  { %v8673_v52 = vld [vmem:[%s11834_s28 + $0x164] ss:$8 sps:$4 sm:$0xff]   ;;  %v8676_v54 = vld [vmem:[%s11834_s28 + $0x174] ss:$8 sps:$4 sm:$0xff]   ;;  %v8674_v55 = vld [vmem:[%s11834_s28 + $0x170] ss:$8 sps:$4 sm:$0xff]  }
 0x129   :  { %686 = vmatpush1.bf16.msra.mxu0 %v8647_v0  ;;  %v8679_v56 = vld [vmem:[%s11834_s28 + $0x184] ss:$8 sps:$4 sm:$0xff]   ;;  %v8677_v57 = vld [vmem:[%s11834_s28 + $0x180] ss:$8 sps:$4 sm:$0xff]   ;;  %v8682_v58 = vld [vmem:[%s11834_s28 + $0x194] ss:$8 sps:$4 sm:$0xff]  }
 0x12a   :  { %v8680_v59 = vld [vmem:[%s11834_s28 + $0x190] ss:$8 sps:$4 sm:$0xff]   ;;  %v8685_v60 = vld [vmem:[%s11834_s28 + $0x1a4] ss:$8 sps:$4 sm:$0xff]   ;;  %v8683_v61 = vld [vmem:[%s11834_s28 + $0x1a0] ss:$8 sps:$4 sm:$0xff]  }
 0x12b   :  { %v8688_v62 = vld [vmem:[%s11834_s28 + $0x1b4] ss:$8 sps:$4 sm:$0xff]   ;;  %v8686_v63 = vld [vmem:[%s11834_s28 + $0x1b0] ss:$8 sps:$4 sm:$0xff]   ;;  %v8691_v0 = vld [vmem:[%s11834_s28 + $0x1c4] ss:$8 sps:$4 sm:$0xff]  }
 0x12c   :  { %7169 = vmatmul.mubr.msk.bf16.vlgmr.msra.gmra.mrb[4].mxu0 %vm345_vm1, %v594_v51  ;;  %v8668_v51 = vld [vmem:[%s11834_s28 + $0x150] ss:$8 sps:$4 sm:$0xff]   ;;  %v8689_v1 = vld [vmem:[%s11834_s28 + $0x1c0] ss:$8 sps:$4 sm:$0xff]   ;;  %v8694_v2 = vld [vmem:[%s11834_s28 + $0x1d4] ss:$8 sps:$4 sm:$0xff]  }
 0x12d   :  { %717 = vmatprep.mubr.bf16.mxu0 %v9466_v23  ;;  %v8692_v4 = vld [vmem:[%s11834_s28 + $0x1d0] ss:$8 sps:$4 sm:$0xff]  }
 0x134   :  { %7170 = vmatmul.mubr.msk.bf16.gmra.mrb[8].mxu0 %vm345_vm1, %v595_v49  ;;  %v8665_v49 = vld [vmem:[%s11834_s28 + $0x140] ss:$8 sps:$4 sm:$0xff]  }
 0x135   :  { %811 = vmatprep.mubr.bf16.mxu0 %v9466_v23 }
 0x1ff   :  { %v709_v8 = vpop.f32.mrb[4].mxu0 }
 0x200   :  { %v748_v9 = vadd.f32 %v741_v6, %v709_v8  ;;  %v711_v10 = vpop.f32.mrb[5].mxu0  ;;  %v8700_v8 = vld [vmem:[%s11834_s28 + $0x1f4] ss:$8 sps:$4 sm:$0xff]  }
 0x201   :  { %v749_v11 = vadd.f32 %v745_v7, %v711_v10  ;;  %v713_v12 = vpop.f32.mrb[6].mxu0  ;;  %v8703_v10 = vld [vmem:[%s11834_s28 + $0x4] ss:$8 sps:$4 sm:$0xff]  }
 0x202   :  { %v750_v13 = vadd.f32 %v741_v6, %v713_v12  ;;  %v715_v14 = vpop.f32.mrb[7].mxu0  ;;  %v756_v16 = vmax.f32 %v748_v9, 0.0  ;;  %v8698_v9 = vld [vmem:[%s11834_s28 + $0x1f0] ss:$8 sps:$4 sm:$0xff]  }
 0x203   :  { %v751_v15 = vadd.f32 %v745_v7, %v715_v14  ;;  %v757_v18 = vmax.f32 %v749_v11, 0.0 }
 0x204   :  { %v758_v17 = vmax.f32 %v750_v13, 0.0 }
 0x205   :  { %v759_v19 = vmax.f32 %v751_v15, 0.0 }
 0x206   :  { %v764_v20 = vpack.c.bf16 %v758_v17, %v756_v16 }
 0x207   :  { %v765_v21 = vpack.c.bf16 %v759_v19, %v757_v18  ;;  %v719_v22 = vpop.f32.mrb[8].mxu0 }
 0x208   :  { %v752_v24 = vadd.f32 %v741_v6, %v719_v22  ;;  %v721_v25 = vpop.f32.mrb[9].mxu0  ;;  %v8701_v22 = vld [vmem:[%s11834_s28] ss:$8 sps:$4 sm:$0xff]  }
 0x209   :  { %v753_v26 = vadd.f32 %v745_v7, %v721_v25  ;;  %v723_v27 = vpop.f32.mrb[10].mxu0  ;;  %779 = vmatprep.subr.bf16.mxu0 %v765_v21  ;;  %867 = vmatprep.subr.bf16.mxu1 %v765_v21  ;;  %v8706_v25 = vld [vmem:[%s11834_s28 + $0x14] ss:$8 sps:$4 sm:$0xff]  }
 0x20a   :  { %v754_v28 = vadd.f32 %v741_v6, %v723_v27  ;;  %v725_v29 = vpop.f32.mrb[11].mxu0  ;;  %780 = vmatpush1.bf16.msra.mxu0 %v764_v20  ;;  %868 = vmatpush1.bf16.msra.mxu1 %v764_v20  ;;  %v760_v31 = vmax.f32 %v752_v24, 0.0  ;;  %v8697_v6 = vld [vmem:[%s11834_s28 + $0x1e4] ss:$8 sps:$4 sm:$0xff]  }
 0x20b   :  { %v755_v30 = vadd.f32 %v745_v7, %v725_v29  ;;  %v761_v33 = vmax.f32 %v753_v26, 0.0  ;;  %v8695_v7 = vld [vmem:[%s11834_s28 + $0x1e0] ss:$8 sps:$4 sm:$0xff]   ;;  %v8704_v26 = vld [vmem:[%s11834_s28 + $0x10] ss:$8 sps:$4 sm:$0xff]  }
 0x20c   :  { %v762_v32 = vmax.f32 %v754_v28, 0.0  ;;  %v8709_v28 = vld [vmem:[%s11834_s28 + $0x24] ss:$8 sps:$4 sm:$0xff]  }
 0x20d   :  { %v763_v34 = vmax.f32 %v755_v30, 0.0 }
 0x20e   :  { %v766_v35 = vpack.c.bf16 %v762_v32, %v760_v31 }
 0x20f   :  { %v767_v36 = vpack.c.bf16 %v763_v34, %v761_v33  ;;  %v8707_v33 = vld [vmem:[%s11834_s28 + $0x20] ss:$8 sps:$4 sm:$0xff]  }
 0x211   :  { %781 = vmatprep.subr.bf16.mxu0 %v767_v36  ;;  %869 = vmatprep.subr.bf16.mxu1 %v767_v36 }
 0x212   :  { %782 = vmatpush1.bf16.msra.mxu0 %v766_v35  ;;  %870 = vmatpush1.bf16.msra.mxu1 %v766_v35 }
 0x213   :  { %1362 = vmatprep.subr.bf16.mxu0 %v765_v21  ;;  %1105 = vmatprep.subr.bf16.mxu1 %v8655_v37  ;;  %v8715_v37 = vld [vmem:[%s11834_s28 + $0x44] ss:$8 sps:$4 sm:$0xff]  }
 0x215   :  { %7176 = vmatmul.mubr.msk.bf16.vlgmr.msra.gmra.mrb[8].mxu1 %vm775_vm2, %v8650_v38  ;;  %7172 = vmatmul.mubr.msk.bf16.vlgmr.msra.gmra.mrb[12].mxu0 %vm775_vm2, %v8651_v39  ;;  %v8713_v38 = vld [vmem:[%s11834_s28 + $0x40] ss:$8 sps:$4 sm:$0xff]   ;;  %v8718_v39 = vld [vmem:[%s11834_s28 + $0x54] ss:$8 sps:$4 sm:$0xff]  }
 0x216   :  { %1363 = vmatpush1.bf16.msra.mxu0 %v764_v20  ;;  %1394 = vmatprep.mubr.bf16.mxu0 %v9466_v23 }
 0x217   :  { %1364 = vmatprep.subr.bf16.mxu0 %v767_v36  ;;  %1106 = vmatpush1.bf16.msra.mxu1 %v8653_v40  ;;  %v8710_v36 = vld [vmem:[%s11834_s28 + $0x30] ss:$8 sps:$4 sm:$0xff]  }
 0x218   :  { %1107 = vmatprep.subr.bf16.mxu1 %v8658_v41  ;;  %v8716_v40 = vld [vmem:[%s11834_s28 + $0x50] ss:$8 sps:$4 sm:$0xff]   ;;  %v8721_v41 = vld [vmem:[%s11834_s28 + $0x64] ss:$8 sps:$4 sm:$0xff]  }
 0x21a   :  { %1365 = vmatpush1.bf16.msra.mxu0 %v766_v35  ;;  %v8712_v35 = vld [vmem:[%s11834_s28 + $0x34] ss:$8 sps:$4 sm:$0xff]  }
 0x21b   :  { %1108 = vmatpush1.bf16.msra.mxu1 %v8656_v42  ;;  %v8719_v42 = vld [vmem:[%s11834_s28 + $0x60] ss:$8 sps:$4 sm:$0xff]  }
 0x21c   :  { %1109 = vmatprep.subr.bf16.mxu1 %v8661_v43  ;;  %v8724_v43 = vld [vmem:[%s11834_s28 + $0x74] ss:$8 sps:$4 sm:$0xff]  }
 0x21d   :  { %7276 = vmatmul.mubr.msk.bf16.vlgmr.msra.gmra.mrb[16].mxu0 %vm775_vm2, %v8652_v44  ;;  %v8722_v44 = vld [vmem:[%s11834_s28 + $0x70] ss:$8 sps:$4 sm:$0xff]  }
 0x21e   :  { %1706 = vmatprep.mubr.bf16.mxu0 %v9466_v23 }
 0x21f   :  { %1110 = vmatpush1.bf16.msra.mxu1 %v8659_v45  ;;  %v8727_v45 = vld [vmem:[%s11834_s28 + $0x84] ss:$8 sps:$4 sm:$0xff]  }
 0x220   :  { %1111 = vmatprep.subr.bf16.mxu1 %v8664_v46  ;;  %v8725_v46 = vld [vmem:[%s11834_s28 + $0x80] ss:$8 sps:$4 sm:$0xff]  }
 0x223   :  { %1112 = vmatpush1.bf16.msra.mxu1 %v8662_v47  ;;  %v8730_v47 = vld [vmem:[%s11834_s28 + $0x94] ss:$8 sps:$4 sm:$0xff]  }
 0x224   :  { %1113 = vmatprep.subr.bf16.mxu1 %v8667_v48  ;;  %v8728_v48 = vld [vmem:[%s11834_s28 + $0x90] ss:$8 sps:$4 sm:$0xff]  }
 0x227   :  { %1114 = vmatpush1.bf16.msra.mxu1 %v8665_v49  ;;  %v8733_v49 = vld [vmem:[%s11834_s28 + $0xa4] ss:$8 sps:$4 sm:$0xff]  }
 0x228   :  { %1115 = vmatprep.subr.bf16.mxu1 %v8670_v50  ;;  %v8731_v50 = vld [vmem:[%s11834_s28 + $0xa0] ss:$8 sps:$4 sm:$0xff]  }
 0x22b   :  { %1116 = vmatpush1.bf16.msra.mxu1 %v8668_v51  ;;  %v8736_v51 = vld [vmem:[%s11834_s28 + $0xb4] ss:$8 sps:$4 sm:$0xff]  }
 0x22c   :  { %1117 = vmatprep.subr.bf16.mxu1 %v8673_v52  ;;  %v8734_v52 = vld [vmem:[%s11834_s28 + $0xb0] ss:$8 sps:$4 sm:$0xff]  }
 0x22f   :  { %1118 = vmatpush1.bf16.msra.mxu1 %v8671_v53  ;;  %v8739_v53 = vld [vmem:[%s11834_s28 + $0xc4] ss:$8 sps:$4 sm:$0xff]  }
 0x230   :  { %1119 = vmatprep.subr.bf16.mxu1 %v8676_v54  ;;  %v8737_v54 = vld [vmem:[%s11834_s28 + $0xc0] ss:$8 sps:$4 sm:$0xff]  }
 0x233   :  { %1120 = vmatpush1.bf16.msra.mxu1 %v8674_v55  ;;  %v8742_v55 = vld [vmem:[%s11834_s28 + $0xd4] ss:$8 sps:$4 sm:$0xff]  }
 0x234   :  { %1121 = vmatprep.subr.bf16.mxu1 %v8679_v56  ;;  %v8740_v56 = vld [vmem:[%s11834_s28 + $0xd0] ss:$8 sps:$4 sm:$0xff]  }
 0x237   :  { %1122 = vmatpush1.bf16.msra.mxu1 %v8677_v57  ;;  %v8745_v57 = vld [vmem:[%s11834_s28 + $0xe4] ss:$8 sps:$4 sm:$0xff]  }
 0x238   :  { %1123 = vmatprep.subr.bf16.mxu1 %v8682_v58  ;;  %v8743_v58 = vld [vmem:[%s11834_s28 + $0xe0] ss:$8 sps:$4 sm:$0xff]  }
 0x23b   :  { %1124 = vmatpush1.bf16.msra.mxu1 %v8680_v59  ;;  %v8748_v59 = vld [vmem:[%s11834_s28 + $0xf4] ss:$8 sps:$4 sm:$0xff]  }
 0x23c   :  { %1125 = vmatprep.subr.bf16.mxu1 %v8685_v60  ;;  %v8746_v60 = vld [vmem:[%s11834_s28 + $0xf0] ss:$8 sps:$4 sm:$0xff]  }
 0x23f   :  { %1126 = vmatpush1.bf16.msra.mxu1 %v8683_v61  ;;  %v8751_v61 = vld [vmem:[%s11834_s28 + $0x204] ss:$8 sps:$4 sm:$0xff]  }
 0x240   :  { %1127 = vmatprep.subr.bf16.mxu1 %v8688_v62  ;;  %v8749_v62 = vld [vmem:[%s11834_s28 + $0x200] ss:$8 sps:$4 sm:$0xff]  }
 0x243   :  { %1128 = vmatpush1.bf16.msra.mxu1 %v8686_v63  ;;  %v8754_v63 = vld [vmem:[%s11834_s28 + $0x214] ss:$8 sps:$4 sm:$0xff]  }
 0x244   :  { %1129 = vmatprep.subr.bf16.mxu1 %v8691_v0  ;;  %v8752_v0 = vld [vmem:[%s11834_s28 + $0x210] ss:$8 sps:$4 sm:$0xff]  }
 0x247   :  { %1130 = vmatpush1.bf16.msra.mxu1 %v8689_v1  ;;  %v8757_v1 = vld [vmem:[%s11834_s28 + $0x224] ss:$8 sps:$4 sm:$0xff]  }
 0x248   :  { %1131 = vmatprep.subr.bf16.mxu1 %v8694_v2  ;;  %v8755_v2 = vld [vmem:[%s11834_s28 + $0x220] ss:$8 sps:$4 sm:$0xff]  }
 0x24b   :  { %1132 = vmatpush1.bf16.msra.mxu1 %v8692_v4  ;;  %v8760_v4 = vld [vmem:[%s11834_s28 + $0x234] ss:$8 sps:$4 sm:$0xff]  }
 0x24c   :  { %1133 = vmatprep.subr.bf16.mxu1 %v8697_v6  ;;  %v8758_v6 = vld [vmem:[%s11834_s28 + $0x230] ss:$8 sps:$4 sm:$0xff]  }
 0x24f   :  { %1134 = vmatpush1.bf16.msra.mxu1 %v8695_v7  ;;  %v8763_v7 = vld [vmem:[%s11834_s28 + $0x244] ss:$8 sps:$4 sm:$0xff]  }
 0x250   :  { %1135 = vmatprep.subr.bf16.mxu1 %v8700_v8  ;;  %v8761_v8 = vld [vmem:[%s11834_s28 + $0x240] ss:$8 sps:$4 sm:$0xff]  }
 0x253   :  { %1136 = vmatpush1.bf16.msra.mxu1 %v8698_v9  ;;  %v8766_v9 = vld [vmem:[%s11834_s28 + $0x254] ss:$8 sps:$4 sm:$0xff]  }
 0x254   :  { %1308 = vmatprep.subr.bf16.mxu1 %v8703_v10  ;;  %v8764_v10 = vld [vmem:[%s11834_s28 + $0x250] ss:$8 sps:$4 sm:$0xff]  }
 0x2e8   :  { %v901_v11 = vpop.f32.mrb[8].mxu1  ;;  %v9884_v12 = vpop.f32.mrb[12].mxu0 }
 0x2e9   :  { %v903_v13 = vpop.f32.mrb[9].mxu1  ;;  %v815_v14 = vpop.f32.mrb[13].mxu0 }
 0x2ea   :  { %v905_v15 = vpop.f32.mrb[10].mxu1  ;;  %v9886_v16 = vpop.f32.mrb[14].mxu0 }
 0x2eb   :  { %v910_v17 = vpack.c.bf16 %v905_v15, %v901_v11  ;;  %v907_v18 = vpop.f32.mrb[11].mxu1  ;;  %v822_v19 = vpack.c.bf16 %v9886_v16, %v9884_v12  ;;  %v819_v20 = vpop.f32.mrb[15].mxu0  ;;  %v8769_v11 = vld [vmem:[%s11834_s28 + $0x264] ss:$8 sps:$4 sm:$0xff]   ;;  %v8767_v12 = vld [vmem:[%s11834_s28 + $0x260] ss:$8 sps:$4 sm:$0xff]  }
 0x2ec   :  { %v911_v21 = vpack.c.bf16 %v907_v18, %v903_v13  ;;  %v823_v24 = vpack.c.bf16 %v819_v20, %v815_v14  ;;  %v8772_v13 = vld [vmem:[%s11834_s28 + $0x274] ss:$8 sps:$4 sm:$0xff]   ;;  %v8770_v14 = vld [vmem:[%s11834_s28 + $0x270] ss:$8 sps:$4 sm:$0xff]   ;;  %v8775_v15 = vld [vmem:[%s11834_s28 + $0x284] ss:$8 sps:$4 sm:$0xff]  }
 0x2ed   :  { %v8773_v16 = vld [vmem:[%s11834_s28 + $0x280] ss:$8 sps:$4 sm:$0xff]   ;;  %v8776_v18 = vld [vmem:[%s11834_s28 + $0x290] ss:$8 sps:$4 sm:$0xff]  }
 0x2ee   :  { %1137 = vmatprep.mubr.bf16.mxu1 %v911_v21  ;;  %v8779_v20 = vld [vmem:[%s11834_s28 + $0x2a0] ss:$8 sps:$4 sm:$0xff]   ;;  %v8784_v21 = vld [vmem:[%s11834_s28 + $0x2b4] ss:$8 sps:$4 sm:$0xff]  }
 0x2ef   :  { %1138 = vmatmul.mubr.bf16.vlgmr.msra.gmra.mrb[12].mxu1 %v910_v17  ;;  %v8778_v17 = vld [vmem:[%s11834_s28 + $0x294] ss:$8 sps:$4 sm:$0xff]  }
 0x2f0   :  { %1309 = vmatpush1.bf16.msra.mxu1 %v8701_v22  ;;  %1340 = vmatprep.mubr.bf16.mxu1 %v823_v24  ;;  %v9899_v27 = vpop.f32.mrb[16].mxu0  ;;  %v8782_v22 = vld [vmem:[%s11834_s28 + $0x2b0] ss:$8 sps:$4 sm:$0xff]   ;;  %v8787_v24 = vld [vmem:[%s11834_s28 + $0x2c4] ss:$8 sps:$4 sm:$0xff]  }
 0x2f1   :  { %1310 = vmatprep.subr.bf16.mxu1 %v8706_v25  ;;  %v9904_v29 = vpop.f32.mrb[17].mxu0  ;;  %v8785_v25 = vld [vmem:[%s11834_s28 + $0x2c0] ss:$8 sps:$4 sm:$0xff]  }
 0x2f2   :  { %v9906_v30 = vpop.f32.mrb[18].mxu0 }
 0x2f3   :  { %v1405_v31 = vpack.c.bf16 %v9906_v30, %v9899_v27  ;;  %v9910_v32 = vpop.f32.mrb[19].mxu0 }
 0x2f4   :  { %1311 = vmatpush1.bf16.msra.mxu1 %v8704_v26  ;;  %v1406_v34 = vpack.c.bf16 %v9910_v32, %v9904_v29  ;;  %v8790_v26 = vld [vmem:[%s11834_s28 + $0x2d4] ss:$8 sps:$4 sm:$0xff]   ;;  %v8793_v29 = vld [vmem:[%s11834_s28 + $0x2e4] ss:$8 sps:$4 sm:$0xff]   ;;  %v8791_v32 = vld [vmem:[%s11834_s28 + $0x2e0] ss:$8 sps:$4 sm:$0xff]  }
 0x2f5   :  { %1312 = vmatprep.subr.bf16.mxu1 %v8709_v28  ;;  %v8788_v28 = vld [vmem:[%s11834_s28 + $0x2d0] ss:$8 sps:$4 sm:$0xff]  }
 0x2f8   :  { %1313 = vmatpush1.bf16.msra.mxu1 %v8707_v33  ;;  %v8796_v33 = vld [vmem:[%s11834_s28 + $0x2f4] ss:$8 sps:$4 sm:$0xff]  }
 0x2f9   :  { %1314 = vmatprep.subr.bf16.mxu1 %v8712_v35  ;;  %v1647_v35 = vld [vmem:[%s11836_s7] sm:$0x3] }
 0x2fc   :  { %1315 = vmatpush1.bf16.msra.mxu1 %v8710_v36  ;;  %v1652_v36 = vrot.slane %v1647_v35, %v9762_v3 }
 0x2fd   :  { %1316 = vmatprep.subr.bf16.mxu1 %v8715_v37  ;;  %v1656_v37 = vrot.slane %v1647_v35, %v9767_v5 }
 0x300   :  { %1317 = vmatpush1.bf16.msra.mxu1 %v8713_v38 }
 0x301   :  { %1318 = vmatprep.subr.bf16.mxu1 %v8718_v39 }
 0x304   :  { %1319 = vmatpush1.bf16.msra.mxu1 %v8716_v40 }
 0x305   :  { %1320 = vmatprep.subr.bf16.mxu1 %v8721_v41 }
 0x308   :  { %1321 = vmatpush1.bf16.msra.mxu1 %v8719_v42 }
 0x309   :  { %1322 = vmatprep.subr.bf16.mxu1 %v8724_v43 }
 0x30c   :  { %1323 = vmatpush1.bf16.msra.mxu1 %v8722_v44 }
 0x30d   :  { %1324 = vmatprep.subr.bf16.mxu1 %v8727_v45 }
 0x310   :  { %1325 = vmatpush1.bf16.msra.mxu1 %v8725_v46 }
 0x311   :  { %1326 = vmatprep.subr.bf16.mxu1 %v8730_v47 }
 0x314   :  { %1327 = vmatpush1.bf16.msra.mxu1 %v8728_v48 }
 0x315   :  { %1328 = vmatprep.subr.bf16.mxu1 %v8733_v49  ;;  %v1669_v49 = vld [vmem:[%s11837_s9] sm:$0xf] }
 0x318   :  { %1329 = vmatpush1.bf16.msra.mxu1 %v8731_v50  ;;  %v7440_v50 = vld [vmem:[%s11837_s9 + $0x8] sm:$0xf] }
 0x319   :  { %1330 = vmatprep.subr.bf16.mxu1 %v8736_v51  ;;  %v8799_v51 = vld [vmem:[%s11838_s6 + $0x104] ss:$8 sps:$4 sm:$0xff]  }
 0x31c   :  { %1331 = vmatpush1.bf16.msra.mxu1 %v8734_v52  ;;  %v7342_v52 = vld [vmem:[%s11837_s9 + $0x4] sm:$0xf] }
 0x31d   :  { %1332 = vmatprep.subr.bf16.mxu1 %v8739_v53  ;;  %v8797_v53 = vld [vmem:[%s11838_s6 + $0x100] ss:$8 sps:$4 sm:$0xff]  }
 0x320   :  { %1333 = vmatpush1.bf16.msra.mxu1 %v8737_v54  ;;  %v8802_v54 = vld [vmem:[%s11838_s6 + $0x114] ss:$8 sps:$4 sm:$0xff]  }
 0x321   :  { %1334 = vmatprep.subr.bf16.mxu1 %v8742_v55  ;;  %v8800_v55 = vld [vmem:[%s11838_s6 + $0x110] ss:$8 sps:$4 sm:$0xff]  }
 0x324   :  { %1335 = vmatpush1.bf16.msra.mxu1 %v8740_v56  ;;  %v8805_v56 = vld [vmem:[%s11838_s6 + $0x124] ss:$8 sps:$4 sm:$0xff]  }
 0x325   :  { %1336 = vmatprep.subr.bf16.mxu1 %v8745_v57  ;;  %v8803_v57 = vld [vmem:[%s11838_s6 + $0x120] ss:$8 sps:$4 sm:$0xff]  }
 0x328   :  { %1337 = vmatpush1.bf16.msra.mxu1 %v8743_v58  ;;  %v8808_v58 = vld [vmem:[%s11838_s6 + $0x134] ss:$8 sps:$4 sm:$0xff]  }
 0x329   :  { %1338 = vmatprep.subr.bf16.mxu1 %v8748_v59  ;;  %v8806_v59 = vld [vmem:[%s11838_s6 + $0x130] ss:$8 sps:$4 sm:$0xff]  }
 0x32c   :  { %1339 = vmatpush1.bf16.msra.mxu1 %v8746_v60  ;;  %v8811_v60 = vld [vmem:[%s11838_s6 + $0x144] ss:$8 sps:$4 sm:$0xff]  }
 0x32d   :  { %1600 = vmatprep.subr.bf16.mxu1 %v8751_v61  ;;  %v8809_v61 = vld [vmem:[%s11838_s6 + $0x140] ss:$8 sps:$4 sm:$0xff]  }
 0x32f   :  { %1341 = vmatmul.mubr.bf16.vlgmr.msra.gmra.mrb[12].mxu1 %v822_v19  ;;  %v8781_v19 = vld [vmem:[%s11834_s28 + $0x2a4] ss:$8 sps:$4 sm:$0xff]  }
 0x330   :  { %1601 = vmatpush1.bf16.msra.mxu1 %v8749_v62  ;;  %1632 = vmatprep.mubr.bf16.mxu1 %v1406_v34  ;;  %v8794_v34 = vld [vmem:[%s11834_s28 + $0x2f0] ss:$8 sps:$4 sm:$0xff]   ;;  %v8814_v62 = vld [vmem:[%s11838_s6 + $0x154] ss:$8 sps:$4 sm:$0xff]  }
 0x331   :  { %1602 = vmatprep.subr.bf16.mxu1 %v8754_v63  ;;  %v8812_v63 = vld [vmem:[%s11838_s6 + $0x150] ss:$8 sps:$4 sm:$0xff]  }
 0x334   :  { %1603 = vmatpush1.bf16.msra.mxu1 %v8752_v0  ;;  %v8817_v0 = vld [vmem:[%s11838_s6 + $0x164] ss:$8 sps:$4 sm:$0xff]  }
 0x335   :  { %1604 = vmatprep.subr.bf16.mxu1 %v8757_v1  ;;  %v8815_v1 = vld [vmem:[%s11838_s6 + $0x160] ss:$8 sps:$4 sm:$0xff]  }
 0x338   :  { %1605 = vmatpush1.bf16.msra.mxu1 %v8755_v2  ;;  %v8820_v2 = vld [vmem:[%s11838_s6 + $0x174] ss:$8 sps:$4 sm:$0xff]  }
 0x339   :  { %1606 = vmatprep.subr.bf16.mxu1 %v8760_v4  ;;  %v8818_v4 = vld [vmem:[%s11838_s6 + $0x170] ss:$8 sps:$4 sm:$0xff]  }
 0x33c   :  { %1607 = vmatpush1.bf16.msra.mxu1 %v8758_v6  ;;  %v8823_v6 = vld [vmem:[%s11838_s6 + $0x184] ss:$8 sps:$4 sm:$0xff]  }
 0x33d   :  { %1608 = vmatprep.subr.bf16.mxu1 %v8763_v7  ;;  %v8821_v7 = vld [vmem:[%s11838_s6 + $0x180] ss:$8 sps:$4 sm:$0xff]  }
 0x340   :  { %1609 = vmatpush1.bf16.msra.mxu1 %v8761_v8  ;;  %v8826_v8 = vld [vmem:[%s11838_s6 + $0x194] ss:$8 sps:$4 sm:$0xff]  }
 0x341   :  { %1610 = vmatprep.subr.bf16.mxu1 %v8766_v9  ;;  %v8824_v9 = vld [vmem:[%s11838_s6 + $0x190] ss:$8 sps:$4 sm:$0xff]  }
 0x344   :  { %1611 = vmatpush1.bf16.msra.mxu1 %v8764_v10  ;;  %v8829_v10 = vld [vmem:[%s11838_s6 + $0x1a4] ss:$8 sps:$4 sm:$0xff]  }
 0x345   :  { %1612 = vmatprep.subr.bf16.mxu1 %v8769_v11  ;;  %v8827_v11 = vld [vmem:[%s11838_s6 + $0x1a0] ss:$8 sps:$4 sm:$0xff]  }
 0x348   :  { %1613 = vmatpush1.bf16.msra.mxu1 %v8767_v12  ;;  %v8832_v12 = vld [vmem:[%s11838_s6 + $0x1b4] ss:$8 sps:$4 sm:$0xff]  }
 0x349   :  { %1614 = vmatprep.subr.bf16.mxu1 %v8772_v13  ;;  %v8830_v13 = vld [vmem:[%s11838_s6 + $0x1b0] ss:$8 sps:$4 sm:$0xff]  }
 0x34c   :  { %1615 = vmatpush1.bf16.msra.mxu1 %v8770_v14  ;;  %v8835_v14 = vld [vmem:[%s11838_s6 + $0x1c4] ss:$8 sps:$4 sm:$0xff]  }
 0x34d   :  { %1616 = vmatprep.subr.bf16.mxu1 %v8775_v15  ;;  %v8833_v15 = vld [vmem:[%s11838_s6 + $0x1c0] ss:$8 sps:$4 sm:$0xff]  }
 0x350   :  { %1617 = vmatpush1.bf16.msra.mxu1 %v8773_v16  ;;  %v8838_v16 = vld [vmem:[%s11838_s6 + $0x1d4] ss:$8 sps:$4 sm:$0xff]  }
 0x351   :  { %1618 = vmatprep.subr.bf16.mxu1 %v8778_v17  ;;  %v8836_v17 = vld [vmem:[%s11838_s6 + $0x1d0] ss:$8 sps:$4 sm:$0xff]  }
 0x354   :  { %1619 = vmatpush1.bf16.msra.mxu1 %v8776_v18  ;;  %v8841_v18 = vld [vmem:[%s11838_s6 + $0x1e4] ss:$8 sps:$4 sm:$0xff]  }
 0x355   :  { %1620 = vmatprep.subr.bf16.mxu1 %v8781_v19  ;;  %v8839_v19 = vld [vmem:[%s11838_s6 + $0x1e0] ss:$8 sps:$4 sm:$0xff]  }
 0x358   :  { %1621 = vmatpush1.bf16.msra.mxu1 %v8779_v20  ;;  %v8844_v20 = vld [vmem:[%s11838_s6 + $0x1f4] ss:$8 sps:$4 sm:$0xff]  }
 0x359   :  { %1622 = vmatprep.subr.bf16.mxu1 %v8784_v21  ;;  %v8842_v21 = vld [vmem:[%s11838_s6 + $0x1f0] ss:$8 sps:$4 sm:$0xff]  }
 0x35c   :  { %1623 = vmatpush1.bf16.msra.mxu1 %v8782_v22  ;;  %v8847_v22 = vld [vmem:[%s11838_s6 + $0x4] ss:$8 sps:$4 sm:$0xff]  }
 0x35d   :  { %1624 = vmatprep.subr.bf16.mxu1 %v8787_v24 }
 0x360   :  { %1625 = vmatpush1.bf16.msra.mxu1 %v8785_v25 }
 0x361   :  { %1626 = vmatprep.subr.bf16.mxu1 %v8790_v26 }
 0x364   :  { %1627 = vmatpush1.bf16.msra.mxu1 %v8788_v28 }
 0x365   :  { %1628 = vmatprep.subr.bf16.mxu1 %v8793_v29 }
 0x368   :  { %1629 = vmatpush1.bf16.msra.mxu1 %v8791_v32 }
 0x369   :  { %1630 = vmatprep.subr.bf16.mxu1 %v8796_v33 }
 0x36c   :  { %1631 = vmatpush1.bf16.msra.mxu1 %v8794_v34 }
 0x36f   :  { %1633 = vmatmul.mubr.bf16.vlgmr.msra.gmra.mrb[12].mxu1 %v1405_v31 }
 0x370   :  { %2269 = vmatprep.mubr.bf16.mxu1 %v9466_v23 }
 0x442   :  { %v1634_v38 = vpop.f32.mrb[12].mxu1 }
 0x443   :  { %v1659_v39 = vadd.f32 %v1652_v36, %v1634_v38  ;;  %v1636_v40 = vpop.f32.mrb[13].mxu1 }
 0x444   :  { %v1660_v41 = vadd.f32 %v1656_v37, %v1636_v40  ;;  %v1638_v42 = vpop.f32.mrb[14].mxu1 }
 0x445   :  { %v1661_v43 = vadd.f32 %v1652_v36, %v1638_v42  ;;  %v1640_v44 = vpop.f32.mrb[15].mxu1  ;;  %v1663_v27 = vmax.f32 %v1659_v39, 0.0  ;;  %v8845_v39 = vld [vmem:[%s11838_s6] ss:$8 sps:$4 sm:$0xff]   ;;  %v8850_v42 = vld [vmem:[%s11838_s6 + $0x14] ss:$8 sps:$4 sm:$0xff]  }
 0x446   :  { %v1662_v45 = vadd.f32 %v1656_v37, %v1640_v44  ;;  %v1664_v31 = vmax.f32 %v1660_v41, 0.0  ;;  %v8848_v44 = vld [vmem:[%s11838_s6 + $0x10] ss:$8 sps:$4 sm:$0xff]  }
 0x447   :  { %v1665_v30 = vmax.f32 %v1661_v43, 0.0 }
 0x448   :  { %v1666_v46 = vmax.f32 %v1662_v45, 0.0  ;;  %v8853_v45 = vld [vmem:[%s11838_s6 + $0x24] ss:$8 sps:$4 sm:$0xff]  }
 0x449   :  { %v1667_v47 = vpack.c.bf16 %v1665_v30, %v1663_v27  ;;  %v8851_v27 = vld [vmem:[%s11838_s6 + $0x20] ss:$8 sps:$4 sm:$0xff]   ;;  %v8856_v30 = vld [vmem:[%s11838_s6 + $0x34] ss:$8 sps:$4 sm:$0xff]  }
 0x44a   :  { %v1668_v48 = vpack.c.bf16 %v1666_v46, %v1664_v31  ;;  %v8854_v31 = vld [vmem:[%s11838_s6 + $0x30] ss:$8 sps:$4 sm:$0xff]   ;;  %v8859_v46 = vld [vmem:[%s11838_s6 + $0x44] ss:$8 sps:$4 sm:$0xff]  }
 0x44c   :  { %1674 = vmatprep.subr.bf16.mxu0 %v1668_v48  ;;  %2237 = vmatprep.subr.bf16.mxu1 %v1668_v48 }
 0x44d   :  { %1675 = vmatpush1.bf16.msra.mxu0 %v1667_v47  ;;  %2238 = vmatpush1.bf16.msra.mxu1 %v1667_v47 }
 0x44e   :  { %1754 = vmatprep.subr.bf16.mxu0 %v1668_v48  ;;  %v8862_v48 = vld [vmem:[%s11838_s6 + $0x54] ss:$8 sps:$4 sm:$0xff]  }
 0x450   :  { %7341 = vmatmul.mubr.msk.bf16.vlgmr.msra.gmra.mrb[20].mxu0 %vm1670_vm3, %v1669_v49  ;;  %7441 = vmatmul.mubr.msk.bf16.vlgmr.msra.gmra.mrb[16].mxu1 %vm1670_vm3, %v7440_v50  ;;  %v8860_v49 = vld [vmem:[%s11838_s6 + $0x50] ss:$8 sps:$4 sm:$0xff]   ;;  %v8865_v50 = vld [vmem:[%s11838_s6 + $0x64] ss:$8 sps:$4 sm:$0xff]  }
 0x451   :  { %1755 = vmatpush1.bf16.msra.mxu0 %v1667_v47  ;;  %1786 = vmatprep.mubr.bf16.mxu0 %v9466_v23  ;;  %v8857_v47 = vld [vmem:[%s11838_s6 + $0x40] ss:$8 sps:$4 sm:$0xff]  }
 0x452   :  { %1990 = vmatprep.subr.bf16.mxu0 %v8799_v51  ;;  %2576 = vmatprep.mubr.bf16.mxu1 %v9466_v23  ;;  %v8863_v51 = vld [vmem:[%s11838_s6 + $0x60] ss:$8 sps:$4 sm:$0xff]  }
 0x458   :  { %7343 = vmatmul.mubr.msk.bf16.vlgmr.msra.gmra.mrb[24].mxu0 %vm1670_vm3, %v7342_v52  ;;  %v8868_v52 = vld [vmem:[%s11838_s6 + $0x74] ss:$8 sps:$4 sm:$0xff]  }
 0x459   :  { %1991 = vmatpush1.bf16.msra.mxu0 %v8797_v53  ;;  %v8866_v53 = vld [vmem:[%s11838_s6 + $0x70] ss:$8 sps:$4 sm:$0xff]  }
 0x45a   :  { %1992 = vmatprep.subr.bf16.mxu0 %v8802_v54  ;;  %v8871_v54 = vld [vmem:[%s11838_s6 + $0x84] ss:$8 sps:$4 sm:$0xff]  }
 0x45d   :  { %1993 = vmatpush1.bf16.msra.mxu0 %v8800_v55  ;;  %v8869_v55 = vld [vmem:[%s11838_s6 + $0x80] ss:$8 sps:$4 sm:$0xff]  }
 0x45e   :  { %1994 = vmatprep.subr.bf16.mxu0 %v8805_v56  ;;  %v8874_v56 = vld [vmem:[%s11838_s6 + $0x94] ss:$8 sps:$4 sm:$0xff]  }
 0x461   :  { %1995 = vmatpush1.bf16.msra.mxu0 %v8803_v57  ;;  %v8872_v57 = vld [vmem:[%s11838_s6 + $0x90] ss:$8 sps:$4 sm:$0xff]  }
 0x462   :  { %1996 = vmatprep.subr.bf16.mxu0 %v8808_v58  ;;  %v8877_v58 = vld [vmem:[%s11838_s6 + $0xa4] ss:$8 sps:$4 sm:$0xff]  }
 0x465   :  { %1997 = vmatpush1.bf16.msra.mxu0 %v8806_v59  ;;  %v8875_v59 = vld [vmem:[%s11838_s6 + $0xa0] ss:$8 sps:$4 sm:$0xff]  }
 0x466   :  { %1998 = vmatprep.subr.bf16.mxu0 %v8811_v60  ;;  %v8880_v60 = vld [vmem:[%s11838_s6 + $0xb4] ss:$8 sps:$4 sm:$0xff]  }
 0x469   :  { %1999 = vmatpush1.bf16.msra.mxu0 %v8809_v61  ;;  %v8878_v61 = vld [vmem:[%s11838_s6 + $0xb0] ss:$8 sps:$4 sm:$0xff]  }
 0x46a   :  { %2000 = vmatprep.subr.bf16.mxu0 %v8814_v62  ;;  %v8883_v62 = vld [vmem:[%s11838_s6 + $0xc4] ss:$8 sps:$4 sm:$0xff]  }
 0x46d   :  { %2001 = vmatpush1.bf16.msra.mxu0 %v8812_v63  ;;  %v8881_v63 = vld [vmem:[%s11838_s6 + $0xc0] ss:$8 sps:$4 sm:$0xff]  }
 0x46e   :  { %2002 = vmatprep.subr.bf16.mxu0 %v8817_v0  ;;  %v8886_v0 = vld [vmem:[%s11838_s6 + $0xd4] ss:$8 sps:$4 sm:$0xff]  }
 0x471   :  { %2003 = vmatpush1.bf16.msra.mxu0 %v8815_v1  ;;  %v8884_v1 = vld [vmem:[%s11838_s6 + $0xd0] ss:$8 sps:$4 sm:$0xff]  }
 0x472   :  { %2004 = vmatprep.subr.bf16.mxu0 %v8820_v2  ;;  %v8889_v2 = vld [vmem:[%s11838_s6 + $0xe4] ss:$8 sps:$4 sm:$0xff]  }
 0x475   :  { %2005 = vmatpush1.bf16.msra.mxu0 %v8818_v4  ;;  %v8887_v4 = vld [vmem:[%s11838_s6 + $0xe0] ss:$8 sps:$4 sm:$0xff]  }
 0x476   :  { %2006 = vmatprep.subr.bf16.mxu0 %v8823_v6  ;;  %v8892_v6 = vld [vmem:[%s11838_s6 + $0xf4] ss:$8 sps:$4 sm:$0xff]  }
 0x479   :  { %2007 = vmatpush1.bf16.msra.mxu0 %v8821_v7  ;;  %v8890_v7 = vld [vmem:[%s11838_s6 + $0xf0] ss:$8 sps:$4 sm:$0xff]  }
 0x47a   :  { %2008 = vmatprep.subr.bf16.mxu0 %v8826_v8  ;;  %v8895_v8 = vld [vmem:[%s11838_s6 + $0x204] ss:$8 sps:$4 sm:$0xff]  }
 0x47d   :  { %2009 = vmatpush1.bf16.msra.mxu0 %v8824_v9  ;;  %v8893_v9 = vld [vmem:[%s11838_s6 + $0x200] ss:$8 sps:$4 sm:$0xff]  }
 0x47e   :  { %2010 = vmatprep.subr.bf16.mxu0 %v8829_v10 }
 0x481   :  { %2011 = vmatpush1.bf16.msra.mxu0 %v8827_v11 }
 0x482   :  { %2012 = vmatprep.subr.bf16.mxu0 %v8832_v12  ;;  %v8898_v12 = vld [vmem:[%s11838_s6 + $0x214] ss:$8 sps:$4 sm:$0xff]  }
 0x485   :  { %2013 = vmatpush1.bf16.msra.mxu0 %v8830_v13  ;;  %v8896_v13 = vld [vmem:[%s11838_s6 + $0x210] ss:$8 sps:$4 sm:$0xff]  }
 0x486   :  { %2014 = vmatprep.subr.bf16.mxu0 %v8835_v14  ;;  %v8901_v14 = vld [vmem:[%s11838_s6 + $0x224] ss:$8 sps:$4 sm:$0xff]  }
 0x489   :  { %2015 = vmatpush1.bf16.msra.mxu0 %v8833_v15  ;;  %v8899_v15 = vld [vmem:[%s11838_s6 + $0x220] ss:$8 sps:$4 sm:$0xff]  }
 0x48a   :  { %2016 = vmatprep.subr.bf16.mxu0 %v8838_v16  ;;  %v8904_v16 = vld [vmem:[%s11838_s6 + $0x234] ss:$8 sps:$4 sm:$0xff]  }
 0x48d   :  { %2017 = vmatpush1.bf16.msra.mxu0 %v8836_v17  ;;  %v8902_v17 = vld [vmem:[%s11838_s6 + $0x230] ss:$8 sps:$4 sm:$0xff]  }
 0x48e   :  { %2018 = vmatprep.subr.bf16.mxu0 %v8841_v18  ;;  %v8907_v18 = vld [vmem:[%s11838_s6 + $0x244] ss:$8 sps:$4 sm:$0xff]  }
 0x491   :  { %2019 = vmatpush1.bf16.msra.mxu0 %v8839_v19  ;;  %v8905_v19 = vld [vmem:[%s11838_s6 + $0x240] ss:$8 sps:$4 sm:$0xff]  }
 0x492   :  { %2020 = vmatprep.subr.bf16.mxu0 %v8844_v20  ;;  %v8910_v20 = vld [vmem:[%s11838_s6 + $0x254] ss:$8 sps:$4 sm:$0xff]  }
 0x495   :  { %2021 = vmatpush1.bf16.msra.mxu0 %v8842_v21  ;;  %v8908_v21 = vld [vmem:[%s11838_s6 + $0x250] ss:$8 sps:$4 sm:$0xff]  }
 0x496   :  { %2191 = vmatprep.subr.bf16.mxu0 %v8847_v22  ;;  %v8913_v22 = vld [vmem:[%s11838_s6 + $0x264] ss:$8 sps:$4 sm:$0xff]  }
 0x523   :  { %v10216_v24 = vpop.f32.mrb[20].mxu0  ;;  %v10218_v28 = vpop.f32.mrb[16].mxu1 }
 0x524   :  { %v1710_v25 = vpop.f32.mrb[21].mxu0  ;;  %v10220_v32 = vpop.f32.mrb[17].mxu1  ;;  %v1715_v11 = vpack.c.bf16 %v10216_v24, %v10216_v24  ;;  %v8911_v24 = vld [vmem:[%s11838_s6 + $0x260] ss:$8 sps:$4 sm:$0xff]  }
 0x525   :  { %v1712_v26 = vpop.f32.mrb[22].mxu0  ;;  %v2275_v33 = vpop.f32.mrb[18].mxu1  ;;  %v1716_v43 = vpack.c.bf16 %v1710_v25, %v1710_v25  ;;  %v2279_v10 = vpack.c.bf16 %v10220_v32, %v10220_v32  ;;  %v8916_v25 = vld [vmem:[%s11838_s6 + $0x274] ss:$8 sps:$4 sm:$0xff]   ;;  %v8917_v32 = vld [vmem:[%s11838_s6 + $0x280] ss:$8 sps:$4 sm:$0xff]  }
 0x526   :  { %v1713_v29 = vpop.f32.mrb[23].mxu0  ;;  %v2276_v34 = vpop.f32.mrb[19].mxu1  ;;  %v8914_v26 = vld [vmem:[%s11838_s6 + $0x270] ss:$8 sps:$4 sm:$0xff]   ;;  %v8922_v33 = vld [vmem:[%s11838_s6 + $0x294] ss:$8 sps:$4 sm:$0xff]  }
 0x527   :  { %v8919_v29 = vld [vmem:[%s11838_s6 + $0x284] ss:$8 sps:$4 sm:$0xff]   ;;  %v8920_v34 = vld [vmem:[%s11838_s6 + $0x290] ss:$8 sps:$4 sm:$0xff]  }
 0x52b   :  { %v1788_v35 = vpop.f32.mrb[24].mxu0 }
 0x52c   :  { %v1790_v36 = vpop.f32.mrb[25].mxu0  ;;  %v1795_v40 = vpack.c.bf16 %v1788_v35, %v1788_v35  ;;  %v8925_v35 = vld [vmem:[%s11838_s6 + $0x2a4] ss:$8 sps:$4 sm:$0xff]  }
 0x52d   :  { %v1796_v37 = vpack.c.bf16 %v1790_v36, %v1790_v36  ;;  %v1792_v38 = vpop.f32.mrb[26].mxu0  ;;  %v8923_v36 = vld [vmem:[%s11838_s6 + $0x2a0] ss:$8 sps:$4 sm:$0xff]  }
 0x52e   :  { %v1793_v41 = vpop.f32.mrb[27].mxu0  ;;  %v8926_v38 = vld [vmem:[%s11838_s6 + $0x2b0] ss:$8 sps:$4 sm:$0xff]  }
 0x52f   :  { %2022 = vmatprep.mubr.bf16.mxu0 %v1796_v37  ;;  %v8928_v37 = vld [vmem:[%s11838_s6 + $0x2b4] ss:$8 sps:$4 sm:$0xff]  }
 0x530   :  { %2023 = vmatmul.mubr.bf16.vlgmr.msra.gmra.mrb[28].mxu0 %v1795_v40  ;;  %v8929_v40 = vld [vmem:[%s11838_s6 + $0x2c0] ss:$8 sps:$4 sm:$0xff]   ;;  %v8934_v41 = vld [vmem:[%s11838_s6 + $0x2d4] ss:$8 sps:$4 sm:$0xff]  }
 0x531   :  { %2192 = vmatpush1.bf16.msra.mxu0 %v8845_v39  ;;  %2223 = vmatprep.mubr.bf16.mxu0 %v1716_v43  ;;  %v8931_v39 = vld [vmem:[%s11838_s6 + $0x2c4] ss:$8 sps:$4 sm:$0xff]  }
 0x532   :  { %2193 = vmatprep.subr.bf16.mxu0 %v8850_v42  ;;  %v8932_v42 = vld [vmem:[%s11838_s6 + $0x2d0] ss:$8 sps:$4 sm:$0xff]   ;;  %v8937_v43 = vld [vmem:[%s11838_s6 + $0x2e4] ss:$8 sps:$4 sm:$0xff]  }
 0x535   :  { %2194 = vmatpush1.bf16.msra.mxu0 %v8848_v44  ;;  %v8935_v44 = vld [vmem:[%s11838_s6 + $0x2e0] ss:$8 sps:$4 sm:$0xff]  }
 0x536   :  { %2195 = vmatprep.subr.bf16.mxu0 %v8853_v45  ;;  %v8940_v45 = vld [vmem:[%s11838_s6 + $0x2f4] ss:$8 sps:$4 sm:$0xff]  }
 0x539   :  { %2196 = vmatpush1.bf16.msra.mxu0 %v8851_v27  ;;  %v8938_v27 = vld [vmem:[%s11838_s6 + $0x2f0] ss:$8 sps:$4 sm:$0xff]  }
 0x53a   :  { %2197 = vmatprep.subr.bf16.mxu0 %v8856_v30  ;;  %v2278_v30 = vpack.c.bf16 %v10218_v28, %v10218_v28 }
 0x53d   :  { %2198 = vmatpush1.bf16.msra.mxu0 %v8854_v31 }
 0x53e   :  { %2199 = vmatprep.subr.bf16.mxu0 %v8859_v46 }
 0x541   :  { %2200 = vmatpush1.bf16.msra.mxu0 %v8857_v47 }
 0x542   :  { %2201 = vmatprep.subr.bf16.mxu0 %v8862_v48 }
 0x545   :  { %2202 = vmatpush1.bf16.msra.mxu0 %v8860_v49 }
 0x546   :  { %2203 = vmatprep.subr.bf16.mxu0 %v8865_v50 }
 0x549   :  { %2204 = vmatpush1.bf16.msra.mxu0 %v8863_v51 }
 0x54a   :  { %2205 = vmatprep.subr.bf16.mxu0 %v8868_v52 }
 0x54d   :  { %2206 = vmatpush1.bf16.msra.mxu0 %v8866_v53 }
 0x54e   :  { %2207 = vmatprep.subr.bf16.mxu0 %v8871_v54 }
 0x551   :  { %2208 = vmatpush1.bf16.msra.mxu0 %v8869_v55  ;;  %v2516_v55 = vld [vmem:[%s11839_s29] sm:$0x3] }
 0x552   :  { %2209 = vmatprep.subr.bf16.mxu0 %v8874_v56  ;;  %v2521_v56 = vrot.slane %v2516_v55, %v9762_v3 }
 0x555   :  { %2210 = vmatpush1.bf16.msra.mxu0 %v8872_v57  ;;  %v2525_v57 = vrot.slane %v2516_v55, %v9767_v5 }
 0x556   :  { %2211 = vmatprep.subr.bf16.mxu0 %v8877_v58 }
 0x559   :  { %2212 = vmatpush1.bf16.msra.mxu0 %v8875_v59 }
 0x55a   :  { %2213 = vmatprep.subr.bf16.mxu0 %v8880_v60 }
 0x55d   :  { %2214 = vmatpush1.bf16.msra.mxu0 %v8878_v61 }
 0x55e   :  { %2215 = vmatprep.subr.bf16.mxu0 %v8883_v62 }
 0x561   :  { %2216 = vmatpush1.bf16.msra.mxu0 %v8881_v63 }
 0x562   :  { %2217 = vmatprep.subr.bf16.mxu0 %v8886_v0 }
 0x565   :  { %2218 = vmatpush1.bf16.msra.mxu0 %v8884_v1 }
 0x566   :  { %2219 = vmatprep.subr.bf16.mxu0 %v8889_v2 }
 0x569   :  { %2220 = vmatpush1.bf16.msra.mxu0 %v8887_v4 }
 0x56a   :  { %2221 = vmatprep.subr.bf16.mxu0 %v8892_v6  ;;  %v2532_v6 = vld [vmem:[%s11840_s1] sm:$0x1] }
 0x56d   :  { %2222 = vmatpush1.bf16.msra.mxu0 %v8890_v7  ;;  %v7575_v7 = vld [vmem:[%s11840_s1 + $0x2] sm:$0x1] }
 0x56e   :  { %2473 = vmatprep.subr.bf16.mxu0 %v8895_v8  ;;  %v8941_v8 = vld [vmem:[%s11795_s11 + $0xc0] sm:$0xff]  }
 0x570   :  { %2224 = vmatmul.mubr.bf16.vlgmr.msra.gmra.mrb[32].mxu0 %v1715_v11  ;;  %v8943_v11 = vld [vmem:[%s11795_s11 + $0xc8] sm:$0xff]  }
 0x571   :  { %2474 = vmatpush1.bf16.msra.mxu0 %v8893_v9  ;;  %2505 = vmatprep.mubr.bf16.mxu0 %v2279_v10  ;;  %v7508_v9 = vld [vmem:[%s11840_s1 + $0x1] sm:$0x1] }
 0x572   :  { %2475 = vmatprep.subr.bf16.mxu0 %v8898_v12  ;;  %v8942_v10 = vld [vmem:[%s11795_s11 + $0x80] sm:$0xff]   ;;  %v8944_v12 = vld [vmem:[%s11795_s11 + $0x88] sm:$0xff]  }
 0x575   :  { %2476 = vmatpush1.bf16.msra.mxu0 %v8896_v13  ;;  %v8945_v13 = vld [vmem:[%s11795_s11 + $0xd0] sm:$0xff]  }
 0x576   :  { %2477 = vmatprep.subr.bf16.mxu0 %v8901_v14  ;;  %v8946_v14 = vld [vmem:[%s11795_s11 + $0x90] sm:$0xff]  }
 0x579   :  { %2478 = vmatpush1.bf16.msra.mxu0 %v8899_v15  ;;  %v8947_v15 = vld [vmem:[%s11795_s11 + $0xd8] sm:$0xff]  }
 0x57a   :  { %2479 = vmatprep.subr.bf16.mxu0 %v8904_v16  ;;  %v8948_v16 = vld [vmem:[%s11795_s11 + $0x98] sm:$0xff]  }
 0x57d   :  { %2480 = vmatpush1.bf16.msra.mxu0 %v8902_v17  ;;  %v8949_v17 = vld [vmem:[%s11795_s11 + $0xe0] sm:$0xff]  }
 0x57e   :  { %2481 = vmatprep.subr.bf16.mxu0 %v8907_v18  ;;  %v8950_v18 = vld [vmem:[%s11795_s11 + $0xa0] sm:$0xff]  }
 0x581   :  { %2482 = vmatpush1.bf16.msra.mxu0 %v8905_v19  ;;  %v8951_v19 = vld [vmem:[%s11795_s11 + $0xe8] sm:$0xff]  }
 0x582   :  { %2483 = vmatprep.subr.bf16.mxu0 %v8910_v20  ;;  %v8952_v20 = vld [vmem:[%s11795_s11 + $0xa8] sm:$0xff]  }
 0x585   :  { %2484 = vmatpush1.bf16.msra.mxu0 %v8908_v21  ;;  %v8953_v21 = vld [vmem:[%s11795_s11 + $0xf0] sm:$0xff]  }
 0x586   :  { %2485 = vmatprep.subr.bf16.mxu0 %v8913_v22  ;;  %v8954_v22 = vld [vmem:[%s11795_s11 + $0xb0] sm:$0xff]  }
 0x589   :  { %2486 = vmatpush1.bf16.msra.mxu0 %v8911_v24  ;;  %v8955_v24 = vld [vmem:[%s11795_s11 + $0xf8] sm:$0xff]  }
 0x58a   :  { %2487 = vmatprep.subr.bf16.mxu0 %v8916_v25  ;;  %v8956_v25 = vld [vmem:[%s11795_s11 + $0xb8] sm:$0xff]  }
 0x58d   :  { %2488 = vmatpush1.bf16.msra.mxu0 %v8914_v26  ;;  %v8957_v26 = vld [vmem:[%s11795_s11 + $0x40] sm:$0xff]  }
 0x58e   :  { %2489 = vmatprep.subr.bf16.mxu0 %v8919_v29  ;;  %v8959_v29 = vld [vmem:[%s11795_s11 + $0x140] sm:$0xff]  }
 0x591   :  { %2490 = vmatpush1.bf16.msra.mxu0 %v8917_v32  ;;  %v8960_v32 = vld [vmem:[%s11795_s11 + $0x100] sm:$0xff]  }
 0x592   :  { %2491 = vmatprep.subr.bf16.mxu0 %v8922_v33  ;;  %v8963_v33 = vld [vmem:[%s11795_s11 + $0x148] sm:$0xff]  }
 0x595   :  { %2492 = vmatpush1.bf16.msra.mxu0 %v8920_v34  ;;  %v8964_v34 = vld [vmem:[%s11795_s11 + $0x108] sm:$0xff]  }
 0x596   :  { %2493 = vmatprep.subr.bf16.mxu0 %v8925_v35  ;;  %v8967_v35 = vld [vmem:[%s11795_s11 + $0x150] sm:$0xff]  }
 0x599   :  { %2494 = vmatpush1.bf16.msra.mxu0 %v8923_v36  ;;  %v8968_v36 = vld [vmem:[%s11795_s11 + $0x110] sm:$0xff]  }
 0x59a   :  { %2495 = vmatprep.subr.bf16.mxu0 %v8928_v37  ;;  %v8971_v37 = vld [vmem:[%s11795_s11 + $0x158] sm:$0xff]  }
 0x59d   :  { %2496 = vmatpush1.bf16.msra.mxu0 %v8926_v38  ;;  %v8972_v38 = vld [vmem:[%s11795_s11 + $0x118] sm:$0xff]  }
 0x59e   :  { %2497 = vmatprep.subr.bf16.mxu0 %v8931_v39  ;;  %v8975_v39 = vld [vmem:[%s11795_s11 + $0x160] sm:$0xff]  }
 0x5a1   :  { %2498 = vmatpush1.bf16.msra.mxu0 %v8929_v40  ;;  %v8976_v40 = vld [vmem:[%s11795_s11 + $0x120] sm:$0xff]  }
 0x5a2   :  { %2499 = vmatprep.subr.bf16.mxu0 %v8934_v41  ;;  %v8979_v41 = vld [vmem:[%s11795_s11 + $0x168] sm:$0xff]  }
 0x5a5   :  { %2500 = vmatpush1.bf16.msra.mxu0 %v8932_v42  ;;  %v8980_v42 = vld [vmem:[%s11795_s11 + $0x128] sm:$0xff]  }
 0x5a6   :  { %2501 = vmatprep.subr.bf16.mxu0 %v8937_v43  ;;  %v8983_v43 = vld [vmem:[%s11795_s11 + $0x170] sm:$0xff]  }
 0x5a9   :  { %2502 = vmatpush1.bf16.msra.mxu0 %v8935_v44  ;;  %v8984_v44 = vld [vmem:[%s11795_s11 + $0x130] sm:$0xff]  }
 0x5aa   :  { %2503 = vmatprep.subr.bf16.mxu0 %v8940_v45  ;;  %v8987_v45 = vld [vmem:[%s11795_s11 + $0x178] sm:$0xff]  }
 0x5ad   :  { %2504 = vmatpush1.bf16.msra.mxu0 %v8938_v27  ;;  %v8988_v27 = vld [vmem:[%s11795_s11 + $0x138] sm:$0xff]  }
 0x5b0   :  { %2506 = vmatmul.mubr.bf16.vlgmr.msra.gmra.mrb[36].mxu0 %v2278_v30 }
 0x5b1   :  { %3009 = vmatprep.mubr.bf16.mxu0 %v9466_v23 }
 0x603   :  { %v2024_v31 = vpop.f32.mrb[28].mxu0 }
 0x604   :  { %v2026_v46 = vpop.f32.mrb[29].mxu0 }
 0x605   :  { %v2028_v47 = vpop.f32.mrb[30].mxu0 }
 0x606   :  { %v2029_v48 = vpop.f32.mrb[31].mxu0 }
 0x643   :  { %v2225_v49 = vpop.f32.mrb[32].mxu0 }
 0x644   :  { %v2226_v50 = vadd.f32 %v2225_v49, %v2024_v31  ;;  %v2227_v51 = vpop.f32.mrb[33].mxu0 }
 0x645   :  { %v2228_v52 = vadd.f32 %v2227_v51, %v2026_v46  ;;  %v2229_v53 = vpop.f32.mrb[34].mxu0 }
 0x646   :  { %v2230_v54 = vpop.f32.mrb[35].mxu0 }
 0x683   :  { %v2507_v28 = vpop.f32.mrb[36].mxu0 }
 0x684   :  { %v2514_v58 = vadd.f32 %v2507_v28, %v2226_v50  ;;  %v2509_v59 = vpop.f32.mrb[37].mxu0 }
 0x685   :  { %v2515_v60 = vadd.f32 %v2509_v59, %v2228_v52  ;;  %v2511_v61 = vpop.f32.mrb[38].mxu0 }
 0x686   :  { %v2528_v62 = vadd.f32 %v2521_v56, %v2514_v58  ;;  %v2512_v63 = vpop.f32.mrb[39].mxu0 }
 0x687   :  { %v2529_v0 = vadd.f32 %v2525_v57, %v2515_v60  ;;  %v8958_v57 = vld [vmem:[%s11795_s11] sm:$0xff]   ;;  %v8961_v60 = vld [vmem:[%s11795_s11 + $0x48] sm:$0xff]   ;;  %v8965_v63 = vld [vmem:[%s11795_s11 + $0x50] sm:$0xff]  }
 0x688   :  { %v2530_v1 = vpack.c.bf16 %v2528_v62, %v2528_v62  ;;  %v8962_v62 = vld [vmem:[%s11795_s11 + $0x8] sm:$0xff]  }
 0x689   :  { %v10423_v2 = vpack.c.bf16 %v2529_v0, %v2529_v0  ;;  %v8966_v0 = vld [vmem:[%s11795_s11 + $0x10] sm:$0xff]  }
 0x68a   :  { %v10426_v4 = vsel %vm2537_vm4, %v2530_v1, 0  ;;  %v8969_v1 = vld [vmem:[%s11795_s11 + $0x58] sm:$0xff]  }
 0x68b   :  { %7506 = vmatprep.subr.msk.bf16.mxu1 %vm2537_vm4, %v10423_v2  ;;  %7576 = vmatprep.subr.msk.bf16.mxu0 %vm2537_vm4, %v10423_v2 }
 0x68c   :  { %2545 = vmatpush1.bf16.msra.mxu1 %v10426_v4  ;;  %2978 = vmatpush1.bf16.msra.mxu0 %v10426_v4 }
 0x68d   :  { %7509 = vmatprep.subr.msk.bf16.mxu1 %vm2537_vm4, %v10423_v2  ;;  %8329 = vmatprep.subr.bf16.mxu0 %v8959_v29  ;;  %v9000_v29 = vld [vmem:[%s11795_s11 + $0x1a8] sm:$0xff]  }
 0x68f   :  { %7507 = vmatmul.mubr.msk.bf16.vlgmr.msra.gmra.mrb[20].mxu1 %vm2533_vm5, %v2532_v6  ;;  %7577 = vmatmul.mubr.msk.bf16.vlgmr.msra.gmra.mrb[40].mxu0 %vm2533_vm5, %v7575_v7  ;;  %v8970_v6 = vld [vmem:[%s11795_s11 + $0x18] sm:$0xff]   ;;  %v8973_v7 = vld [vmem:[%s11795_s11 + $0x60] sm:$0xff]  }
 0x690   :  { %2625 = vmatpush1.bf16.msra.mxu1 %v10426_v4  ;;  %2656 = vmatprep.mubr.bf16.mxu1 %v9466_v23 }
 0x691   :  { %8285 = vmatprep.subr.bf16.mxu1 %v8941_v8  ;;  %8330 = vmatpush3.bf16.msra.mxu0 %v8960_v32  ;;  %v8974_v8 = vld [vmem:[%s11795_s11 + $0x20] sm:$0xff]   ;;  %v9001_v32 = vld [vmem:[%s11795_s11 + $0x1f0] sm:$0xff]  }
 0x692   :  { %8331 = vmatprep.subr.bf16.mxu0 %v8963_v33  ;;  %v9002_v33 = vld [vmem:[%s11795_s11 + $0x1b0] sm:$0xff]  }
 0x695   :  { %8332 = vmatpush3.bf16.msra.mxu0 %v8964_v34  ;;  %v9003_v34 = vld [vmem:[%s11795_s11 + $0x1f8] sm:$0xff]  }
 0x696   :  { %8333 = vmatprep.subr.bf16.mxu0 %v8967_v35  ;;  %v9004_v35 = vld [vmem:[%s11795_s11 + $0x1b8] sm:$0xff]  }
 0x697   :  { %7510 = vmatmul.mubr.msk.bf16.vlgmr.msra.gmra.mrb[24].mxu1 %vm2533_vm5, %v7508_v9  ;;  %v8977_v9 = vld [vmem:[%s11795_s11 + $0x68] sm:$0xff]  }
 0x698   :  { %8286 = vmatpush3.bf16.msra.mxu1 %v8942_v10  ;;  %v8978_v10 = vld [vmem:[%s11795_s11 + $0x28] sm:$0xff]  }
 0x699   :  { %8287 = vmatprep.subr.bf16.mxu1 %v8943_v11  ;;  %8334 = vmatpush3.bf16.msra.mxu0 %v8968_v36  ;;  %v8981_v11 = vld [vmem:[%s11795_s11 + $0x70] sm:$0xff]   ;;  %v9005_v36 = vld [vmem:[%s11798_s14] ss:$8 sps:$4 sm:$0xff]  }
 0x69a   :  { %8335 = vmatprep.subr.bf16.mxu0 %v8971_v37  ;;  %v9007_v37 = vld [vmem:[%s11798_s14 + $0x4] ss:$8 sps:$4 sm:$0xff]  }
 0x69c   :  { %8288 = vmatpush3.bf16.msra.mxu1 %v8944_v12  ;;  %v8982_v12 = vld [vmem:[%s11795_s11 + $0x30] sm:$0xff]  }
 0x69d   :  { %8289 = vmatprep.subr.bf16.mxu1 %v8945_v13  ;;  %8336 = vmatpush3.bf16.msra.mxu0 %v8972_v38  ;;  %v8985_v13 = vld [vmem:[%s11795_s11 + $0x78] sm:$0xff]  }
 0x69e   :  { %8337 = vmatprep.subr.bf16.mxu0 %v8975_v39  ;;  %v9010_v38 = vld [vmem:[%s11798_s14 + $0x14] ss:$8 sps:$4 sm:$0xff]   ;;  %v9008_v39 = vld [vmem:[%s11798_s14 + $0x10] ss:$8 sps:$4 sm:$0xff]  }
 0x6a0   :  { %8290 = vmatpush3.bf16.msra.mxu1 %v8946_v14  ;;  %v8986_v14 = vld [vmem:[%s11795_s11 + $0x38] sm:$0xff]  }
 0x6a1   :  { %8291 = vmatprep.subr.bf16.mxu1 %v8947_v15  ;;  %8338 = vmatpush3.bf16.msra.mxu0 %v8976_v40 }
 0x6a2   :  { %8339 = vmatprep.subr.bf16.mxu0 %v8979_v41 }
 0x6a4   :  { %8292 = vmatpush3.bf16.msra.mxu1 %v8948_v16  ;;  %v7626_v16 = vld [vmem:[%s11840_s1 + $0x3] sm:$0x1] }
 0x6a5   :  { %8293 = vmatprep.subr.bf16.mxu1 %v8949_v17  ;;  %8340 = vmatpush3.bf16.msra.mxu0 %v8980_v42  ;;  %v8989_v17 = vld [vmem:[%s11795_s11 + $0x1c0] sm:$0xff]  }
 0x6a6   :  { %8341 = vmatprep.subr.bf16.mxu0 %v8983_v43 }
 0x6a8   :  { %8294 = vmatpush3.bf16.msra.mxu1 %v8950_v18  ;;  %v8990_v18 = vld [vmem:[%s11795_s11 + $0x180] sm:$0xff]  }
 0x6a9   :  { %8295 = vmatprep.subr.bf16.mxu1 %v8951_v19  ;;  %8342 = vmatpush3.bf16.msra.mxu0 %v8984_v44  ;;  %v8993_v19 = vld [vmem:[%s11795_s11 + $0x1d0] sm:$0xff]  }
 0x6aa   :  { %8343 = vmatprep.subr.bf16.mxu0 %v8987_v45 }
 0x6ac   :  { %8296 = vmatpush3.bf16.msra.mxu1 %v8952_v20  ;;  %v8994_v20 = vld [vmem:[%s11795_s11 + $0x190] sm:$0xff]  }
 0x6ad   :  { %8297 = vmatprep.subr.bf16.mxu1 %v8953_v21  ;;  %8344 = vmatpush3.bf16.msra.mxu0 %v8988_v27  ;;  %v8995_v21 = vld [vmem:[%s11795_s11 + $0x1d8] sm:$0xff]  }
 0x6ae   :  { %3470 = vmatprep.subr.bf16.mxu0 %v9007_v37 }
 0x6b0   :  { %8298 = vmatpush3.bf16.msra.mxu1 %v8954_v22  ;;  %v8996_v22 = vld [vmem:[%s11795_s11 + $0x198] sm:$0xff]  }
 0x6b1   :  { %8299 = vmatprep.subr.bf16.mxu1 %v8955_v24  ;;  %v8997_v24 = vld [vmem:[%s11795_s11 + $0x1e0] sm:$0xff]  }
 0x6b4   :  { %8300 = vmatpush3.bf16.msra.mxu1 %v8956_v25  ;;  %v8998_v25 = vld [vmem:[%s11795_s11 + $0x1a0] sm:$0xff]  }
 0x6b5   :  { %8307 = vmatprep.subr.bf16.mxu1 %v8957_v26  ;;  %v8999_v26 = vld [vmem:[%s11795_s11 + $0x1e8] sm:$0xff]  }
 0x762   :  { %v2578_v30 = vpop.f32.mrb[20].mxu1  ;;  %v3011_v31 = vpop.f32.mrb[40].mxu0 }
 0x763   :  { %v2580_v46 = vpop.f32.mrb[21].mxu1  ;;  %v3018_v47 = vpack.c.bf16 %v3011_v31, %v3011_v31  ;;  %v3013_v48 = vpop.f32.mrb[41].mxu0  ;;  %v2585_v15 = vpack.c.bf16 %v2578_v30, %v2578_v30 }
 0x764   :  { %v2582_v49 = vpop.f32.mrb[22].mxu1  ;;  %v3019_v50 = vpack.c.bf16 %v3013_v48, %v3013_v48  ;;  %v3015_v51 = vpop.f32.mrb[42].mxu0  ;;  %v2586_v61 = vpack.c.bf16 %v2580_v46, %v2580_v46 }
 0x765   :  { %v2583_v52 = vpop.f32.mrb[23].mxu1  ;;  %v3016_v53 = vpop.f32.mrb[43].mxu0 }
 0x766   :  { %3181 = vmatprep.mubr.bf16.mxu0 %v3019_v50 }
 0x767   :  { %3182 = vmatmul.mubr.bf16.vlgmr.msra.gmra.mrb[44].mxu0 %v3018_v47 }
 0x768   :  { %3502 = vmatprep.mubr.bf16.mxu0 %v9466_v23  ;;  %3471 = vmatpush1.bf16.msra.mxu0 %v9005_v36 }
 0x769   :  { %3472 = vmatprep.subr.bf16.mxu0 %v9010_v38  ;;  %v7704_v38 = vld [vmem:[%s11797_s13 + $0x8] sm:$0xff] }
 0x76a   :  { %v2658_v54 = vpop.f32.mrb[24].mxu1 }
 0x76b   :  { %v2660_v55 = vpop.f32.mrb[25].mxu1  ;;  %v2665_v58 = vpack.c.bf16 %v2658_v54, %v2658_v54 }
 0x76c   :  { %v2666_v56 = vpack.c.bf16 %v2660_v55, %v2660_v55  ;;  %v2662_v28 = vpop.f32.mrb[26].mxu1  ;;  %3473 = vmatpush1.bf16.msra.mxu0 %v9008_v39 }
 0x76d   :  { %v2663_v59 = vpop.f32.mrb[27].mxu1 }
 0x76e   :  { %2828 = vmatprep.mubr.bf16.mxu1 %v2666_v56  ;;  %v9013_v59 = vld [vmem:[%s11798_s14 + $0x24] ss:$8 sps:$4 sm:$0xff]  }
 0x76f   :  { %2829 = vmatmul.mubr.bf16.vlgmr.msra.gmra.mrb[28].mxu1 %v2665_v58  ;;  %3474 = vmatprep.subr.bf16.mxu0 %v9013_v59 }
 0x770   :  { %8308 = vmatpush3.bf16.msra.mxu1 %v8958_v57  ;;  %2964 = vmatprep.mubr.bf16.mxu1 %v2586_v61  ;;  %v9016_v61 = vld [vmem:[%s11798_s14 + $0x34] ss:$8 sps:$4 sm:$0xff]  }
 0x771   :  { %8309 = vmatprep.subr.bf16.mxu1 %v8961_v60  ;;  %v9011_v60 = vld [vmem:[%s11798_s14 + $0x20] ss:$8 sps:$4 sm:$0xff]  }
 0x772   :  { %3475 = vmatpush1.bf16.msra.mxu0 %v9011_v60 }
 0x773   :  { %3476 = vmatprep.subr.bf16.mxu0 %v9016_v61 }
 0x774   :  { %8310 = vmatpush3.bf16.msra.mxu1 %v8962_v62  ;;  %v9014_v62 = vld [vmem:[%s11798_s14 + $0x30] ss:$8 sps:$4 sm:$0xff]  }
 0x775   :  { %8311 = vmatprep.subr.bf16.mxu1 %v8965_v63  ;;  %v9019_v63 = vld [vmem:[%s11798_s14 + $0x44] ss:$8 sps:$4 sm:$0xff]  }
 0x776   :  { %3477 = vmatpush1.bf16.msra.mxu0 %v9014_v62 }
 0x777   :  { %3561 = vmatprep.subr.bf16.mxu0 %v9019_v63 }
 0x778   :  { %8312 = vmatpush3.bf16.msra.mxu1 %v8966_v0 }
 0x779   :  { %8313 = vmatprep.subr.bf16.mxu1 %v8969_v1 }
 0x77c   :  { %8314 = vmatpush3.bf16.msra.mxu1 %v8970_v6 }
 0x77d   :  { %8315 = vmatprep.subr.bf16.mxu1 %v8973_v7 }
 0x780   :  { %8316 = vmatpush3.bf16.msra.mxu1 %v8974_v8  ;;  %v7677_v8 = vld [vmem:[%s11796_s12] ss:$0 sm:$0xff] }
 0x781   :  { %8317 = vmatprep.subr.bf16.mxu1 %v8977_v9 }
 0x784   :  { %8318 = vmatpush3.bf16.msra.mxu1 %v8978_v10 }
 0x785   :  { %8319 = vmatprep.subr.bf16.mxu1 %v8981_v11 }
 0x788   :  { %8320 = vmatpush3.bf16.msra.mxu1 %v8982_v12  ;;  %v9017_v12 = vld [vmem:[%s11798_s14 + $0x40] ss:$8 sps:$4 sm:$0xff]  }
 0x789   :  { %8321 = vmatprep.subr.bf16.mxu1 %v8985_v13 }
 0x78c   :  { %8322 = vmatpush3.bf16.msra.mxu1 %v8986_v14  ;;  %v9022_v14 = vld [vmem:[%s11798_s14 + $0x54] ss:$8 sps:$4 sm:$0xff]  }
 0x78d   :  { %7627 = vmatprep.subr.msk.bf16.mxu1 %vm2537_vm4, %v10423_v2  ;;  %v8991_v2 = vld [vmem:[%s11795_s11 + $0x1c8] sm:$0xff]  }
 0x78f   :  { %2965 = vmatmul.mubr.bf16.vlgmr.msra.gmra.mrb[32].mxu1 %v2585_v15  ;;  %v9020_v15 = vld [vmem:[%s11798_s14 + $0x50] ss:$8 sps:$4 sm:$0xff]  }
 0x790   :  { %3196 = vmatpush1.bf16.msra.mxu1 %v10426_v4  ;;  %3227 = vmatprep.mubr.bf16.mxu1 %v9466_v23  ;;  %v8992_v4 = vld [vmem:[%s11795_s11 + $0x188] sm:$0xff]  }
 0x791   :  { %8351 = vmatprep.subr.bf16.mxu1 %v8989_v17  ;;  %v9023_v17 = vld [vmem:[%s11798_s14 + $0x60] ss:$8 sps:$4 sm:$0xff]  }
 0x797   :  { %7628 = vmatmul.mubr.msk.bf16.vlgmr.msra.gmra.mrb[36].mxu1 %vm2533_vm5, %v7626_v16  ;;  %v9025_v16 = vld [vmem:[%s11798_s14 + $0x64] ss:$8 sps:$4 sm:$0xff]  }
 0x798   :  { %8352 = vmatpush3.bf16.msra.mxu1 %v8990_v18  ;;  %v9028_v18 = vld [vmem:[%s11798_s14 + $0x74] ss:$8 sps:$4 sm:$0xff]  }
 0x799   :  { %8353 = vmatprep.subr.bf16.mxu1 %v8991_v2  ;;  %v9026_v2 = vld [vmem:[%s11798_s14 + $0x70] ss:$8 sps:$4 sm:$0xff]  }
 0x79c   :  { %8354 = vmatpush3.bf16.msra.mxu1 %v8992_v4  ;;  %v9031_v4 = vld [vmem:[%s11798_s14 + $0xc4] ss:$8 sps:$4 sm:$0xff]  }
 0x79d   :  { %8355 = vmatprep.subr.bf16.mxu1 %v8993_v19  ;;  %v9029_v19 = vld [vmem:[%s11798_s14 + $0xc0] ss:$8 sps:$4 sm:$0xff]  }
 0x7a0   :  { %8356 = vmatpush3.bf16.msra.mxu1 %v8994_v20  ;;  %v9034_v20 = vld [vmem:[%s11798_s14 + $0xd4] ss:$8 sps:$4 sm:$0xff]  }
 0x7a1   :  { %8357 = vmatprep.subr.bf16.mxu1 %v8995_v21  ;;  %v9032_v21 = vld [vmem:[%s11798_s14 + $0xd0] ss:$8 sps:$4 sm:$0xff]  }
 0x7a4   :  { %8358 = vmatpush3.bf16.msra.mxu1 %v8996_v22  ;;  %v9037_v22 = vld [vmem:[%s11798_s14 + $0xe4] ss:$8 sps:$4 sm:$0xff]  }
 0x7a5   :  { %8359 = vmatprep.subr.bf16.mxu1 %v8997_v24  ;;  %v9035_v24 = vld [vmem:[%s11798_s14 + $0xe0] ss:$8 sps:$4 sm:$0xff]  }
 0x7a8   :  { %8360 = vmatpush3.bf16.msra.mxu1 %v8998_v25  ;;  %v9040_v25 = vld [vmem:[%s11798_s14 + $0xf4] ss:$8 sps:$4 sm:$0xff]  }
 0x7a9   :  { %8361 = vmatprep.subr.bf16.mxu1 %v8999_v26  ;;  %v9038_v26 = vld [vmem:[%s11798_s14 + $0xf0] ss:$8 sps:$4 sm:$0xff]  }
 0x7ac   :  { %8362 = vmatpush3.bf16.msra.mxu1 %v9000_v29  ;;  %v9467_v29 = vmov 0.0  }
 0x7ad   :  { %8363 = vmatprep.subr.bf16.mxu1 %v9001_v32 }
 0x7b0   :  { %8364 = vmatpush3.bf16.msra.mxu1 %v9002_v33 }
 0x7b1   :  { %8365 = vmatprep.subr.bf16.mxu1 %v9003_v34 }
 0x7b4   :  { %8366 = vmatpush3.bf16.msra.mxu1 %v9004_v35 }
 0x83a   :  { %v8345_v40 = vpop.f32.mrb[44].mxu0 }
 0x83b   :  { %v8346_v41 = vpop.f32.mrb[45].mxu0 }
 0x83c   :  { %v8347_v42 = vadd.f32 %v8346_v41, %v8345_v40  ;;  %v8348_v43 = vpop.f32.mrb[46].mxu0  ;;  %v9043_v40 = vld [vmem:[%s11798_s14 + $0x84] ss:$8 sps:$4 sm:$0xff]  }
 0x83d   :  { %v8349_v44 = vpop.f32.mrb[47].mxu0  ;;  %v3511_v43 = vld [vmem:[%s11797_s13] sm:$0xff] }
 0x83e   :  { %v9046_v44 = vld [vmem:[%s11798_s14 + $0x94] ss:$8 sps:$4 sm:$0xff]  }
 0x842   :  { %v8301_v45 = vpop.f32.mrb[28].mxu1 }
 0x843   :  { %v8302_v27 = vpop.f32.mrb[29].mxu1 }
 0x844   :  { %v8303_v30 = vadd.f32 %v8302_v27, %v8301_v45  ;;  %v8304_v31 = vpop.f32.mrb[30].mxu1  ;;  %v9044_v45 = vld [vmem:[%s11798_s14 + $0x90] ss:$8 sps:$4 sm:$0xff]   ;;  %v9049_v27 = vld [vmem:[%s11798_s14 + $0xa4] ss:$8 sps:$4 sm:$0xff]  }
 0x845   :  { %v8305_v46 = vpop.f32.mrb[31].mxu1 }
 0x846   :  { %v9047_v46 = vld [vmem:[%s11798_s14 + $0xa0] ss:$8 sps:$4 sm:$0xff]  }
 0x862   :  { %v8323_v47 = vpop.f32.mrb[32].mxu1 }
 0x863   :  { %v8324_v48 = vpop.f32.mrb[33].mxu1 }
 0x864   :  { %v8325_v49 = vadd.f32 %v8324_v48, %v8323_v47  ;;  %v8326_v50 = vpop.f32.mrb[34].mxu1  ;;  %v9052_v48 = vld [vmem:[%s11798_s14 + $0xb4] ss:$8 sps:$4 sm:$0xff]  }
 0x865   :  { %v8327_v51 = vpop.f32.mrb[35].mxu1  ;;  %v9050_v50 = vld [vmem:[%s11798_s14 + $0xb0] ss:$8 sps:$4 sm:$0xff]  }
 0x866   :  { %v2967_v52 = vadd.f32 %v8325_v49, %v8303_v30 }
 0x868   :  { %v3189_v53 = vadd.f32 %v8347_v42, %v2967_v52  ;;  %v9041_v42 = vld [vmem:[%s11798_s14 + $0x80] ss:$8 sps:$4 sm:$0xff]  }
 0x86a   :  { %v3229_v54 = vpop.f32.mrb[36].mxu1 }
 0x86b   :  { %v3231_v55 = vpop.f32.mrb[37].mxu1  ;;  %v3236_v57 = vpack.c.bf16 %v3229_v54, %v3229_v54 }
 0x86c   :  { %v3237_v56 = vpack.c.bf16 %v3231_v55, %v3231_v55  ;;  %v3233_v28 = vpop.f32.mrb[38].mxu1 }
 0x86d   :  { %v3234_v58 = vpop.f32.mrb[39].mxu1  ;;  %v4114_v28 = vld [vmem:[%s11799_s15] sm:$0xff] }
 0x86e   :  { %3399 = vmatprep.mubr.bf16.mxu1 %v3237_v56  ;;  %v7749_v56 = vld [vmem:[%s11797_s13 + $0x18] sm:$0xff] }
 0x86f   :  { %3400 = vmatmul.mubr.bf16.vlgmr.msra.gmra.mrb[40].mxu1 %v3236_v57  ;;  %v4115_v57 = vld [vmem:[%s11799_s15 + $0x8] sm:$0xff] }
 0x870   :  { %3679 = vmatprep.mubr.f32.mxu1 %v9467_v29 }
 0x942   :  { %v8367_v0 = vpop.f32.mrb[40].mxu1 }
 0x943   :  { %v8368_v1 = vpop.f32.mrb[41].mxu1 }
 0x944   :  { %v8369_v6 = vadd.f32 %v8368_v1, %v8367_v0  ;;  %v8370_v7 = vpop.f32.mrb[42].mxu1 }
 0x945   :  { %v8371_v9 = vpop.f32.mrb[43].mxu1 }
 0x946   :  { %v3407_v10 = vadd.f32 %v8369_v6, %v3189_v53  ;;  %v7728_v53 = vld [vmem:[%s11797_s13 + $0x10] sm:$0xff]  ;;  %v9058_v6 = vld [vmem:[%s11801_s17 + $0x104] ss:$8 sps:$4 sm:$0xff]  }
 0x947   :  { %v9054_v9 = vld [vmem:[%s11800_s16] sm:$0xff]  }
 0x948   :  { %v3415_v11 = vadd.f32 %v7677_v8, %v3407_v10  ;;  %v9053_v8 = vld [vmem:[%s11800_s16 + $0x8] sm:$0xff]  }
 0x949   :  { %v9056_v10 = vld [vmem:[%s11801_s17 + $0x100] ss:$8 sps:$4 sm:$0xff]  }
 0x94a   :  { %v10684_v13 = vpack.c.bf16 %v3415_v11, %v3415_v11  ;;  %3417 = vst.msk [vmem:[#allocation2] sm:$0x3] %vm3416_vm6, %v3415_v11  ;;  %v9061_v11 = vld [vmem:[%s11801_s17 + $0x114] ss:$8 sps:$4 sm:$0xff]  }
 0x94c   :  { %7686 = vmatmul.mubr.msk.bf16.vlgmr.msra.gmra.mrb[48].mxu0 %vm130_vm0, %v10684_v13 }
 0x94d   :  { %3562 = vmatpush1.bf16.msra.mxu0 %v9017_v12  ;;  %3593 = vmatprep.mubr.bf16.mxu0 %v9466_v23  ;;  %v9059_v12 = vld [vmem:[%s11801_s17 + $0x110] ss:$8 sps:$4 sm:$0xff]  }
 0x94e   :  { %3563 = vmatprep.subr.bf16.mxu0 %v9022_v14  ;;  %v9055_v14 = vld [vmem:[%s11800_s16 + $0x10] sm:$0xff]  }
 0x951   :  { %3564 = vmatpush1.bf16.msra.mxu0 %v9020_v15  ;;  %v9062_v15 = vld [vmem:[%s11801_s17 + $0x120] ss:$8 sps:$4 sm:$0xff]  }
 0x952   :  { %3565 = vmatprep.subr.bf16.mxu0 %v9025_v16  ;;  %v9067_v16 = vld [vmem:[%s11801_s17 + $0x134] ss:$8 sps:$4 sm:$0xff]  }
 0x955   :  { %3566 = vmatpush1.bf16.msra.mxu0 %v9023_v17  ;;  %v9065_v17 = vld [vmem:[%s11801_s17 + $0x130] ss:$8 sps:$4 sm:$0xff]  }
 0x956   :  { %3567 = vmatprep.subr.bf16.mxu0 %v9028_v18  ;;  %v9070_v18 = vld [vmem:[%s11801_s17 + $0x144] ss:$8 sps:$4 sm:$0xff]  }
 0x959   :  { %3568 = vmatpush1.bf16.msra.mxu0 %v9026_v2  ;;  %v9068_v2 = vld [vmem:[%s11801_s17 + $0x140] ss:$8 sps:$4 sm:$0xff]  }
 0x95a   :  { %3989 = vmatprep.subr.bf16.mxu0 %v9031_v4  ;;  %v9073_v4 = vld [vmem:[%s11801_s17 + $0x154] ss:$8 sps:$4 sm:$0xff]  }
 0x95c   :  { %7703 = vmatmul.mubr.msk.bf16.vlgmr.msra.gmra.mrb[52].mxu0 %vm130_vm0, %v10684_v13 }
 0x95d   :  { %3990 = vmatpush1.bf16.msra.mxu0 %v9029_v19  ;;  %4021 = vmatprep.mubr.bf16.mxu0 %v9466_v23  ;;  %v9071_v19 = vld [vmem:[%s11801_s17 + $0x150] ss:$8 sps:$4 sm:$0xff]  }
 0x95e   :  { %3991 = vmatprep.subr.bf16.mxu0 %v9034_v20  ;;  %v9076_v20 = vld [vmem:[%s11801_s17 + $0x164] ss:$8 sps:$4 sm:$0xff]  }
 0x961   :  { %3992 = vmatpush1.bf16.msra.mxu0 %v9032_v21  ;;  %v9074_v21 = vld [vmem:[%s11801_s17 + $0x160] ss:$8 sps:$4 sm:$0xff]  }
 0x962   :  { %3993 = vmatprep.subr.bf16.mxu0 %v9037_v22  ;;  %v9079_v22 = vld [vmem:[%s11801_s17 + $0x174] ss:$8 sps:$4 sm:$0xff]  }
 0x965   :  { %3994 = vmatpush1.bf16.msra.mxu0 %v9035_v24  ;;  %v9077_v24 = vld [vmem:[%s11801_s17 + $0x170] ss:$8 sps:$4 sm:$0xff]  }
 0x966   :  { %3995 = vmatprep.subr.bf16.mxu0 %v9040_v25  ;;  %v9082_v25 = vld [vmem:[%s11801_s17 + $0x184] ss:$8 sps:$4 sm:$0xff]  }
 0x969   :  { %3996 = vmatpush1.bf16.msra.mxu0 %v9038_v26  ;;  %v9080_v26 = vld [vmem:[%s11801_s17 + $0x180] ss:$8 sps:$4 sm:$0xff]  }
 0x96c   :  { %7748 = vmatmul.mubr.msk.bf16.vlgmr.msra.gmra.mrb[56].mxu0 %vm130_vm0, %v10684_v13 }
 0x96d   :  { %4170 = vmatprep.mubr.bf16.mxu0 %v9466_v23 }
 0xa1f   :  { %v3504_v32 = vpop.f32.mrb[48].mxu0 }
 0xa20   :  { %v3506_v33 = vpop.f32.mrb[49].mxu0 }
 0xa21   :  { %v3508_v34 = vpop.f32.mrb[50].mxu0 }
 0xa22   :  { %v3509_v35 = vpop.f32.mrb[51].mxu0  ;;  %v9086_v34 = vld [vmem:[%s11801_s17 + $0x1a0] ss:$8 sps:$4 sm:$0xff]  }
 0xa23   :  { %v9091_v35 = vld [vmem:[%s11801_s17 + $0x1b4] ss:$8 sps:$4 sm:$0xff]  }
 0xa2f   :  { %v3595_v36 = vpop.f32.mrb[52].mxu0 }
 0xa30   :  { %v3597_v37 = vpop.f32.mrb[53].mxu0 }
 0xa31   :  { %v3599_v39 = vpop.f32.mrb[54].mxu0  ;;  %7705 = vmatprep.subr.msk.mxu1 %vm3608_vm7, %v3597_v37  ;;  %v9094_v37 = vld [vmem:[%s11801_s17 + $0x1c4] ss:$8 sps:$4 sm:$0xff]  }
 0xa32   :  { %v3600_v41 = vpop.f32.mrb[55].mxu0  ;;  %7706 = vmatpush1.msk.msra.mxu1 %vm3608_vm7, %v3595_v36  ;;  %v9089_v36 = vld [vmem:[%s11801_s17 + $0x1b0] ss:$8 sps:$4 sm:$0xff]   ;;  %v9097_v39 = vld [vmem:[%s11801_s17 + $0x1d4] ss:$8 sps:$4 sm:$0xff]  }
 0xa33   :  { %7707 = vmatmul.mubr.msk.f32.vlgmr.msra.gmra.mrb[44].mxu1 %vm3604_vm8, %v7704_v38  ;;  %7708 = vmatprep.subr.msk.mxu1 %vm3608_vm7, %v3506_v33  ;;  %v9088_v33 = vld [vmem:[%s11801_s17 + $0x1a4] ss:$8 sps:$4 sm:$0xff]   ;;  %v9092_v38 = vld [vmem:[%s11801_s17 + $0x1c0] ss:$8 sps:$4 sm:$0xff]  }
 0xa34   :  { %7709 = vmatpush1.msk.msra.mxu1 %vm3608_vm7, %v3504_v32  ;;  %3759 = vmatprep.mubr.f32.mxu1 %v9467_v29  ;;  %v9083_v32 = vld [vmem:[%s11801_s17 + $0x190] ss:$8 sps:$4 sm:$0xff]   ;;  %v9100_v41 = vld [vmem:[%s11801_s17 + $0x1e4] ss:$8 sps:$4 sm:$0xff]  }
 0xa35   :  { %3815 = vmatprep.subr.bf16.mxu1 %v9043_v40  ;;  %v9095_v40 = vld [vmem:[%s11801_s17 + $0x1d0] ss:$8 sps:$4 sm:$0xff]  }
 0xa3b   :  { %7710 = vmatmul.mubr.msk.f32.vlgmr.msra.gmra.mrb[44].mxu1 %vm3604_vm8, %v3511_v43  ;;  %v9103_v43 = vld [vmem:[%s11801_s17 + $0x1f4] ss:$8 sps:$4 sm:$0xff]  }
 0xa3c   :  { %3816 = vmatpush1.bf16.msra.mxu1 %v9041_v42  ;;  %3847 = vmatprep.mubr.bf16.mxu1 %v9466_v23  ;;  %v9098_v42 = vld [vmem:[%s11801_s17 + $0x1e0] ss:$8 sps:$4 sm:$0xff]  }
 0xa3d   :  { %3817 = vmatprep.subr.bf16.mxu1 %v9046_v44  ;;  %v9101_v44 = vld [vmem:[%s11801_s17 + $0x1f0] ss:$8 sps:$4 sm:$0xff]  }
 0xa3f   :  { %v4023_v30 = vpop.f32.mrb[56].mxu0 }
 0xa40   :  { %3818 = vmatpush1.bf16.msra.mxu1 %v9044_v45  ;;  %v4025_v31 = vpop.f32.mrb[57].mxu0  ;;  %v9106_v45 = vld [vmem:[%s11801_s17 + $0x4] ss:$8 sps:$4 sm:$0xff]  }
 0xa41   :  { %v4027_v47 = vpop.f32.mrb[58].mxu0  ;;  %3819 = vmatprep.subr.bf16.mxu1 %v9049_v27 }
 0xa42   :  { %v4028_v49 = vpop.f32.mrb[59].mxu0 }
 0xa44   :  { %3820 = vmatpush1.bf16.msra.mxu1 %v9047_v46 }
 0xa45   :  { %3821 = vmatprep.subr.bf16.mxu1 %v9052_v48 }
 0xa48   :  { %3822 = vmatpush1.bf16.msra.mxu1 %v9050_v50 }
 0xa4b   :  { %7727 = vmatmul.mubr.msk.bf16.vlgmr.msra.gmra.mrb[48].mxu1 %vm130_vm0, %v10684_v13  ;;  %v9064_v13 = vld [vmem:[%s11801_s17 + $0x124] ss:$8 sps:$4 sm:$0xff]  }
 0xa4c   :  { %3931 = vmatprep.mubr.f32.mxu1 %v9467_v29 }
 0xb1e   :  { %v3849_v51 = vpop.f32.mrb[48].mxu1 }
 0xb1f   :  { %v3851_v52 = vpop.f32.mrb[49].mxu1 }
 0xb20   :  { %v3853_v54 = vpop.f32.mrb[50].mxu1  ;;  %7729 = vmatprep.subr.msk.mxu1 %vm3608_vm7, %v3851_v52 }
 0xb21   :  { %v3854_v55 = vpop.f32.mrb[51].mxu1  ;;  %7730 = vmatpush1.msk.msra.mxu1 %vm3608_vm7, %v3849_v51  ;;  %v9104_v54 = vld [vmem:[%s11801_s17] ss:$8 sps:$4 sm:$0xff]  }
 0xb22   :  { %7731 = vmatmul.mubr.msk.f32.vlgmr.msra.gmra.mrb[44].mxu1 %vm3604_vm8, %v7728_v53  ;;  %7750 = vmatprep.subr.msk.mxu1 %vm3608_vm7, %v4025_v31 }
 0xb23   :  { %7751 = vmatpush1.msk.msra.mxu1 %vm3608_vm7, %v4023_v30  ;;  %4105 = vmatprep.mubr.f32.mxu1 %v9467_v29  ;;  %v9085_v29 = vld [vmem:[%s11801_s17 + $0x194] ss:$8 sps:$4 sm:$0xff]  }
 0xb2a   :  { %7752 = vmatmul.mubr.msk.f32.vlgmr.msra.gmra.mrb[44].mxu1 %vm3604_vm8, %v7749_v56  ;;  %v9109_v56 = vld [vmem:[%s11801_s17 + $0x14] ss:$8 sps:$4 sm:$0xff]  }
 0xb2b   :  { %4258 = vmatprep.mubr.bf16.mxu1 %v9466_v23 }
 0xbfd   :  { %v4107_v58 = vpop.f32.mrb[44].mxu1 }
 0xbfe   :  { %v4116_v59 = vadd.f32 %v4114_v28, %v4107_v58  ;;  %v4109_v60 = vpop.f32.mrb[45].mxu1  ;;  %v9107_v28 = vld [vmem:[%s11801_s17 + $0x10] ss:$8 sps:$4 sm:$0xff]   ;;  %v9112_v58 = vld [vmem:[%s11801_s17 + $0x24] ss:$8 sps:$4 sm:$0xff]  }
 0xbff   :  { %v4117_v61 = vadd.f32 %v4115_v57, %v4109_v60 }
 0xc00   :  { %v4118_v62 = vmax.f32 %v4116_v59, 0.0 }
 0xc01   :  { %v4119_v63 = vmax.f32 %v4117_v61, 0.0 }
 0xc02   :  { %v4120_v0 = vpack.c.bf16 %v4118_v62, %v4118_v62 }
 0xc03   :  { %v4121_v1 = vpack.c.bf16 %v4119_v63, %v4119_v63  ;;  %v9110_v63 = vld [vmem:[%s11801_s17 + $0x20] ss:$8 sps:$4 sm:$0xff]  }
 0xc04   :  { %v4133_v7 = vsel %vm2537_vm4, %v4120_v0, 0 }
 0xc05   :  { %7754 = vmatprep.subr.msk.bf16.mxu0 %vm2537_vm4, %v4121_v1  ;;  %7759 = vmatprep.subr.msk.bf16.mxu1 %vm2537_vm4, %v4121_v1 }
 0xc06   :  { %4139 = vmatpush1.bf16.msra.mxu0 %v4133_v7  ;;  %4227 = vmatpush1.bf16.msra.mxu1 %v4133_v7 }
 0xc07   :  { %7860 = vmatprep.subr.msk.bf16.mxu1 %vm2537_vm4, %v4121_v1  ;;  %4464 = vmatprep.subr.bf16.mxu0 %v9058_v6  ;;  %v9115_v1 = vld [vmem:[%s11801_s17 + $0x34] ss:$8 sps:$4 sm:$0xff]   ;;  %v9113_v6 = vld [vmem:[%s11801_s17 + $0x30] ss:$8 sps:$4 sm:$0xff]  }
 0xc09   :  { %7760 = vmatmul.mubr.msk.bf16.vlgmr.msra.gmra.mrb[52].mxu1 %vm2533_vm5, %v9053_v8  ;;  %7755 = vmatmul.mubr.msk.bf16.vlgmr.msra.gmra.mrb[60].mxu0 %vm2533_vm5, %v9054_v9  ;;  %v9116_v8 = vld [vmem:[%s11801_s17 + $0x40] ss:$8 sps:$4 sm:$0xff]   ;;  %v9121_v9 = vld [vmem:[%s11801_s17 + $0x54] ss:$8 sps:$4 sm:$0xff]  }
 0xc0a   :  { %4722 = vmatpush1.bf16.msra.mxu1 %v4133_v7  ;;  %4753 = vmatprep.mubr.bf16.mxu1 %v9466_v23  ;;  %v9118_v7 = vld [vmem:[%s11801_s17 + $0x44] ss:$8 sps:$4 sm:$0xff]  }
 0xc0b   :  { %4465 = vmatpush1.bf16.msra.mxu0 %v9056_v10  ;;  %v9119_v10 = vld [vmem:[%s11801_s17 + $0x50] ss:$8 sps:$4 sm:$0xff]  }
 0xc0c   :  { %4466 = vmatprep.subr.bf16.mxu0 %v9061_v11  ;;  %v9124_v11 = vld [vmem:[%s11801_s17 + $0x64] ss:$8 sps:$4 sm:$0xff]  }
 0xc0f   :  { %4467 = vmatpush1.bf16.msra.mxu0 %v9059_v12  ;;  %v9122_v12 = vld [vmem:[%s11801_s17 + $0x60] ss:$8 sps:$4 sm:$0xff]  }
 0xc10   :  { %4468 = vmatprep.subr.bf16.mxu0 %v9064_v13  ;;  %v9127_v13 = vld [vmem:[%s11801_s17 + $0x74] ss:$8 sps:$4 sm:$0xff]  }
 0xc11   :  { %7861 = vmatmul.mubr.msk.bf16.vlgmr.msra.gmra.mrb[56].mxu1 %vm2533_vm5, %v9055_v14  ;;  %v9125_v14 = vld [vmem:[%s11801_s17 + $0x70] ss:$8 sps:$4 sm:$0xff]  }
 0xc12   :  { %5080 = vmatprep.mubr.bf16.mxu1 %v9466_v23 }
 0xc13   :  { %4469 = vmatpush1.bf16.msra.mxu0 %v9062_v15  ;;  %v9130_v15 = vld [vmem:[%s11801_s17 + $0x84] ss:$8 sps:$4 sm:$0xff]  }
 0xc14   :  { %4470 = vmatprep.subr.bf16.mxu0 %v9067_v16  ;;  %v9128_v16 = vld [vmem:[%s11801_s17 + $0x80] ss:$8 sps:$4 sm:$0xff]  }
 0xc17   :  { %4471 = vmatpush1.bf16.msra.mxu0 %v9065_v17  ;;  %v9133_v17 = vld [vmem:[%s11801_s17 + $0x94] ss:$8 sps:$4 sm:$0xff]  }
 0xc18   :  { %4472 = vmatprep.subr.bf16.mxu0 %v9070_v18  ;;  %v9131_v18 = vld [vmem:[%s11801_s17 + $0x90] ss:$8 sps:$4 sm:$0xff]  }
 0xc1b   :  { %4473 = vmatpush1.bf16.msra.mxu0 %v9068_v2  ;;  %v9136_v2 = vld [vmem:[%s11801_s17 + $0xa4] ss:$8 sps:$4 sm:$0xff]  }
 0xc1c   :  { %4474 = vmatprep.subr.bf16.mxu0 %v9073_v4  ;;  %v9134_v4 = vld [vmem:[%s11801_s17 + $0xa0] ss:$8 sps:$4 sm:$0xff]  }
 0xc1f   :  { %4475 = vmatpush1.bf16.msra.mxu0 %v9071_v19  ;;  %v9139_v19 = vld [vmem:[%s11801_s17 + $0xb4] ss:$8 sps:$4 sm:$0xff]  }
 0xc20   :  { %4476 = vmatprep.subr.bf16.mxu0 %v9076_v20  ;;  %v9137_v20 = vld [vmem:[%s11801_s17 + $0xb0] ss:$8 sps:$4 sm:$0xff]  }
 0xc23   :  { %4477 = vmatpush1.bf16.msra.mxu0 %v9074_v21  ;;  %v9142_v21 = vld [vmem:[%s11801_s17 + $0xc4] ss:$8 sps:$4 sm:$0xff]  }
 0xc24   :  { %4478 = vmatprep.subr.bf16.mxu0 %v9079_v22  ;;  %v9140_v22 = vld [vmem:[%s11801_s17 + $0xc0] ss:$8 sps:$4 sm:$0xff]  }
 0xc27   :  { %4479 = vmatpush1.bf16.msra.mxu0 %v9077_v24  ;;  %v9145_v24 = vld [vmem:[%s11801_s17 + $0xd4] ss:$8 sps:$4 sm:$0xff]  }
 0xc28   :  { %4480 = vmatprep.subr.bf16.mxu0 %v9082_v25  ;;  %v9143_v25 = vld [vmem:[%s11801_s17 + $0xd0] ss:$8 sps:$4 sm:$0xff]  }
 0xc2b   :  { %4481 = vmatpush1.bf16.msra.mxu0 %v9080_v26  ;;  %v9148_v26 = vld [vmem:[%s11801_s17 + $0xe4] ss:$8 sps:$4 sm:$0xff]  }
 0xc2c   :  { %4482 = vmatprep.subr.bf16.mxu0 %v9085_v29  ;;  %v9146_v29 = vld [vmem:[%s11801_s17 + $0xe0] ss:$8 sps:$4 sm:$0xff]  }
 0xc2f   :  { %4483 = vmatpush1.bf16.msra.mxu0 %v9083_v32  ;;  %v9151_v32 = vld [vmem:[%s11801_s17 + $0xf4] ss:$8 sps:$4 sm:$0xff]  }
 0xc30   :  { %4484 = vmatprep.subr.bf16.mxu0 %v9088_v33  ;;  %v9149_v33 = vld [vmem:[%s11801_s17 + $0xf0] ss:$8 sps:$4 sm:$0xff]  }
 0xc33   :  { %4485 = vmatpush1.bf16.msra.mxu0 %v9086_v34  ;;  %v9154_v34 = vld [vmem:[%s11801_s17 + $0x204] ss:$8 sps:$4 sm:$0xff]  }
 0xc34   :  { %4486 = vmatprep.subr.bf16.mxu0 %v9091_v35  ;;  %v9152_v35 = vld [vmem:[%s11801_s17 + $0x200] ss:$8 sps:$4 sm:$0xff]  }
 0xc37   :  { %4487 = vmatpush1.bf16.msra.mxu0 %v9089_v36  ;;  %v9157_v36 = vld [vmem:[%s11801_s17 + $0x214] ss:$8 sps:$4 sm:$0xff]  }
 0xc38   :  { %4488 = vmatprep.subr.bf16.mxu0 %v9094_v37  ;;  %v9155_v37 = vld [vmem:[%s11801_s17 + $0x210] ss:$8 sps:$4 sm:$0xff]  }
 0xc3b   :  { %4489 = vmatpush1.bf16.msra.mxu0 %v9092_v38  ;;  %v9160_v38 = vld [vmem:[%s11801_s17 + $0x224] ss:$8 sps:$4 sm:$0xff]  }
 0xc3c   :  { %4490 = vmatprep.subr.bf16.mxu0 %v9097_v39  ;;  %v9158_v39 = vld [vmem:[%s11801_s17 + $0x220] ss:$8 sps:$4 sm:$0xff]  }
 0xc3f   :  { %4491 = vmatpush1.bf16.msra.mxu0 %v9095_v40  ;;  %v9163_v40 = vld [vmem:[%s11801_s17 + $0x234] ss:$8 sps:$4 sm:$0xff]  }
 0xc40   :  { %4492 = vmatprep.subr.bf16.mxu0 %v9100_v41  ;;  %v9161_v41 = vld [vmem:[%s11801_s17 + $0x230] ss:$8 sps:$4 sm:$0xff]  }
 0xc43   :  { %4493 = vmatpush1.bf16.msra.mxu0 %v9098_v42  ;;  %v9166_v42 = vld [vmem:[%s11801_s17 + $0x244] ss:$8 sps:$4 sm:$0xff]  }
 0xc44   :  { %4494 = vmatprep.subr.bf16.mxu0 %v9103_v43  ;;  %v9164_v43 = vld [vmem:[%s11801_s17 + $0x240] ss:$8 sps:$4 sm:$0xff]  }
 0xc47   :  { %4495 = vmatpush1.bf16.msra.mxu0 %v9101_v44  ;;  %v9169_v44 = vld [vmem:[%s11801_s17 + $0x254] ss:$8 sps:$4 sm:$0xff]  }
 0xc48   :  { %4667 = vmatprep.subr.bf16.mxu0 %v9106_v45  ;;  %v9167_v45 = vld [vmem:[%s11801_s17 + $0x250] ss:$8 sps:$4 sm:$0xff]  }
 0xcdc   :  { %v4260_v27 = vpop.f32.mrb[52].mxu1  ;;  %v10912_v30 = vpop.f32.mrb[60].mxu0 }
 0xcdd   :  { %v4262_v31 = vpop.f32.mrb[53].mxu1  ;;  %v4174_v46 = vpop.f32.mrb[61].mxu0 }
 0xcde   :  { %v4264_v47 = vpop.f32.mrb[54].mxu1  ;;  %v10914_v48 = vpop.f32.mrb[62].mxu0 }
 0xcdf   :  { %v4269_v49 = vpack.c.bf16 %v4264_v47, %v4260_v27  ;;  %v4266_v50 = vpop.f32.mrb[55].mxu1  ;;  %v4181_v51 = vpack.c.bf16 %v10914_v48, %v10912_v30  ;;  %v4178_v52 = vpop.f32.mrb[63].mxu0  ;;  %v9172_v27 = vld [vmem:[%s11801_s17 + $0x264] ss:$8 sps:$4 sm:$0xff]   ;;  %v9170_v30 = vld [vmem:[%s11801_s17 + $0x260] ss:$8 sps:$4 sm:$0xff]  }
 0xce0   :  { %v4270_v53 = vpack.c.bf16 %v4266_v50, %v4262_v31  ;;  %v4182_v55 = vpack.c.bf16 %v4178_v52, %v4174_v46  ;;  %v9175_v31 = vld [vmem:[%s11801_s17 + $0x274] ss:$8 sps:$4 sm:$0xff]   ;;  %v9173_v46 = vld [vmem:[%s11801_s17 + $0x270] ss:$8 sps:$4 sm:$0xff]   ;;  %v9178_v47 = vld [vmem:[%s11801_s17 + $0x284] ss:$8 sps:$4 sm:$0xff]  }
 0xce1   :  { %v9176_v48 = vld [vmem:[%s11801_s17 + $0x280] ss:$8 sps:$4 sm:$0xff]   ;;  %v9179_v50 = vld [vmem:[%s11801_s17 + $0x290] ss:$8 sps:$4 sm:$0xff]  }
 0xce2   :  { %4496 = vmatprep.mubr.bf16.mxu0 %v4270_v53  ;;  %v9182_v52 = vld [vmem:[%s11801_s17 + $0x2a0] ss:$8 sps:$4 sm:$0xff]   ;;  %v9187_v53 = vld [vmem:[%s11801_s17 + $0x2b4] ss:$8 sps:$4 sm:$0xff]  }
 0xce3   :  { %4497 = vmatmul.mubr.bf16.vlgmr.msra.gmra.mrb[64].mxu0 %v4269_v49  ;;  %v9181_v49 = vld [vmem:[%s11801_s17 + $0x294] ss:$8 sps:$4 sm:$0xff]  }
 0xce4   :  { %4668 = vmatpush1.bf16.msra.mxu0 %v9104_v54  ;;  %4699 = vmatprep.mubr.bf16.mxu0 %v4182_v55  ;;  %v10927_v57 = vpop.f32.mrb[56].mxu1  ;;  %v9185_v54 = vld [vmem:[%s11801_s17 + $0x2b0] ss:$8 sps:$4 sm:$0xff]   ;;  %v9190_v55 = vld [vmem:[%s11801_s17 + $0x2c4] ss:$8 sps:$4 sm:$0xff]  }
 0xce5   :  { %4669 = vmatprep.subr.bf16.mxu0 %v9109_v56  ;;  %v10932_v59 = vpop.f32.mrb[57].mxu1  ;;  %v9188_v56 = vld [vmem:[%s11801_s17 + $0x2c0] ss:$8 sps:$4 sm:$0xff]  }
 0xce6   :  { %v10934_v60 = vpop.f32.mrb[58].mxu1 }
 0xce7   :  { %v4764_v61 = vpack.c.bf16 %v10934_v60, %v10927_v57  ;;  %v10938_v62 = vpop.f32.mrb[59].mxu1 }
 0xce8   :  { %4670 = vmatpush1.bf16.msra.mxu0 %v9107_v28  ;;  %v4765_v0 = vpack.c.bf16 %v10938_v62, %v10932_v59  ;;  %v9193_v28 = vld [vmem:[%s11801_s17 + $0x2d4] ss:$8 sps:$4 sm:$0xff]   ;;  %v9196_v59 = vld [vmem:[%s11801_s17 + $0x2e4] ss:$8 sps:$4 sm:$0xff]   ;;  %v9194_v62 = vld [vmem:[%s11801_s17 + $0x2e0] ss:$8 sps:$4 sm:$0xff]  }
 0xce9   :  { %4671 = vmatprep.subr.bf16.mxu0 %v9112_v58  ;;  %v9191_v58 = vld [vmem:[%s11801_s17 + $0x2d0] ss:$8 sps:$4 sm:$0xff]  }
 0xcec   :  { %4672 = vmatpush1.bf16.msra.mxu0 %v9110_v63  ;;  %v9199_v63 = vld [vmem:[%s11801_s17 + $0x2f4] ss:$8 sps:$4 sm:$0xff]  }
 0xced   :  { %4673 = vmatprep.subr.bf16.mxu0 %v9115_v1  ;;  %v5006_v1 = vld [vmem:[%s11802_s18] sm:$0x3] }
 0xcf0   :  { %4674 = vmatpush1.bf16.msra.mxu0 %v9113_v6  ;;  %v5011_v6 = vrot.slane %v5006_v1, %v9762_v3 }
 0xcf1   :  { %4675 = vmatprep.subr.bf16.mxu0 %v9118_v7  ;;  %v5015_v7 = vrot.slane %v5006_v1, %v9767_v5 }
 0xcf4   :  { %4676 = vmatpush1.bf16.msra.mxu0 %v9116_v8 }
 0xcf5   :  { %4677 = vmatprep.subr.bf16.mxu0 %v9121_v9 }
 0xcf8   :  { %4678 = vmatpush1.bf16.msra.mxu0 %v9119_v10 }
 0xcf9   :  { %4679 = vmatprep.subr.bf16.mxu0 %v9124_v11 }
 0xcfc   :  { %4680 = vmatpush1.bf16.msra.mxu0 %v9122_v12 }
 0xcfd   :  { %4681 = vmatprep.subr.bf16.mxu0 %v9127_v13 }
 0xd00   :  { %4682 = vmatpush1.bf16.msra.mxu0 %v9125_v14 }
 0xd01   :  { %4683 = vmatprep.subr.bf16.mxu0 %v9130_v15 }
 0xd04   :  { %4684 = vmatpush1.bf16.msra.mxu0 %v9128_v16 }
 0xd05   :  { %4685 = vmatprep.subr.bf16.mxu0 %v9133_v17 }
 0xd08   :  { %4686 = vmatpush1.bf16.msra.mxu0 %v9131_v18 }
 0xd09   :  { %4687 = vmatprep.subr.bf16.mxu0 %v9136_v2  ;;  %v9200_v2 = vld [vmem:[%s11803_s19] sm:$0xff]  }
 0xd0c   :  { %4688 = vmatpush1.bf16.msra.mxu0 %v9134_v4  ;;  %v9206_v4 = vld [vmem:[%s11804_s20 + $0x104] ss:$8 sps:$4 sm:$0xff]  }
 0xd0d   :  { %4689 = vmatprep.subr.bf16.mxu0 %v9139_v19  ;;  %v9201_v19 = vld [vmem:[%s11803_s19 + $0x8] sm:$0xff]  }
 0xd10   :  { %4690 = vmatpush1.bf16.msra.mxu0 %v9137_v20  ;;  %v9202_v20 = vld [vmem:[%s11803_s19 + $0x10] sm:$0xff]  }
 0xd11   :  { %4691 = vmatprep.subr.bf16.mxu0 %v9142_v21  ;;  %v9204_v21 = vld [vmem:[%s11804_s20 + $0x100] ss:$8 sps:$4 sm:$0xff]  }
 0xd14   :  { %4692 = vmatpush1.bf16.msra.mxu0 %v9140_v22  ;;  %v9209_v22 = vld [vmem:[%s11804_s20 + $0x114] ss:$8 sps:$4 sm:$0xff]  }
 0xd15   :  { %4693 = vmatprep.subr.bf16.mxu0 %v9145_v24  ;;  %v9207_v24 = vld [vmem:[%s11804_s20 + $0x110] ss:$8 sps:$4 sm:$0xff]  }
 0xd18   :  { %4694 = vmatpush1.bf16.msra.mxu0 %v9143_v25  ;;  %v9212_v25 = vld [vmem:[%s11804_s20 + $0x124] ss:$8 sps:$4 sm:$0xff]  }
 0xd19   :  { %4695 = vmatprep.subr.bf16.mxu0 %v9148_v26  ;;  %v9203_v26 = vld [vmem:[%s11803_s19 + $0x18] sm:$0xff]  }
 0xd1c   :  { %4696 = vmatpush1.bf16.msra.mxu0 %v9146_v29  ;;  %v9210_v29 = vld [vmem:[%s11804_s20 + $0x120] ss:$8 sps:$4 sm:$0xff]  }
 0xd1d   :  { %4697 = vmatprep.subr.bf16.mxu0 %v9151_v32  ;;  %v9215_v32 = vld [vmem:[%s11804_s20 + $0x134] ss:$8 sps:$4 sm:$0xff]  }
 0xd20   :  { %4698 = vmatpush1.bf16.msra.mxu0 %v9149_v33  ;;  %v9213_v33 = vld [vmem:[%s11804_s20 + $0x130] ss:$8 sps:$4 sm:$0xff]  }
 0xd21   :  { %4959 = vmatprep.subr.bf16.mxu0 %v9154_v34  ;;  %v9218_v34 = vld [vmem:[%s11804_s20 + $0x144] ss:$8 sps:$4 sm:$0xff]  }
 0xd23   :  { %4700 = vmatmul.mubr.bf16.vlgmr.msra.gmra.mrb[64].mxu0 %v4181_v51  ;;  %v9184_v51 = vld [vmem:[%s11801_s17 + $0x2a4] ss:$8 sps:$4 sm:$0xff]  }
 0xd24   :  { %4960 = vmatpush1.bf16.msra.mxu0 %v9152_v35  ;;  %4991 = vmatprep.mubr.bf16.mxu0 %v4765_v0  ;;  %v9197_v0 = vld [vmem:[%s11801_s17 + $0x2f0] ss:$8 sps:$4 sm:$0xff]   ;;  %v9216_v35 = vld [vmem:[%s11804_s20 + $0x140] ss:$8 sps:$4 sm:$0xff]  }
 0xd25   :  { %4961 = vmatprep.subr.bf16.mxu0 %v9157_v36  ;;  %v9221_v36 = vld [vmem:[%s11804_s20 + $0x154] ss:$8 sps:$4 sm:$0xff]  }
 0xd28   :  { %4962 = vmatpush1.bf16.msra.mxu0 %v9155_v37  ;;  %v9219_v37 = vld [vmem:[%s11804_s20 + $0x150] ss:$8 sps:$4 sm:$0xff]  }
 0xd29   :  { %4963 = vmatprep.subr.bf16.mxu0 %v9160_v38  ;;  %v9224_v38 = vld [vmem:[%s11804_s20 + $0x164] ss:$8 sps:$4 sm:$0xff]  }
 0xd2c   :  { %4964 = vmatpush1.bf16.msra.mxu0 %v9158_v39  ;;  %v9222_v39 = vld [vmem:[%s11804_s20 + $0x160] ss:$8 sps:$4 sm:$0xff]  }
 0xd2d   :  { %4965 = vmatprep.subr.bf16.mxu0 %v9163_v40  ;;  %v9227_v40 = vld [vmem:[%s11804_s20 + $0x174] ss:$8 sps:$4 sm:$0xff]  }
 0xd30   :  { %4966 = vmatpush1.bf16.msra.mxu0 %v9161_v41  ;;  %v9225_v41 = vld [vmem:[%s11804_s20 + $0x170] ss:$8 sps:$4 sm:$0xff]  }
 0xd31   :  { %4967 = vmatprep.subr.bf16.mxu0 %v9166_v42  ;;  %v9230_v42 = vld [vmem:[%s11804_s20 + $0x184] ss:$8 sps:$4 sm:$0xff]  }
 0xd34   :  { %4968 = vmatpush1.bf16.msra.mxu0 %v9164_v43  ;;  %v9228_v43 = vld [vmem:[%s11804_s20 + $0x180] ss:$8 sps:$4 sm:$0xff]  }
 0xd35   :  { %4969 = vmatprep.subr.bf16.mxu0 %v9169_v44  ;;  %v9233_v44 = vld [vmem:[%s11804_s20 + $0x194] ss:$8 sps:$4 sm:$0xff]  }
 0xd38   :  { %4970 = vmatpush1.bf16.msra.mxu0 %v9167_v45  ;;  %v9231_v45 = vld [vmem:[%s11804_s20 + $0x190] ss:$8 sps:$4 sm:$0xff]  }
 0xd39   :  { %4971 = vmatprep.subr.bf16.mxu0 %v9172_v27  ;;  %v9236_v27 = vld [vmem:[%s11804_s20 + $0x1a4] ss:$8 sps:$4 sm:$0xff]  }
 0xd3c   :  { %4972 = vmatpush1.bf16.msra.mxu0 %v9170_v30  ;;  %v9234_v30 = vld [vmem:[%s11804_s20 + $0x1a0] ss:$8 sps:$4 sm:$0xff]  }
 0xd3d   :  { %4973 = vmatprep.subr.bf16.mxu0 %v9175_v31  ;;  %v9239_v31 = vld [vmem:[%s11804_s20 + $0x1b4] ss:$8 sps:$4 sm:$0xff]  }
 0xd40   :  { %4974 = vmatpush1.bf16.msra.mxu0 %v9173_v46  ;;  %v9237_v46 = vld [vmem:[%s11804_s20 + $0x1b0] ss:$8 sps:$4 sm:$0xff]  }
 0xd41   :  { %4975 = vmatprep.subr.bf16.mxu0 %v9178_v47  ;;  %v9240_v47 = vld [vmem:[%s11804_s20 + $0x1c0] ss:$8 sps:$4 sm:$0xff]  }
 0xd44   :  { %4976 = vmatpush1.bf16.msra.mxu0 %v9176_v48  ;;  %v9242_v48 = vld [vmem:[%s11804_s20 + $0x1c4] ss:$8 sps:$4 sm:$0xff]  }
 0xd45   :  { %4977 = vmatprep.subr.bf16.mxu0 %v9181_v49  ;;  %v9245_v49 = vld [vmem:[%s11804_s20 + $0x1d4] ss:$8 sps:$4 sm:$0xff]  }
 0xd48   :  { %4978 = vmatpush1.bf16.msra.mxu0 %v9179_v50  ;;  %v9243_v50 = vld [vmem:[%s11804_s20 + $0x1d0] ss:$8 sps:$4 sm:$0xff]  }
 0xd49   :  { %4979 = vmatprep.subr.bf16.mxu0 %v9184_v51  ;;  %v9246_v51 = vld [vmem:[%s11804_s20 + $0x1e0] ss:$8 sps:$4 sm:$0xff]  }
 0xd4c   :  { %4980 = vmatpush1.bf16.msra.mxu0 %v9182_v52  ;;  %v9248_v52 = vld [vmem:[%s11804_s20 + $0x1e4] ss:$8 sps:$4 sm:$0xff]  }
 0xd4d   :  { %4981 = vmatprep.subr.bf16.mxu0 %v9187_v53  ;;  %v9251_v53 = vld [vmem:[%s11804_s20 + $0x1f4] ss:$8 sps:$4 sm:$0xff]  }
 0xd50   :  { %4982 = vmatpush1.bf16.msra.mxu0 %v9185_v54  ;;  %v9249_v54 = vld [vmem:[%s11804_s20 + $0x1f0] ss:$8 sps:$4 sm:$0xff]  }
 0xd51   :  { %4983 = vmatprep.subr.bf16.mxu0 %v9190_v55  ;;  %v9254_v55 = vld [vmem:[%s11804_s20 + $0x4] ss:$8 sps:$4 sm:$0xff]  }
 0xd54   :  { %4984 = vmatpush1.bf16.msra.mxu0 %v9188_v56 }
 0xd55   :  { %4985 = vmatprep.subr.bf16.mxu0 %v9193_v28 }
 0xd58   :  { %4986 = vmatpush1.bf16.msra.mxu0 %v9191_v58 }
 0xd59   :  { %4987 = vmatprep.subr.bf16.mxu0 %v9196_v59 }
 0xd5c   :  { %4988 = vmatpush1.bf16.msra.mxu0 %v9194_v62 }
 0xd5d   :  { %4989 = vmatprep.subr.bf16.mxu0 %v9199_v63 }
 0xd60   :  { %4990 = vmatpush1.bf16.msra.mxu0 %v9197_v0 }
 0xd63   :  { %4992 = vmatmul.mubr.bf16.vlgmr.msra.gmra.mrb[64].mxu0 %v4764_v61 }
 0xd64   :  { %6110 = vmatprep.mubr.bf16.mxu0 %v9466_v23 }
 0xe36   :  { %v4993_v8 = vpop.f32.mrb[64].mxu0 }
 0xe37   :  { %v5018_v9 = vadd.f32 %v5011_v6, %v4993_v8  ;;  %v4995_v10 = vpop.f32.mrb[65].mxu0 }
 0xe38   :  { %v5019_v11 = vadd.f32 %v5015_v7, %v4995_v10  ;;  %v4997_v12 = vpop.f32.mrb[66].mxu0 }
 0xe39   :  { %v5020_v13 = vadd.f32 %v5011_v6, %v4997_v12  ;;  %v4999_v14 = vpop.f32.mrb[67].mxu0  ;;  %v5022_v57 = vmax.f32 %v5018_v9, 0.0 }
 0xe3a   :  { %v5021_v15 = vadd.f32 %v5015_v7, %v4999_v14  ;;  %v5023_v61 = vmax.f32 %v5019_v11, 0.0 }
 0xe3b   :  { %v5024_v60 = vmax.f32 %v5020_v13, 0.0 }
 0xe3c   :  { %v5025_v16 = vmax.f32 %v5021_v15, 0.0 }
 0xe3d   :  { %v11131_v17 = vpack.c.bf16 %v5024_v60, %v5022_v57  ;;  %v9252_v57 = vld [vmem:[%s11804_s20] ss:$8 sps:$4 sm:$0xff]   ;;  %v9257_v60 = vld [vmem:[%s11804_s20 + $0x14] ss:$8 sps:$4 sm:$0xff]  }
 0xe3e   :  { %v11133_v18 = vpack.c.bf16 %v5025_v16, %v5023_v61  ;;  %v9255_v16 = vld [vmem:[%s11804_s20 + $0x10] ss:$8 sps:$4 sm:$0xff]  }
 0xe40   :  { %5048 = vmatprep.subr.bf16.mxu1 %v11133_v18 }
 0xe41   :  { %5049 = vmatpush1.bf16.msra.mxu1 %v11131_v17 }
 0xe42   :  { %5158 = vmatprep.subr.bf16.mxu1 %v11133_v18 }
 0xe44   :  { %7928 = vmatmul.mubr.msk.bf16.vlgmr.msra.gmra.mrb[60].mxu1 %vm1670_vm3, %v9200_v2 }
 0xe45   :  { %5159 = vmatpush1.bf16.msra.mxu1 %v11131_v17  ;;  %5090 = vmatprep.mubr.bf16.mxu1 %v9466_v23 }
 0xe46   :  { %5408 = vmatprep.subr.bf16.mxu1 %v9206_v4  ;;  %v9260_v4 = vld [vmem:[%s11804_s20 + $0x24] ss:$8 sps:$4 sm:$0xff]  }
 0xe4c   :  { %7929 = vmatmul.mubr.msk.bf16.gmra.mrb[64].mxu1 %vm1670_vm3, %v9201_v19 }
 0xe4d   :  { %5190 = vmatprep.mubr.bf16.mxu1 %v9466_v23 }
 0xe54   :  { %7936 = vmatmul.mubr.msk.bf16.vlgmr.msra.gmra.mrb[68].mxu1 %vm1670_vm3, %v9202_v20 }
 0xe55   :  { %5200 = vmatprep.mubr.bf16.mxu1 %v9466_v23  ;;  %5409 = vmatpush1.bf16.msra.mxu1 %v9204_v21 }
 0xe56   :  { %5410 = vmatprep.subr.bf16.mxu1 %v9209_v22 }
 0xe59   :  { %5411 = vmatpush1.bf16.msra.mxu1 %v9207_v24  ;;  %v9258_v24 = vld [vmem:[%s11804_s20 + $0x20] ss:$8 sps:$4 sm:$0xff]  }
 0xe5a   :  { %5412 = vmatprep.subr.bf16.mxu1 %v9212_v25  ;;  %v9263_v25 = vld [vmem:[%s11804_s20 + $0x34] ss:$8 sps:$4 sm:$0xff]  }
 0xe5c   :  { %7937 = vmatmul.mubr.msk.bf16.gmra.mrb[72].mxu1 %vm1670_vm3, %v9203_v26  ;;  %v9261_v26 = vld [vmem:[%s11804_s20 + $0x30] ss:$8 sps:$4 sm:$0xff]  }
 0xe5d   :  { %5413 = vmatpush1.bf16.msra.mxu1 %v9210_v29  ;;  %v9266_v29 = vld [vmem:[%s11804_s20 + $0x44] ss:$8 sps:$4 sm:$0xff]  }
 0xe5e   :  { %5414 = vmatprep.subr.bf16.mxu1 %v9215_v32  ;;  %v9264_v32 = vld [vmem:[%s11804_s20 + $0x40] ss:$8 sps:$4 sm:$0xff]  }
 0xe61   :  { %5415 = vmatpush1.bf16.msra.mxu1 %v9213_v33  ;;  %v9269_v33 = vld [vmem:[%s11804_s20 + $0x54] ss:$8 sps:$4 sm:$0xff]  }
 0xe62   :  { %5416 = vmatprep.subr.bf16.mxu1 %v9218_v34  ;;  %v9267_v34 = vld [vmem:[%s11804_s20 + $0x50] ss:$8 sps:$4 sm:$0xff]  }
 0xe65   :  { %5417 = vmatpush1.bf16.msra.mxu1 %v9216_v35  ;;  %v9272_v35 = vld [vmem:[%s11804_s20 + $0x64] ss:$8 sps:$4 sm:$0xff]  }
 0xe66   :  { %5418 = vmatprep.subr.bf16.mxu1 %v9221_v36  ;;  %v9270_v36 = vld [vmem:[%s11804_s20 + $0x60] ss:$8 sps:$4 sm:$0xff]  }
 0xe69   :  { %5419 = vmatpush1.bf16.msra.mxu1 %v9219_v37  ;;  %v9275_v37 = vld [vmem:[%s11804_s20 + $0x74] ss:$8 sps:$4 sm:$0xff]  }
 0xe6a   :  { %5420 = vmatprep.subr.bf16.mxu1 %v9224_v38  ;;  %v9273_v38 = vld [vmem:[%s11804_s20 + $0x70] ss:$8 sps:$4 sm:$0xff]  }
 0xe6d   :  { %5421 = vmatpush1.bf16.msra.mxu1 %v9222_v39  ;;  %v9278_v39 = vld [vmem:[%s11804_s20 + $0x84] ss:$8 sps:$4 sm:$0xff]  }
 0xe6e   :  { %5422 = vmatprep.subr.bf16.mxu1 %v9227_v40  ;;  %v9276_v40 = vld [vmem:[%s11804_s20 + $0x80] ss:$8 sps:$4 sm:$0xff]  }
 0xe71   :  { %5423 = vmatpush1.bf16.msra.mxu1 %v9225_v41  ;;  %v9281_v41 = vld [vmem:[%s11804_s20 + $0x94] ss:$8 sps:$4 sm:$0xff]  }
 0xe72   :  { %5424 = vmatprep.subr.bf16.mxu1 %v9230_v42  ;;  %v9279_v42 = vld [vmem:[%s11804_s20 + $0x90] ss:$8 sps:$4 sm:$0xff]  }
 0xe75   :  { %5425 = vmatpush1.bf16.msra.mxu1 %v9228_v43  ;;  %v9284_v43 = vld [vmem:[%s11804_s20 + $0xa4] ss:$8 sps:$4 sm:$0xff]  }
 0xe76   :  { %5426 = vmatprep.subr.bf16.mxu1 %v9233_v44  ;;  %v9282_v44 = vld [vmem:[%s11804_s20 + $0xa0] ss:$8 sps:$4 sm:$0xff]  }
 0xe79   :  { %5427 = vmatpush1.bf16.msra.mxu1 %v9231_v45  ;;  %v9287_v45 = vld [vmem:[%s11804_s20 + $0xb4] ss:$8 sps:$4 sm:$0xff]  }
 0xe7a   :  { %5428 = vmatprep.subr.bf16.mxu1 %v9236_v27  ;;  %v9285_v27 = vld [vmem:[%s11804_s20 + $0xb0] ss:$8 sps:$4 sm:$0xff]  }
 0xe7d   :  { %5429 = vmatpush1.bf16.msra.mxu1 %v9234_v30  ;;  %v9290_v30 = vld [vmem:[%s11804_s20 + $0xc4] ss:$8 sps:$4 sm:$0xff]  }
 0xe7e   :  { %5430 = vmatprep.subr.bf16.mxu1 %v9239_v31  ;;  %v9288_v31 = vld [vmem:[%s11804_s20 + $0xc0] ss:$8 sps:$4 sm:$0xff]  }
 0xe81   :  { %5431 = vmatpush1.bf16.msra.mxu1 %v9237_v46  ;;  %v9293_v46 = vld [vmem:[%s11804_s20 + $0xd4] ss:$8 sps:$4 sm:$0xff]  }
 0xe82   :  { %5432 = vmatprep.subr.bf16.mxu1 %v9242_v48  ;;  %v9296_v48 = vld [vmem:[%s11804_s20 + $0xe4] ss:$8 sps:$4 sm:$0xff]  }
 0xe85   :  { %5433 = vmatpush1.bf16.msra.mxu1 %v9240_v47  ;;  %v9291_v47 = vld [vmem:[%s11804_s20 + $0xd0] ss:$8 sps:$4 sm:$0xff]  }
 0xe86   :  { %5434 = vmatprep.subr.bf16.mxu1 %v9245_v49  ;;  %v9294_v49 = vld [vmem:[%s11804_s20 + $0xe0] ss:$8 sps:$4 sm:$0xff]  }
 0xe89   :  { %5435 = vmatpush1.bf16.msra.mxu1 %v9243_v50  ;;  %v9299_v50 = vld [vmem:[%s11804_s20 + $0xf4] ss:$8 sps:$4 sm:$0xff]  }
 0xe8a   :  { %5436 = vmatprep.subr.bf16.mxu1 %v9248_v52  ;;  %v9304_v52 = vld [vmem:[%s11804_s20 + $0x204] ss:$8 sps:$4 sm:$0xff]  }
 0xe8d   :  { %5437 = vmatpush1.bf16.msra.mxu1 %v9246_v51  ;;  %v9297_v51 = vld [vmem:[%s11804_s20 + $0xf0] ss:$8 sps:$4 sm:$0xff]  }
 0xe8e   :  { %5438 = vmatprep.subr.bf16.mxu1 %v9251_v53  ;;  %v9302_v53 = vld [vmem:[%s11804_s20 + $0x200] ss:$8 sps:$4 sm:$0xff]  }
 0xe91   :  { %5439 = vmatpush1.bf16.msra.mxu1 %v9249_v54  ;;  %v9307_v54 = vld [vmem:[%s11804_s20 + $0x214] ss:$8 sps:$4 sm:$0xff]  }
 0xe92   :  { %5621 = vmatprep.subr.bf16.mxu1 %v9254_v55  ;;  %v9310_v55 = vld [vmem:[%s11804_s20 + $0x224] ss:$8 sps:$4 sm:$0xff]  }
 0xf17   :  { %v11257_v56 = vpop.f32.mrb[60].mxu1 }
 0xf18   :  { %v5084_v28 = vpop.f32.mrb[61].mxu1 }
 0xf19   :  { %v11259_v58 = vpop.f32.mrb[62].mxu1 }
 0xf1a   :  { %v5101_v59 = vpack.c.bf16 %v11259_v58, %v11257_v56  ;;  %v5088_v62 = vpop.f32.mrb[63].mxu1  ;;  %v9301_v56 = vld [vmem:[%s11803_s19 + $0x28] sm:$0xff]   ;;  %v9313_v58 = vld [vmem:[%s11804_s20 + $0x234] ss:$8 sps:$4 sm:$0xff]  }
 0xf1b   :  { %v5102_v63 = vpack.c.bf16 %v5088_v62, %v5084_v28  ;;  %v9308_v28 = vld [vmem:[%s11804_s20 + $0x220] ss:$8 sps:$4 sm:$0xff]   ;;  %v9316_v62 = vld [vmem:[%s11804_s20 + $0x244] ss:$8 sps:$4 sm:$0xff]  }
 0xf1f   :  { %v11263_v0 = vpop.f32.mrb[64].mxu1 }
 0xf20   :  { %v11265_v1 = vpop.f32.mrb[65].mxu1 }
 0xf21   :  { %v11267_v6 = vpop.f32.mrb[66].mxu1 }
 0xf22   :  { %v5103_v7 = vpack.c.bf16 %v11267_v6, %v11263_v0  ;;  %v11271_v8 = vpop.f32.mrb[67].mxu1  ;;  %v9319_v0 = vld [vmem:[%s11804_s20 + $0x254] ss:$8 sps:$4 sm:$0xff]   ;;  %v9322_v6 = vld [vmem:[%s11804_s20 + $0x264] ss:$8 sps:$4 sm:$0xff]  }
 0xf23   :  { %v5104_v9 = vpack.c.bf16 %v11271_v8, %v11265_v1  ;;  %v9317_v1 = vld [vmem:[%s11804_s20 + $0x250] ss:$8 sps:$4 sm:$0xff]   ;;  %v9325_v8 = vld [vmem:[%s11804_s20 + $0x274] ss:$8 sps:$4 sm:$0xff]  }
 0xf27   :  { %v5192_v10 = vpop.f32.mrb[68].mxu1 }
 0xf28   :  { %v5194_v11 = vpop.f32.mrb[69].mxu1 }
 0xf29   :  { %v5196_v12 = vpop.f32.mrb[70].mxu1 }
 0xf2a   :  { %v5211_v13 = vpack.c.bf16 %v5196_v12, %v5192_v10  ;;  %v5198_v14 = vpop.f32.mrb[71].mxu1  ;;  %v9328_v10 = vld [vmem:[%s11804_s20 + $0x284] ss:$8 sps:$4 sm:$0xff]   ;;  %v9331_v12 = vld [vmem:[%s11804_s20 + $0x294] ss:$8 sps:$4 sm:$0xff]  }
 0xf2b   :  { %v5212_v15 = vpack.c.bf16 %v5198_v14, %v5194_v11  ;;  %v9326_v11 = vld [vmem:[%s11804_s20 + $0x280] ss:$8 sps:$4 sm:$0xff]   ;;  %v9334_v14 = vld [vmem:[%s11804_s20 + $0x2a4] ss:$8 sps:$4 sm:$0xff]  }
 0xf2d   :  { %5440 = vmatprep.mubr.bf16.mxu1 %v5212_v15  ;;  %v9332_v15 = vld [vmem:[%s11804_s20 + $0x2a0] ss:$8 sps:$4 sm:$0xff]  }
 0xf2e   :  { %5441 = vmatmul.mubr.bf16.vlgmr.msra.gmra.mrb[76].mxu1 %v5211_v13  ;;  %v9329_v13 = vld [vmem:[%s11804_s20 + $0x290] ss:$8 sps:$4 sm:$0xff]  }
 0xf2f   :  { %5622 = vmatpush1.bf16.msra.mxu1 %v9252_v57  ;;  %v5202_v61 = vpop.f32.mrb[72].mxu1  ;;  %v9337_v57 = vld [vmem:[%s11804_s20 + $0x2b4] ss:$8 sps:$4 sm:$0xff]  }
 0xf30   :  { %v5204_v2 = vpop.f32.mrb[73].mxu1  ;;  %5623 = vmatprep.subr.bf16.mxu1 %v9257_v60  ;;  %v9335_v60 = vld [vmem:[%s11804_s20 + $0x2b0] ss:$8 sps:$4 sm:$0xff]  }
 0xf31   :  { %v5206_v19 = vpop.f32.mrb[74].mxu1 }
 0xf32   :  { %v5213_v20 = vpack.c.bf16 %v5206_v19, %v5202_v61  ;;  %v5208_v21 = vpop.f32.mrb[75].mxu1  ;;  %v9340_v61 = vld [vmem:[%s11804_s20 + $0x2c4] ss:$8 sps:$4 sm:$0xff]  }
 0xf33   :  { %v5214_v22 = vpack.c.bf16 %v5208_v21, %v5204_v2  ;;  %5624 = vmatpush1.bf16.msra.mxu1 %v9255_v16  ;;  %v9338_v16 = vld [vmem:[%s11804_s20 + $0x2c0] ss:$8 sps:$4 sm:$0xff]   ;;  %v9343_v2 = vld [vmem:[%s11804_s20 + $0x2d4] ss:$8 sps:$4 sm:$0xff]   ;;  %v9346_v19 = vld [vmem:[%s11804_s20 + $0x2e4] ss:$8 sps:$4 sm:$0xff]  }
 0xf34   :  { %5625 = vmatprep.subr.bf16.mxu1 %v9260_v4  ;;  %v9341_v4 = vld [vmem:[%s11804_s20 + $0x2d0] ss:$8 sps:$4 sm:$0xff]   ;;  %v9349_v21 = vld [vmem:[%s11804_s20 + $0x2f4] ss:$8 sps:$4 sm:$0xff]  }
 0xf35   :  { %5450 = vmatprep.mubr.bf16.mxu1 %v5214_v22  ;;  %v9347_v22 = vld [vmem:[%s11804_s20 + $0x2f0] ss:$8 sps:$4 sm:$0xff]  }
 0xf36   :  { %5451 = vmatmul.mubr.bf16.gmra.mrb[80].mxu1 %v5213_v20  ;;  %v9344_v20 = vld [vmem:[%s11804_s20 + $0x2e0] ss:$8 sps:$4 sm:$0xff]  }
 0xf37   :  { %5626 = vmatpush1.bf16.msra.mxu1 %v9258_v24  ;;  %5653 = vmatprep.mubr.bf16.mxu1 %v5102_v63  ;;  %v9314_v63 = vld [vmem:[%s11804_s20 + $0x240] ss:$8 sps:$4 sm:$0xff]  }
 0xf38   :  { %5627 = vmatprep.subr.bf16.mxu1 %v9263_v25 }
 0xf3b   :  { %5628 = vmatpush1.bf16.msra.mxu1 %v9261_v26 }
 0xf3c   :  { %5629 = vmatprep.subr.bf16.mxu1 %v9266_v29 }
 0xf3f   :  { %5630 = vmatpush1.bf16.msra.mxu1 %v9264_v32 }
 0xf40   :  { %5631 = vmatprep.subr.bf16.mxu1 %v9269_v33 }
 0xf43   :  { %5632 = vmatpush1.bf16.msra.mxu1 %v9267_v34 }
 0xf44   :  { %5633 = vmatprep.subr.bf16.mxu1 %v9272_v35 }
 0xf47   :  { %5634 = vmatpush1.bf16.msra.mxu1 %v9270_v36 }
 0xf48   :  { %5635 = vmatprep.subr.bf16.mxu1 %v9275_v37 }
 0xf4b   :  { %5636 = vmatpush1.bf16.msra.mxu1 %v9273_v38 }
 0xf4c   :  { %5637 = vmatprep.subr.bf16.mxu1 %v9278_v39 }
 0xf4f   :  { %5638 = vmatpush1.bf16.msra.mxu1 %v9276_v40  ;;  %v9374_v40 = vld [vmem:[%s11807_s23 + $0x40] sm:$0xff]  }
 0xf50   :  { %5639 = vmatprep.subr.bf16.mxu1 %v9281_v41  ;;  %v9375_v41 = vld [vmem:[%s11807_s23] sm:$0xff]  }
 0xf53   :  { %5640 = vmatpush1.bf16.msra.mxu1 %v9279_v42  ;;  %v9376_v42 = vld [vmem:[%s11807_s23 + $0x48] sm:$0xff]  }
 0xf54   :  { %5641 = vmatprep.subr.bf16.mxu1 %v9284_v43  ;;  %v9377_v43 = vld [vmem:[%s11807_s23 + $0x8] sm:$0xff]  }
 0xf57   :  { %5642 = vmatpush1.bf16.msra.mxu1 %v9282_v44  ;;  %v9378_v44 = vld [vmem:[%s11807_s23 + $0x50] sm:$0xff]  }
 0xf58   :  { %5643 = vmatprep.subr.bf16.mxu1 %v9287_v45  ;;  %v9379_v45 = vld [vmem:[%s11807_s23 + $0x10] sm:$0xff]  }
 0xf5b   :  { %5644 = vmatpush1.bf16.msra.mxu1 %v9285_v27  ;;  %v9380_v27 = vld [vmem:[%s11807_s23 + $0x58] sm:$0xff]  }
 0xf5c   :  { %5645 = vmatprep.subr.bf16.mxu1 %v9290_v30  ;;  %v9381_v30 = vld [vmem:[%s11807_s23 + $0x18] sm:$0xff]  }
 0xf5f   :  { %5646 = vmatpush1.bf16.msra.mxu1 %v9288_v31  ;;  %v9382_v31 = vld [vmem:[%s11807_s23 + $0x60] sm:$0xff]  }
 0xf60   :  { %5647 = vmatprep.subr.bf16.mxu1 %v9293_v46  ;;  %v9383_v46 = vld [vmem:[%s11807_s23 + $0x20] sm:$0xff]  }
 0xf63   :  { %5648 = vmatpush1.bf16.msra.mxu1 %v9291_v47  ;;  %v9384_v47 = vld [vmem:[%s11807_s23 + $0x68] sm:$0xff]  }
 0xf64   :  { %5649 = vmatprep.subr.bf16.mxu1 %v9296_v48  ;;  %v9385_v48 = vld [vmem:[%s11807_s23 + $0x28] sm:$0xff]  }
 0xf67   :  { %5650 = vmatpush1.bf16.msra.mxu1 %v9294_v49  ;;  %v9386_v49 = vld [vmem:[%s11807_s23 + $0x70] sm:$0xff]  }
 0xf68   :  { %5651 = vmatprep.subr.bf16.mxu1 %v9299_v50  ;;  %v6006_v50 = vld [vmem:[%s11805_s21] sm:$0x3] }
 0xf6b   :  { %5652 = vmatpush1.bf16.msra.mxu1 %v9297_v51  ;;  %v6011_v51 = vrot.slane %v6006_v50, %v9762_v3 }
 0xf6c   :  { %5695 = vmatprep.subr.bf16.mxu1 %v11133_v18  ;;  %v9300_v18 = vld [vmem:[%s11803_s19 + $0x20] sm:$0xff]  }
 0xf6e   :  { %5654 = vmatmul.mubr.bf16.vlgmr.msra.gmra.mrb[76].mxu1 %v5101_v59  ;;  %v9311_v59 = vld [vmem:[%s11804_s20 + $0x230] ss:$8 sps:$4 sm:$0xff]  }
 0xf6f   :  { %5663 = vmatprep.mubr.bf16.mxu1 %v5104_v9  ;;  %5696 = vmatpush1.bf16.msra.mxu1 %v11131_v17  ;;  %v9305_v17 = vld [vmem:[%s11804_s20 + $0x210] ss:$8 sps:$4 sm:$0xff]  }
 0xf70   :  { %5945 = vmatprep.subr.bf16.mxu1 %v9304_v52  ;;  %v9323_v9 = vld [vmem:[%s11804_s20 + $0x270] ss:$8 sps:$4 sm:$0xff]   ;;  %v6015_v52 = vrot.slane %v6006_v50, %v9767_v5 }
 0xf76   :  { %5664 = vmatmul.mubr.bf16.gmra.mrb[80].mxu1 %v5103_v7  ;;  %v9320_v7 = vld [vmem:[%s11804_s20 + $0x260] ss:$8 sps:$4 sm:$0xff]  }
 0xf77   :  { %5727 = vmatprep.mubr.bf16.mxu1 %v9466_v23 }
 0xf7e   :  { %8040 = vmatmul.mubr.msk.bf16.vlgmr.msra.gmra.mrb[84].mxu1 %vm1670_vm3, %v9300_v18 }
 0xf7f   :  { %5737 = vmatprep.mubr.bf16.mxu1 %v9466_v23  ;;  %5946 = vmatpush1.bf16.msra.mxu1 %v9302_v53 }
 0xf80   :  { %5947 = vmatprep.subr.bf16.mxu1 %v9307_v54 }
 0xf83   :  { %5948 = vmatpush1.bf16.msra.mxu1 %v9305_v17 }
 0xf84   :  { %5949 = vmatprep.subr.bf16.mxu1 %v9310_v55 }
 0xf86   :  { %8041 = vmatmul.mubr.msk.bf16.gmra.mrb[88].mxu1 %vm1670_vm3, %v9301_v56 }
 0xf87   :  { %5950 = vmatpush1.bf16.msra.mxu1 %v9308_v28 }
 0xf88   :  { %5951 = vmatprep.subr.bf16.mxu1 %v9313_v58 }
 0xf8b   :  { %5952 = vmatpush1.bf16.msra.mxu1 %v9311_v59 }
 0xf8c   :  { %5953 = vmatprep.subr.bf16.mxu1 %v9316_v62 }
 0xf8f   :  { %5954 = vmatpush1.bf16.msra.mxu1 %v9314_v63 }
 0xf90   :  { %5955 = vmatprep.subr.bf16.mxu1 %v9319_v0 }
 0xf93   :  { %5956 = vmatpush1.bf16.msra.mxu1 %v9317_v1 }
 0xf94   :  { %5957 = vmatprep.subr.bf16.mxu1 %v9322_v6 }
 0xf97   :  { %5958 = vmatpush1.bf16.msra.mxu1 %v9320_v7 }
 0xf98   :  { %5959 = vmatprep.subr.bf16.mxu1 %v9325_v8 }
 0xf9b   :  { %5960 = vmatpush1.bf16.msra.mxu1 %v9323_v9 }
 0xf9c   :  { %5961 = vmatprep.subr.bf16.mxu1 %v9328_v10 }
 0xf9f   :  { %5962 = vmatpush1.bf16.msra.mxu1 %v9326_v11 }
 0xfa0   :  { %5963 = vmatprep.subr.bf16.mxu1 %v9331_v12 }
 0xfa3   :  { %5964 = vmatpush1.bf16.msra.mxu1 %v9329_v13 }
 0xfa4   :  { %5965 = vmatprep.subr.bf16.mxu1 %v9334_v14 }
 0xfa7   :  { %5966 = vmatpush1.bf16.msra.mxu1 %v9332_v15 }
 0xfa8   :  { %5967 = vmatprep.subr.bf16.mxu1 %v9337_v57 }
 0xfab   :  { %5968 = vmatpush1.bf16.msra.mxu1 %v9335_v60 }
 0xfac   :  { %5969 = vmatprep.subr.bf16.mxu1 %v9340_v61 }
 0xfaf   :  { %5970 = vmatpush1.bf16.msra.mxu1 %v9338_v16  ;;  %v9350_v16 = vld [vmem:[%s11806_s22] sm:$0xff]  }
 0xfb0   :  { %5971 = vmatprep.subr.bf16.mxu1 %v9343_v2  ;;  %v9354_v2 = vld [vmem:[%s11807_s23 + $0xc0] sm:$0xff]  }
 0xfb3   :  { %5972 = vmatpush1.bf16.msra.mxu1 %v9341_v4  ;;  %v9351_v4 = vld [vmem:[%s11806_s22 + $0x8] sm:$0xff]  }
 0xfb4   :  { %5973 = vmatprep.subr.bf16.mxu1 %v9346_v19  ;;  %v9352_v19 = vld [vmem:[%s11806_s22 + $0x10] sm:$0xff]  }
 0xfb7   :  { %5974 = vmatpush1.bf16.msra.mxu1 %v9344_v20  ;;  %v9353_v20 = vld [vmem:[%s11806_s22 + $0x18] sm:$0xff]  }
 0xfb8   :  { %5975 = vmatprep.subr.bf16.mxu1 %v9349_v21  ;;  %v9355_v21 = vld [vmem:[%s11806_s22 + $0x20] sm:$0xff]  }
 0xfbb   :  { %5976 = vmatpush1.bf16.msra.mxu1 %v9347_v22  ;;  %v9356_v22 = vld [vmem:[%s11807_s23 + $0x80] sm:$0xff]  }
 0xfbc   :  { %8413 = vmatprep.subr.bf16.mxu1 %v9374_v40  ;;  %v9369_v40 = vld [vmem:[%s11807_s23 + $0xf0] sm:$0xff]  }
0x1051   :  { %v5729_v24 = vpop.f32.mrb[84].mxu1 }
0x1052   :  { %v5731_v25 = vpop.f32.mrb[85].mxu1 }
0x1053   :  { %v5733_v26 = vpop.f32.mrb[86].mxu1 }
0x1054   :  { %v5748_v29 = vpack.c.bf16 %v5733_v26, %v5729_v24  ;;  %v5735_v32 = vpop.f32.mrb[87].mxu1  ;;  %v9357_v24 = vld [vmem:[%s11807_s23 + $0xc8] sm:$0xff]   ;;  %v9359_v26 = vld [vmem:[%s11807_s23 + $0xd0] sm:$0xff]  }
0x1055   :  { %v5749_v33 = vpack.c.bf16 %v5735_v32, %v5731_v25  ;;  %v9358_v25 = vld [vmem:[%s11807_s23 + $0x88] sm:$0xff]   ;;  %v9361_v32 = vld [vmem:[%s11807_s23 + $0x90] sm:$0xff]  }
0x1057   :  { %5977 = vmatprep.mubr.bf16.mxu1 %v5749_v33  ;;  %v9362_v33 = vld [vmem:[%s11807_s23 + $0xd8] sm:$0xff]  }
0x1058   :  { %5978 = vmatmul.mubr.bf16.vlgmr.msra.gmra.mrb[76].mxu1 %v5748_v29  ;;  %v9360_v29 = vld [vmem:[%s11806_s22 + $0x28] sm:$0xff]  }
0x1059   :  { %v5739_v34 = vpop.f32.mrb[88].mxu1  ;;  %8414 = vmatpush3.bf16.msra.mxu1 %v9375_v41  ;;  %v9370_v41 = vld [vmem:[%s11806_s22 + $0x38] sm:$0xff]  }
0x105a   :  { %v5741_v35 = vpop.f32.mrb[89].mxu1  ;;  %8415 = vmatprep.subr.bf16.mxu1 %v9376_v42  ;;  %v9371_v42 = vld [vmem:[%s11807_s23 + $0xb0] sm:$0xff]  }
0x105b   :  { %v5743_v36 = vpop.f32.mrb[90].mxu1 }
0x105c   :  { %v5750_v37 = vpack.c.bf16 %v5743_v36, %v5739_v34  ;;  %v5745_v38 = vpop.f32.mrb[91].mxu1  ;;  %v9363_v34 = vld [vmem:[%s11807_s23 + $0x98] sm:$0xff]   ;;  %v9365_v36 = vld [vmem:[%s11806_s22 + $0x30] sm:$0xff]  }
0x105d   :  { %v5751_v39 = vpack.c.bf16 %v5745_v38, %v5741_v35  ;;  %8416 = vmatpush3.bf16.msra.mxu1 %v9377_v43  ;;  %v9364_v35 = vld [vmem:[%s11807_s23 + $0xe0] sm:$0xff]   ;;  %v9367_v38 = vld [vmem:[%s11807_s23 + $0xe8] sm:$0xff]   ;;  %v9372_v43 = vld [vmem:[%s11807_s23 + $0xf8] sm:$0xff]  }
0x105e   :  { %8417 = vmatprep.subr.bf16.mxu1 %v9378_v44  ;;  %v9373_v44 = vld [vmem:[%s11807_s23 + $0xb8] sm:$0xff]  }
0x105f   :  { %5987 = vmatprep.mubr.bf16.mxu1 %v5751_v39  ;;  %v9368_v39 = vld [vmem:[%s11807_s23 + $0xa8] sm:$0xff]  }
0x1060   :  { %5988 = vmatmul.mubr.bf16.gmra.mrb[80].mxu1 %v5750_v37  ;;  %v9366_v37 = vld [vmem:[%s11807_s23 + $0xa0] sm:$0xff]  }
0x1061   :  { %8418 = vmatpush3.bf16.msra.mxu1 %v9379_v45  ;;  %v9387_v45 = vld [vmem:[%s11807_s23 + $0x30] sm:$0xff]  }
0x1062   :  { %8419 = vmatprep.subr.bf16.mxu1 %v9380_v27  ;;  %v9388_v27 = vld [vmem:[%s11807_s23 + $0x78] sm:$0xff]  }
0x1065   :  { %8420 = vmatpush3.bf16.msra.mxu1 %v9381_v30  ;;  %v9389_v30 = vld [vmem:[%s11807_s23 + $0x38] sm:$0xff]  }
0x1066   :  { %8421 = vmatprep.subr.bf16.mxu1 %v9382_v31 }
0x1069   :  { %8422 = vmatpush3.bf16.msra.mxu1 %v9383_v46 }
0x106a   :  { %8423 = vmatprep.subr.bf16.mxu1 %v9384_v47 }
0x106d   :  { %8424 = vmatpush3.bf16.msra.mxu1 %v9385_v48 }
0x106e   :  { %8425 = vmatprep.subr.bf16.mxu1 %v9386_v49 }
0x1071   :  { %8426 = vmatpush3.bf16.msra.mxu1 %v9387_v45  ;;  %v9403_v45 = vld [vmem:[%s11807_s23 + $0x120] sm:$0xff]  }
0x1072   :  { %8427 = vmatprep.subr.bf16.mxu1 %v9388_v27  ;;  %v9404_v27 = vld [vmem:[%s11807_s23 + $0x168] sm:$0xff]  }
0x1075   :  { %8428 = vmatpush3.bf16.msra.mxu1 %v9389_v30  ;;  %v9405_v30 = vld [vmem:[%s11807_s23 + $0x128] sm:$0xff]  }
0x112b   :  { %v5979_v18 = vpop.f32.mrb[76].mxu1 }
0x112c   :  { %v6018_v53 = vadd.f32 %v6011_v51, %v5979_v18  ;;  %v5981_v54 = vpop.f32.mrb[77].mxu1 }
0x112d   :  { %v6019_v17 = vadd.f32 %v6015_v52, %v5981_v54  ;;  %v5983_v55 = vpop.f32.mrb[78].mxu1 }
0x112e   :  { %v6020_v56 = vadd.f32 %v6011_v51, %v5983_v55  ;;  %v5985_v28 = vpop.f32.mrb[79].mxu1  ;;  %v6026_v59 = vmax.f32 %v6018_v53, 0.0 }
0x112f   :  { %v6021_v58 = vadd.f32 %v6015_v52, %v5985_v28  ;;  %v6027_v63 = vmax.f32 %v6019_v17, 0.0 }
0x1130   :  { %v6028_v62 = vmax.f32 %v6020_v56, 0.0 }
0x1131   :  { %v6029_v0 = vmax.f32 %v6021_v58, 0.0 }
0x1132   :  { %v11529_v1 = vpack.c.bf16 %v6028_v62, %v6026_v59 }
0x1133   :  { %v11531_v6 = vpack.c.bf16 %v6029_v0, %v6027_v63  ;;  %v5989_v7 = vpop.f32.mrb[80].mxu1 }
0x1134   :  { %v6022_v3 = vadd.f32 %v6011_v51, %v5989_v7  ;;  %v5991_v8 = vpop.f32.mrb[81].mxu1 }
0x1135   :  { %v6023_v5 = vadd.f32 %v6015_v52, %v5991_v8  ;;  %v5993_v9 = vpop.f32.mrb[82].mxu1  ;;  %6078 = vmatprep.subr.bf16.mxu0 %v11531_v6 }
0x1136   :  { %v6024_v10 = vadd.f32 %v6011_v51, %v5993_v9  ;;  %v5995_v11 = vpop.f32.mrb[83].mxu1  ;;  %6079 = vmatpush1.bf16.msra.mxu0 %v11529_v1  ;;  %v6030_v13 = vmax.f32 %v6022_v3, 0.0 }
0x1137   :  { %v6025_v12 = vadd.f32 %v6015_v52, %v5995_v11  ;;  %v6031_v15 = vmax.f32 %v6023_v5, 0.0 }
0x1138   :  { %v6032_v14 = vmax.f32 %v6024_v10, 0.0 }
0x1139   :  { %v6033_v57 = vmax.f32 %v6025_v12, 0.0 }
0x113a   :  { %v11535_v60 = vpack.c.bf16 %v6032_v14, %v6030_v13 }
0x113b   :  { %v11537_v61 = vpack.c.bf16 %v6033_v57, %v6031_v15 }
0x113d   :  { %6080 = vmatprep.subr.bf16.mxu0 %v11537_v61 }
0x113e   :  { %6081 = vmatpush1.bf16.msra.mxu0 %v11535_v60 }
0x113f   :  { %6232 = vmatprep.subr.bf16.mxu0 %v11531_v6 }
0x1141   :  { %8110 = vmatmul.mubr.msk.bf16.vlgmr.msra.gmra.mrb[68].mxu0 %vm775_vm2, %v9350_v16 }
0x1142   :  { %6233 = vmatpush1.bf16.msra.mxu0 %v11529_v1  ;;  %6120 = vmatprep.mubr.bf16.mxu0 %v9466_v23 }
0x1143   :  { %6234 = vmatprep.subr.bf16.mxu0 %v11537_v61 }
0x1146   :  { %6235 = vmatpush1.bf16.msra.mxu0 %v11535_v60 }
0x1147   :  { %8373 = vmatprep.subr.bf16.mxu0 %v9354_v2 }
0x1149   :  { %8111 = vmatmul.mubr.msk.bf16.gmra.mrb[72].mxu0 %vm775_vm2, %v9351_v4 }
0x114a   :  { %6130 = vmatprep.mubr.bf16.mxu0 %v9466_v23 }
0x1151   :  { %8112 = vmatmul.mubr.msk.bf16.gmra.mrb[76].mxu0 %vm775_vm2, %v9352_v19 }
0x1152   :  { %6140 = vmatprep.mubr.bf16.mxu0 %v9466_v23 }
0x1159   :  { %8113 = vmatmul.mubr.msk.bf16.gmra.mrb[80].mxu0 %vm775_vm2, %v9353_v20 }
0x115a   :  { %6264 = vmatprep.mubr.bf16.mxu0 %v9466_v23 }
0x1161   :  { %8126 = vmatmul.mubr.msk.bf16.vlgmr.msra.gmra.mrb[84].mxu0 %vm775_vm2, %v9355_v21 }
0x1162   :  { %8374 = vmatpush3.bf16.msra.mxu0 %v9356_v22  ;;  %6274 = vmatprep.mubr.bf16.mxu0 %v9466_v23 }
0x1163   :  { %8375 = vmatprep.subr.bf16.mxu0 %v9357_v24 }
0x1166   :  { %8376 = vmatpush3.bf16.msra.mxu0 %v9358_v25 }
0x1167   :  { %8377 = vmatprep.subr.bf16.mxu0 %v9359_v26 }
0x1169   :  { %8127 = vmatmul.mubr.msk.bf16.gmra.mrb[88].mxu0 %vm775_vm2, %v9360_v29 }
0x116a   :  { %8378 = vmatpush3.bf16.msra.mxu0 %v9361_v32  ;;  %6284 = vmatprep.mubr.bf16.mxu0 %v9466_v23 }
0x116b   :  { %8379 = vmatprep.subr.bf16.mxu0 %v9362_v33 }
0x116e   :  { %8380 = vmatpush3.bf16.msra.mxu0 %v9363_v34  ;;  %v9391_v34 = vld [vmem:[%s11806_s22 + $0x48] sm:$0xff]  }
0x116f   :  { %8381 = vmatprep.subr.bf16.mxu0 %v9364_v35  ;;  %v9392_v35 = vld [vmem:[%s11806_s22 + $0x50] sm:$0xff]  }
0x1171   :  { %8128 = vmatmul.mubr.msk.bf16.gmra.mrb[92].mxu0 %vm775_vm2, %v9365_v36  ;;  %v9393_v36 = vld [vmem:[%s11806_s22 + $0x58] sm:$0xff]  }
0x1172   :  { %8382 = vmatpush3.bf16.msra.mxu0 %v9366_v37  ;;  %6294 = vmatprep.mubr.bf16.mxu0 %v9466_v23  ;;  %v9394_v37 = vld [vmem:[%s11807_s23 + $0x140] sm:$0xff]  }
0x1173   :  { %8383 = vmatprep.subr.bf16.mxu0 %v9367_v38  ;;  %v9395_v38 = vld [vmem:[%s11807_s23 + $0x100] sm:$0xff]   ;;  %8453 = vmatprep.subr.bf16.mxu1 %v9394_v37 }
0x1176   :  { %8384 = vmatpush3.bf16.msra.mxu0 %v9368_v39  ;;  %v9397_v39 = vld [vmem:[%s11807_s23 + $0x108] sm:$0xff]  }
0x1177   :  { %8385 = vmatprep.subr.bf16.mxu0 %v9369_v40  ;;  %v9398_v40 = vld [vmem:[%s11807_s23 + $0x150] sm:$0xff]  }
0x1179   :  { %8129 = vmatmul.mubr.msk.bf16.gmra.mrb[96].mxu0 %vm775_vm2, %v9370_v41  ;;  %v9399_v41 = vld [vmem:[%s11807_s23 + $0x110] sm:$0xff]  }
0x117a   :  { %8386 = vmatpush3.bf16.msra.mxu0 %v9371_v42  ;;  %v9400_v42 = vld [vmem:[%s11807_s23 + $0x158] sm:$0xff]  }
0x117b   :  { %8387 = vmatprep.subr.bf16.mxu0 %v9372_v43  ;;  %v9401_v43 = vld [vmem:[%s11807_s23 + $0x118] sm:$0xff]  }
0x117e   :  { %8388 = vmatpush3.bf16.msra.mxu0 %v9373_v44  ;;  %v9402_v44 = vld [vmem:[%s11807_s23 + $0x160] sm:$0xff]  }
0x117f   :  { %6709 = vmatprep.subr.bf16.mxu0 %v11531_v6 }
0x1214   :  { %v6112_v31 = vpop.f32.mrb[68].mxu0 }
0x1215   :  { %v6114_v46 = vpop.f32.mrb[69].mxu0 }
0x1216   :  { %v6116_v47 = vpop.f32.mrb[70].mxu0 }
0x1217   :  { %v6151_v48 = vpack.c.bf16 %v6116_v47, %v6112_v31  ;;  %v6118_v49 = vpop.f32.mrb[71].mxu0  ;;  %v9406_v31 = vld [vmem:[%s11807_s23 + $0x170] sm:$0xff]   ;;  %v9408_v47 = vld [vmem:[%s11807_s23 + $0x178] sm:$0xff]  }
0x1218   :  { %v6152_v50 = vpack.c.bf16 %v6118_v49, %v6114_v46  ;;  %v9407_v46 = vld [vmem:[%s11807_s23 + $0x130] sm:$0xff]  }
0x121a   :  { %6635 = vmatprep.mubr.bf16.mxu1 %v6152_v50 }
0x121b   :  { %6636 = vmatmul.mubr.bf16.vlgmr.msra.gmra.mrb[92].mxu1 %v6151_v48  ;;  %v9409_v48 = vld [vmem:[%s11807_s23 + $0x138] sm:$0xff]  }
0x121c   :  { %v6122_v51 = vpop.f32.mrb[72].mxu0  ;;  %8454 = vmatpush3.bf16.msra.mxu1 %v9395_v38 }
0x121d   :  { %v6124_v52 = vpop.f32.mrb[73].mxu0 }
0x121e   :  { %v6126_v18 = vpop.f32.mrb[74].mxu0 }
0x121f   :  { %v6153_v53 = vpack.c.bf16 %v6126_v18, %v6122_v51  ;;  %v6128_v54 = vpop.f32.mrb[75].mxu0 }
0x1220   :  { %v6154_v17 = vpack.c.bf16 %v6128_v54, %v6124_v52 }
0x1222   :  { %6643 = vmatprep.mubr.bf16.mxu1 %v6154_v17 }
0x1223   :  { %6644 = vmatmul.mubr.bf16.gmra.mrb[96].mxu1 %v6153_v53 }
0x1224   :  { %v6132_v55 = vpop.f32.mrb[76].mxu0 }
0x1225   :  { %v6134_v56 = vpop.f32.mrb[77].mxu0 }
0x1226   :  { %v6136_v28 = vpop.f32.mrb[78].mxu0 }
0x1227   :  { %v6155_v58 = vpack.c.bf16 %v6136_v28, %v6132_v55  ;;  %v6138_v59 = vpop.f32.mrb[79].mxu0 }
0x1228   :  { %v6156_v62 = vpack.c.bf16 %v6138_v59, %v6134_v56 }
0x122a   :  { %6651 = vmatprep.mubr.bf16.mxu1 %v6156_v62 }
0x122b   :  { %6652 = vmatmul.mubr.bf16.gmra.mrb[100].mxu1 %v6155_v58 }
0x122c   :  { %v6142_v63 = vpop.f32.mrb[80].mxu0 }
0x122d   :  { %v6144_v0 = vpop.f32.mrb[81].mxu0 }
0x122e   :  { %v6146_v6 = vpop.f32.mrb[82].mxu0 }
0x122f   :  { %v6157_v7 = vpack.c.bf16 %v6146_v6, %v6142_v63  ;;  %v6148_v3 = vpop.f32.mrb[83].mxu0 }
0x1230   :  { %v6158_v8 = vpack.c.bf16 %v6148_v3, %v6144_v0 }
0x1232   :  { %6659 = vmatprep.mubr.bf16.mxu1 %v6158_v8 }
0x1233   :  { %6660 = vmatmul.mubr.bf16.gmra.mrb[104].mxu1 %v6157_v7 }
0x1234   :  { %v6266_v5 = vpop.f32.mrb[84].mxu0 }
0x1235   :  { %v6268_v9 = vpop.f32.mrb[85].mxu0 }
0x1236   :  { %v6270_v10 = vpop.f32.mrb[86].mxu0 }
0x1237   :  { %v6305_v11 = vpack.c.bf16 %v6270_v10, %v6266_v5  ;;  %v6272_v12 = vpop.f32.mrb[87].mxu0 }
0x1238   :  { %v6306_v13 = vpack.c.bf16 %v6272_v12, %v6268_v9 }
0x123a   :  { %6474 = vmatprep.mubr.bf16.mxu0 %v6306_v13 }
0x123b   :  { %6475 = vmatmul.mubr.bf16.vlgmr.msra.gmra.mrb[100].mxu0 %v6305_v11 }
0x123c   :  { %6710 = vmatpush1.bf16.msra.mxu0 %v11529_v1  ;;  %v6276_v14 = vpop.f32.mrb[88].mxu0 }
0x123d   :  { %6711 = vmatprep.subr.bf16.mxu0 %v11537_v61  ;;  %v6278_v15 = vpop.f32.mrb[89].mxu0 }
0x123e   :  { %v6280_v57 = vpop.f32.mrb[90].mxu0 }
0x123f   :  { %v6307_v16 = vpack.c.bf16 %v6280_v57, %v6276_v14  ;;  %v6282_v2 = vpop.f32.mrb[91].mxu0 }
0x1240   :  { %v6308_v4 = vpack.c.bf16 %v6282_v2, %v6278_v15  ;;  %6712 = vmatpush1.bf16.msra.mxu0 %v11535_v60  ;;  %v9390_v60 = vld [vmem:[%s11806_s22 + $0x40] sm:$0xff]  }
0x1242   :  { %6482 = vmatprep.mubr.bf16.mxu0 %v6308_v4 }
0x1243   :  { %6483 = vmatmul.mubr.bf16.gmra.mrb[104].mxu0 %v6307_v16 }
0x1244   :  { %v6286_v19 = vpop.f32.mrb[92].mxu0 }
0x1245   :  { %v6288_v20 = vpop.f32.mrb[93].mxu0 }
0x1246   :  { %v6290_v21 = vpop.f32.mrb[94].mxu0 }
0x1247   :  { %v6309_v22 = vpack.c.bf16 %v6290_v21, %v6286_v19  ;;  %v6292_v24 = vpop.f32.mrb[95].mxu0 }
0x1248   :  { %v6310_v25 = vpack.c.bf16 %v6292_v24, %v6288_v20 }
0x124a   :  { %6490 = vmatprep.mubr.bf16.mxu0 %v6310_v25 }
0x124b   :  { %6491 = vmatmul.mubr.bf16.gmra.mrb[108].mxu0 %v6309_v22 }
0x124c   :  { %v6296_v1 = vpop.f32.mrb[96].mxu0 }
0x124d   :  { %v6298_v26 = vpop.f32.mrb[97].mxu0 }
0x124e   :  { %v6300_v61 = vpop.f32.mrb[98].mxu0 }
0x124f   :  { %v6311_v29 = vpack.c.bf16 %v6300_v61, %v6296_v1  ;;  %v6302_v32 = vpop.f32.mrb[99].mxu0 }
0x1250   :  { %v6312_v33 = vpack.c.bf16 %v6302_v32, %v6298_v26 }
0x1252   :  { %6498 = vmatprep.mubr.bf16.mxu0 %v6312_v33 }
0x1253   :  { %6499 = vmatmul.mubr.bf16.gmra.mrb[112].mxu0 %v6311_v29 }
0x1254   :  { %6741 = vmatprep.mubr.bf16.mxu0 %v9466_v23 }
0x125b   :  { %8206 = vmatmul.mubr.msk.bf16.vlgmr.msra.gmra.mrb[116].mxu0 %vm775_vm2, %v9390_v60 }
0x125c   :  { %6751 = vmatprep.mubr.bf16.mxu0 %v9466_v23 }
0x1263   :  { %8207 = vmatmul.mubr.msk.bf16.gmra.mrb[120].mxu0 %vm775_vm2, %v9391_v34 }
0x1264   :  { %6761 = vmatprep.mubr.bf16.mxu0 %v9466_v23 }
0x126b   :  { %8208 = vmatmul.mubr.msk.bf16.gmra.mrb[124].mxu0 %vm775_vm2, %v9392_v35 }
0x126c   :  { %6771 = vmatprep.mubr.bf16.mxu0 %v9466_v23  ;;  %v9396_v23 = vld [vmem:[%s11807_s23 + $0x148] sm:$0xff]   ;;  %s9468_s23 = smov [#allocation2]  }
0x126d   :  { %8455 = vmatprep.subr.bf16.mxu1 %v9396_v23  ;;  %s7069_s11 = sshll.u32 %s9468_s23, 4  ;;  %s7070_s11 = int_to_ptr.vmem [resolvable:$true] %s7069_s11 }
0x126e   :  { %8456 = vmatpush3.bf16.msra.mxu1 %v9397_v39  ;;  %s9442_s13 = scalar_lea.vmem %s7070_s11, 32  ;;  %p9447_p1 = scmp.lt.s32.totalorder %s7070_s11, %s7070_s11 }
0x126f   :  { %8457 = vmatprep.subr.bf16.mxu1 %v9398_v40  ;;  %p9443_p0 = scmp.ne.s32.totalorder %s7070_s11, %s9442_s13  ;;  %p9448_p2 = scmp.lt.s32.totalorder %s9442_s13, %s9442_s13 }
0x1271   :  { %p9449_p3 = por %p9448_p2, %p9447_p1 }
0x1272   :  { %8458 = vmatpush3.bf16.msra.mxu1 %v9399_v41 }
0x1273   :  { %8209 = vmatmul.mubr.msk.bf16.gmra.mrb[128].mxu0 %vm775_vm2, %v9393_v36  ;;  %8459 = vmatprep.subr.bf16.mxu1 %v9400_v42  ;;  %p9450_p4 = pnand %p9449_p3, %p9443_p0 }
0x1276   :  { %8460 = vmatpush3.bf16.msra.mxu1 %v9401_v43 }
0x1277   :  { %8461 = vmatprep.subr.bf16.mxu1 %v9402_v44 }
0x127a   :  { %8462 = vmatpush3.bf16.msra.mxu1 %v9403_v45 }
0x127b   :  { %8463 = vmatprep.subr.bf16.mxu1 %v9404_v27 }
0x127e   :  { %8464 = vmatpush3.bf16.msra.mxu1 %v9405_v30 }
0x127f   :  { %8465 = vmatprep.subr.bf16.mxu1 %v9406_v31 }
0x1282   :  { %8466 = vmatpush3.bf16.msra.mxu1 %v9407_v46 }
0x1283   :  { %8467 = vmatprep.subr.bf16.mxu1 %v9408_v47 }
0x1286   :  { %8468 = vmatpush3.bf16.msra.mxu1 %v9409_v48 }
0x12ee   :  { %v8429_v49 = vpop.f32.mrb[92].mxu1 }
0x12ef   :  { %v8430_v50 = vpop.f32.mrb[93].mxu1 }
0x12f0   :  { %v8431_v51 = vadd.f32 %v8430_v50, %v8429_v49  ;;  %v8432_v52 = vpop.f32.mrb[94].mxu1 }
0x12f1   :  { %v8433_v18 = vpop.f32.mrb[95].mxu1 }
0x12f2   :  { %v8434_v53 = vadd.f32 %v8433_v18, %v8432_v52 }
0x12f6   :  { %v8435_v54 = vpop.f32.mrb[96].mxu1 }
0x12f7   :  { %v8436_v17 = vpop.f32.mrb[97].mxu1 }
0x12f8   :  { %v8437_v55 = vadd.f32 %v8436_v17, %v8435_v54  ;;  %v8438_v56 = vpop.f32.mrb[98].mxu1 }
0x12f9   :  { %v8439_v28 = vpop.f32.mrb[99].mxu1 }
0x12fa   :  { %v8440_v58 = vadd.f32 %v8439_v28, %v8438_v56 }
0x12fe   :  { %v8441_v59 = vpop.f32.mrb[100].mxu1 }
0x12ff   :  { %v8442_v62 = vpop.f32.mrb[101].mxu1 }
0x1300   :  { %v8443_v63 = vadd.f32 %v8442_v62, %v8441_v59  ;;  %v8444_v0 = vpop.f32.mrb[102].mxu1 }
0x1301   :  { %v8445_v6 = vpop.f32.mrb[103].mxu1 }
0x1302   :  { %v8446_v7 = vadd.f32 %v8445_v6, %v8444_v0 }
0x1306   :  { %v8447_v3 = vpop.f32.mrb[104].mxu1 }
0x1307   :  { %v8448_v8 = vpop.f32.mrb[105].mxu1 }
0x1308   :  { %v8449_v5 = vadd.f32 %v8448_v8, %v8447_v3  ;;  %v8450_v9 = vpop.f32.mrb[106].mxu1 }
0x1309   :  { %v8451_v10 = vpop.f32.mrb[107].mxu1 }
0x130a   :  { %v8452_v11 = vadd.f32 %v8451_v10, %v8450_v9 }
0x130e   :  { %v8389_v12 = vpop.f32.mrb[100].mxu0 }
0x130f   :  { %v8390_v13 = vpop.f32.mrb[101].mxu0 }
0x1310   :  { %v8391_v14 = vadd.f32 %v8390_v13, %v8389_v12  ;;  %v8392_v15 = vpop.f32.mrb[102].mxu0 }
0x1311   :  { %v8393_v57 = vpop.f32.mrb[103].mxu0 }
0x1312   :  { %v11713_v16 = vadd.f32 %v8431_v51, %v8391_v14  ;;  %v8394_v2 = vadd.f32 %v8393_v57, %v8392_v15 }
0x1314   :  { %v11715_v4 = vadd.f32 %v8434_v53, %v8394_v2 }
0x1316   :  { %v8395_v19 = vpop.f32.mrb[104].mxu0 }
0x1317   :  { %v8396_v20 = vpop.f32.mrb[105].mxu0 }
0x1318   :  { %v8397_v21 = vadd.f32 %v8396_v20, %v8395_v19  ;;  %v8398_v22 = vpop.f32.mrb[106].mxu0 }
0x1319   :  { %v8399_v24 = vpop.f32.mrb[107].mxu0 }
0x131a   :  { %v11717_v25 = vadd.f32 %v8437_v55, %v8397_v21  ;;  %v8400_v1 = vadd.f32 %v8399_v24, %v8398_v22 }
0x131c   :  { %v11719_v26 = vadd.f32 %v8440_v58, %v8400_v1 }
0x131e   :  { %v8401_v61 = vpop.f32.mrb[108].mxu0 }
0x131f   :  { %v8402_v29 = vpop.f32.mrb[109].mxu0 }
0x1320   :  { %v8403_v32 = vadd.f32 %v8402_v29, %v8401_v61  ;;  %v8404_v33 = vpop.f32.mrb[110].mxu0 }
0x1321   :  { %v8405_v60 = vpop.f32.mrb[111].mxu0 }
0x1322   :  { %v11721_v34 = vadd.f32 %v8443_v63, %v8403_v32  ;;  %v8406_v35 = vadd.f32 %v8405_v60, %v8404_v33 }
0x1324   :  { %v11723_v36 = vadd.f32 %v8446_v7, %v8406_v35 }
0x1326   :  { %v8407_v37 = vpop.f32.mrb[112].mxu0 }
0x1327   :  { %v8408_v38 = vpop.f32.mrb[113].mxu0 }
0x1328   :  { %v8409_v23 = vadd.f32 %v8408_v38, %v8407_v37  ;;  %v8410_v39 = vpop.f32.mrb[114].mxu0 }
0x1329   :  { %v8411_v40 = vpop.f32.mrb[115].mxu0 }
0x132a   :  { %v11725_v41 = vadd.f32 %v8449_v5, %v8409_v23  ;;  %v8412_v42 = vadd.f32 %v8411_v40, %v8410_v39 }
0x132c   :  { %v11727_v43 = vadd.f32 %v8452_v11, %v8412_v42 }
0x132e   :  { %v6743_v44 = vpop.f32.mrb[116].mxu0 }
0x132f   :  { %v6745_v45 = vpop.f32.mrb[117].mxu0 }
0x1330   :  { %v6747_v27 = vpop.f32.mrb[118].mxu0 }
0x1331   :  { %v6782_v30 = vpack.c.bf16 %v6747_v27, %v6743_v44  ;;  %v6749_v31 = vpop.f32.mrb[119].mxu0 }
0x1332   :  { %v6783_v46 = vpack.c.bf16 %v6749_v31, %v6745_v45 }
0x1334   :  { %6951 = vmatprep.mubr.bf16.mxu1 %v6783_v46 }
0x1335   :  { %6952 = vmatmul.mubr.bf16.vlgmr.msra.gmra.mrb[108].mxu1 %v6782_v30 }
0x1336   :  { %v6753_v47 = vpop.f32.mrb[120].mxu0 }
0x1337   :  { %v6755_v48 = vpop.f32.mrb[121].mxu0 }
0x1338   :  { %v6757_v49 = vpop.f32.mrb[122].mxu0 }
0x1339   :  { %v6784_v50 = vpack.c.bf16 %v6757_v49, %v6753_v47  ;;  %v6759_v51 = vpop.f32.mrb[123].mxu0 }
0x133a   :  { %v6785_v52 = vpack.c.bf16 %v6759_v51, %v6755_v48 }
0x133c   :  { %6959 = vmatprep.mubr.bf16.mxu1 %v6785_v52 }
0x133d   :  { %6960 = vmatmul.mubr.bf16.gmra.mrb[112].mxu1 %v6784_v50 }
0x133e   :  { %v6763_v18 = vpop.f32.mrb[124].mxu0 }
0x133f   :  { %v6765_v53 = vpop.f32.mrb[125].mxu0 }
0x1340   :  { %v6767_v54 = vpop.f32.mrb[126].mxu0 }
0x1341   :  { %v6786_v17 = vpack.c.bf16 %v6767_v54, %v6763_v18  ;;  %v6769_v55 = vpop.f32.mrb[127].mxu0 }
0x1342   :  { %v6787_v56 = vpack.c.bf16 %v6769_v55, %v6765_v53 }
0x1344   :  { %6967 = vmatprep.mubr.bf16.mxu1 %v6787_v56 }
0x1345   :  { %6968 = vmatmul.mubr.bf16.gmra.mrb[116].mxu1 %v6786_v17 }
0x1346   :  { %v6773_v28 = vpop.f32.mrb[128].mxu0 }
0x1347   :  { %v6775_v58 = vpop.f32.mrb[129].mxu0 }
0x1348   :  { %v6777_v59 = vpop.f32.mrb[130].mxu0 }
0x1349   :  { %v6788_v62 = vpack.c.bf16 %v6777_v59, %v6773_v28  ;;  %v6779_v63 = vpop.f32.mrb[131].mxu0 }
0x134a   :  { %v6789_v0 = vpack.c.bf16 %v6779_v63, %v6775_v58 }
0x134c   :  { %6975 = vmatprep.mubr.bf16.mxu1 %v6789_v0 }
0x134d   :  { %6976 = vmatmul.mubr.bf16.gmra.mrb[120].mxu1 %v6788_v62 }
0x134e   :  { %9453 = shalt.err (!%p9450_p4)
}
0x134f   :  { %s9454_s16 = scalar_lea.hbm %s11809_s25, 32 }
0x1350   :  { %p9455_p5 = scmp.ne.s32.totalorder %s11809_s25, %s9454_s16  ;;  %p9458_p6 = scmp.lt.u32.totalorder %s9454_s16, %s11809_s25 }
0x1352   :  { %p9460_p7 = pnand %p9458_p6, %p9455_p5 }
0x1354   :  { %9463 = shalt.err (!%p9460_p7)
}
0x1355   :  { %7072 = dma.vmem_to_hbm [thread:$0]  %s7070_s11, 32, %s11809_s25, [#allocation3]   ;;  %v8258_v5 = vld [vmem:[%s11808_s24] ss:$0 sm:$0xff] }
0x1408   :  { %v8469_v6 = vpop.f32.mrb[108].mxu1 }
0x1409   :  { %v8470_v7 = vpop.f32.mrb[109].mxu1 }
0x140a   :  { %v8471_v3 = vadd.f32 %v8470_v7, %v8469_v6  ;;  %v8472_v8 = vpop.f32.mrb[110].mxu1 }
0x140b   :  { %v8473_v9 = vpop.f32.mrb[111].mxu1 }
0x140c   :  { %v6984_v10 = vadd.f32 %v8471_v3, %v11713_v16  ;;  %v8474_v11 = vadd.f32 %v8473_v9, %v8472_v8 }
0x140e   :  { %v6999_v12 = vadd.f32 %v8258_v5, %v6984_v10  ;;  %v6985_v13 = vadd.f32 %v8474_v11, %v11715_v4 }
0x1410   :  { %v8259_v14 = vmul.f32 -1.442695, %v6999_v12  ;;  %v7000_v15 = vadd.f32 %v8258_v5, %v6985_v13  ;;  %v8475_v57 = vpop.f32.mrb[112].mxu1 }
0x1411   :  { %v8476_v2 = vpop.f32.mrb[113].mxu1 }
0x1412   :  { %9410 = vpow2.f32 %v8259_v14  ;;  %v8260_v19 = vmul.f32 -1.442695, %v7000_v15  ;;  %v8477_v20 = vadd.f32 %v8476_v2, %v8475_v57  ;;  %v8478_v21 = vpop.f32.mrb[114].mxu1 }
0x1413   :  { %v8479_v22 = vpop.f32.mrb[115].mxu1 }
0x1414   :  { %9412 = vpow2.f32 %v8260_v19  ;;  %v6986_v24 = vadd.f32 %v8477_v20, %v11717_v25  ;;  %v8480_v1 = vadd.f32 %v8479_v22, %v8478_v21 }
0x1416   :  { %v7001_v61 = vadd.f32 %v8258_v5, %v6986_v24  ;;  %v6987_v16 = vadd.f32 %v8480_v1, %v11719_v26 }
0x1418   :  { %v8261_v29 = vmul.f32 -1.442695, %v7001_v61  ;;  %v7002_v32 = vadd.f32 %v8258_v5, %v6987_v16  ;;  %v8481_v33 = vpop.f32.mrb[116].mxu1 }
0x1419   :  { %v8482_v4 = vpop.f32.mrb[117].mxu1 }
0x141a   :  { %9414 = vpow2.f32 %v8261_v29  ;;  %v8262_v60 = vmul.f32 -1.442695, %v7002_v32  ;;  %v8483_v35 = vadd.f32 %v8482_v4, %v8481_v33  ;;  %v8484_v37 = vpop.f32.mrb[118].mxu1 }
0x141b   :  { %v8485_v38 = vpop.f32.mrb[119].mxu1 }
0x141c   :  { %v9411_v23 = vpop.eup %9410  ;;  %9416 = vpow2.f32 %v8262_v60  ;;  %v6988_v39 = vadd.f32 %v8483_v35, %v11721_v34  ;;  %v8486_v40 = vadd.f32 %v8485_v38, %v8484_v37 }
0x141d   :  { %v7031_v42 = vadd.f32 1.0, %v9411_v23 }
0x141e   :  { %v9413_v25 = vpop.eup %9412  ;;  %v7003_v44 = vadd.f32 %v8258_v5, %v6988_v39  ;;  %v6989_v45 = vadd.f32 %v8486_v40, %v11723_v36 }
0x141f   :  { %9418 = vrcp.f32 %v7031_v42  ;;  %v7032_v26 = vadd.f32 1.0, %v9413_v25 }
0x1420   :  { %v8263_v27 = vmul.f32 -1.442695, %v7003_v44  ;;  %v7004_v30 = vadd.f32 %v8258_v5, %v6989_v45  ;;  %v8487_v31 = vpop.f32.mrb[120].mxu1 }
0x1421   :  { %9420 = vrcp.f32 %v7032_v26  ;;  %v8488_v46 = vpop.f32.mrb[121].mxu1 }
0x1422   :  { %9422 = vpow2.f32 %v8263_v27  ;;  %v8264_v47 = vmul.f32 -1.442695, %v7004_v30  ;;  %v8489_v48 = vadd.f32 %v8488_v46, %v8487_v31  ;;  %v8490_v49 = vpop.f32.mrb[122].mxu1 }
0x1423   :  { %v8491_v50 = vpop.f32.mrb[123].mxu1 }
0x1424   :  { %v9415_v51 = vpop.eup %9414  ;;  %9424 = vpow2.f32 %v8264_v47  ;;  %v6990_v34 = vadd.f32 %v8489_v48, %v11725_v41  ;;  %v8492_v52 = vadd.f32 %v8491_v50, %v8490_v49 }
0x1425   :  { %v7033_v18 = vadd.f32 1.0, %v9415_v51 }
0x1426   :  { %v9417_v53 = vpop.eup %9416  ;;  %v7005_v36 = vadd.f32 %v8258_v5, %v6990_v34  ;;  %v6991_v54 = vadd.f32 %v8492_v52, %v11727_v43 }
0x1427   :  { %9426 = vrcp.f32 %v7033_v18  ;;  %v7034_v17 = vadd.f32 1.0, %v9417_v53 }
0x1428   :  { %v8265_v55 = vmul.f32 -1.442695, %v7005_v36  ;;  %v7006_v56 = vadd.f32 %v8258_v5, %v6991_v54 }
0x1429   :  { %v9419_v28 = vpop.eup %9418  ;;  %9428 = vrcp.f32 %v7034_v17 }
0x142a   :  { %7055 = vst.msk [vmem:[%s11810_s26] sm:$0xff] %vm345_vm1, %v9419_v28  ;;  %9430 = vpow2.f32 %v8265_v55  ;;  %v8266_v58 = vmul.f32 -1.442695, %v7006_v56 }
0x142b   :  { %v9421_v41 = vpop.eup %9420 }
0x142c   :  { %v9423_v59 = vpop.eup %9422  ;;  %7056 = vst.msk [vmem:[%s11810_s26 + $0x8] sm:$0xff] %vm345_vm1, %v9421_v41  ;;  %9432 = vpow2.f32 %v8266_v58 }
0x142d   :  { %v7035_v43 = vadd.f32 1.0, %v9423_v59 }
0x142e   :  { %v9425_v62 = vpop.eup %9424 }
0x142f   :  { %9434 = vrcp.f32 %v7035_v43  ;;  %v7036_v63 = vadd.f32 1.0, %v9425_v62 }
0x1431   :  { %v9427_v0 = vpop.eup %9426  ;;  %9436 = vrcp.f32 %v7036_v63 }
0x1432   :  { %7057 = vst.msk [vmem:[%s11810_s26 + $0x10] sm:$0xff] %vm345_vm1, %v9427_v0 }
0x1433   :  { %v9429_v6 = vpop.eup %9428 }
0x1434   :  { %v9431_v7 = vpop.eup %9430  ;;  %7058 = vst.msk [vmem:[%s11810_s26 + $0x18] sm:$0xff] %vm345_vm1, %v9429_v6 }
0x1435   :  { %v7037_v3 = vadd.f32 1.0, %v9431_v7 }
0x1436   :  { %v9433_v8 = vpop.eup %9432 }
0x1437   :  { %9438 = vrcp.f32 %v7037_v3  ;;  %v7038_v5 = vadd.f32 1.0, %v9433_v8 }
0x1439   :  { %v9435_v9 = vpop.eup %9434  ;;  %9440 = vrcp.f32 %v7038_v5 }
0x143a   :  { %7059 = vst.msk [vmem:[%s11810_s26 + $0x20] sm:$0xff] %vm345_vm1, %v9435_v9 }
0x143b   :  { %v9437_v10 = vpop.eup %9436 }
0x143c   :  { %7060 = vst.msk [vmem:[%s11810_s26 + $0x28] sm:$0xff] %vm345_vm1, %v9437_v10 }
0x1441   :  { %v9439_v11 = vpop.eup %9438 }
0x1442   :  { %7061 = vst.msk [vmem:[%s11810_s26 + $0x30] sm:$0xff] %vm345_vm1, %v9439_v11 }
0x1443   :  { %v9441_v12 = vpop.eup %9440 }
0x1444   :  { %7062 = vst.msk [vmem:[%s11810_s26 + $0x38] sm:$0xff] %vm345_vm1, %v9441_v12 }
0x1445   :  { %9464 = dma.done.wait [#allocation3], 32  }
0x1446   :  { %9465 = vsyncadd [#allocation3], 4294967264 }
0x1447   :  { %7080 = vsyncpa [#allocation3], 1 }

</bundles_post_ra>
